<compile_context>
chip_gen: v7x
topology: tpu7x:2x2x1
jax: 0.10.0
libtpu: 0.0.40
codegen_flags: <defaults>
</compile_context>

<pallas_src>
import jax
import jax.numpy as jnp
from jax.experimental import pallas as pl
from jax.experimental.pallas import tpu as pltpu


LANE = 128  # padded lane width for pooled-image / csv / part features / classifier head


def _round_up(x, m):
    return (x + m - 1) // m * m


def _cdiv(a, b):
    return (a + b - 1) // b


# ----------------------------------------------------------------------------------
# Kernel: everything after the (wrapper-side) global average pool, fused.
# ----------------------------------------------------------------------------------
def transformer_classifier_kernel(
    pooled_ref, csv_ref,
    w_img_ref, b_img_ref,                      # image-encoder stub head (Linear + ReLU)
    w_p1_ref, b_p1_ref, w_p2_ref, b_p2_ref,    # PartModel
    w_lin_ref, b_lin_ref,                      # linear_layer (on concatenated embedding)
    w_v_ref, b_v_ref, w_o_ref, b_o_ref,        # self-attention (seq_len == 1)
    g1_ref, beta1_ref,                         # LayerNorm 1
    w_f1_ref, b_f1_ref, w_f2_ref, b_f2_ref,    # feed-forward
    g2_ref, beta2_ref,                         # LayerNorm 2
    w_fc_ref, b_fc_ref,                        # final classifier (lane-padded head)
    out_ref,
):
    f32 = jnp.float32
    bf16 = jnp.bfloat16

    def matmul(x, w_ref):
        # bf16 MXU operands (weights stored bf16), f32 accumulation.
        return jnp.dot(x.astype(bf16), w_ref[...], preferred_element_type=f32)

    def linear(x, w_ref, b_ref):
        return matmul(x, w_ref) + b_ref[...]

    def layernorm(x, g_ref, b_ref, eps=1e-5):
        mu = jnp.mean(x, axis=-1, keepdims=True)
        var = jnp.mean((x - mu) ** 2, axis=-1, keepdims=True)
        return (x - mu) * jax.lax.rsqrt(var + eps) * g_ref[...] + b_ref[...]

    # ---- image encoder stub head: Linear(C -> img_dim) + ReLU on pre-pooled features ----
    img_emb = jnp.maximum(linear(pooled_ref[...], w_img_ref, b_img_ref), 0.0)   # [TB, img_dim]

    # ---- PartModel: Linear(16,64) -> ReLU -> Linear(64,64), zero-padded to 128 lanes ----
    h = jnp.maximum(linear(csv_ref[...], w_p1_ref, b_p1_ref), 0.0)
    csv_emb = linear(h, w_p2_ref, b_p2_ref)                                     # [TB, 128] (cols>=64 are 0)

    # ---- torch.cat((img, csv), dim=1) + linear_layer ----
    # Concat is on the lane axis at a 128-multiple boundary -> pure vreg copies (no XLU),
    # and gives one K-wide MXU matmul instead of two half-depth ones.
    combined = jnp.concatenate([img_emb, csv_emb], axis=-1)                     # [TB, img_dim+128]
    reduced = linear(combined, w_lin_ref, b_lin_ref)                            # [TB, d_model]

    # ---- TransformerEncoderLayer (batch_first, post-norm, eval -> dropout off) ----
    # seq_len == 1: softmax over a single key is 1, so attention == out_proj(V);
    # Q/K projections do not affect the result and are omitted (only valid for seq_len==1).
    v = linear(reduced, w_v_ref, b_v_ref)
    attn = linear(v, w_o_ref, b_o_ref)
    y1 = layernorm(reduced + attn, g1_ref, beta1_ref)
    ff = linear(jnp.maximum(linear(y1, w_f1_ref, b_f1_ref), 0.0), w_f2_ref, b_f2_ref)
    y2 = layernorm(y1 + ff, g2_ref, beta2_ref)

    # ---- final classifier fc: Linear(d_model, 2), head padded to 128 lanes (dense stores) ----
    out_ref[...] = linear(y2, w_fc_ref, b_fc_ref)


# ----------------------------------------------------------------------------------
# Parameter construction (PyTorch nn.Linear-style uniform init; zero padding is exact).
# ----------------------------------------------------------------------------------
def init_params(key, c_in, img_dim, part_dim, d_model, d_ff, csv_dim=16, num_classes=2):
    assert img_dim % LANE == 0 and d_model % LANE == 0 and d_ff % LANE == 0
    assert c_in <= LANE and csv_dim <= LANE and part_dim <= LANE and num_classes <= LANE
    f32, bf16 = jnp.float32, jnp.bfloat16
    ks = iter(jax.random.split(key, 32))

    def linear_wb(fan_in, fan_out, pad_in=None, pad_out=None):
        bound = 1.0 / (fan_in ** 0.5)
        w = jax.random.uniform(next(ks), (fan_in, fan_out), f32, -bound, bound)
        b = jax.random.uniform(next(ks), (fan_out,), f32, -bound, bound)
        pi, po = (pad_in or fan_in), (pad_out or fan_out)
        w_p = jnp.zeros((pi, po), f32).at[:fan_in, :fan_out].set(w)
        b_p = jnp.zeros((1, po), f32).at[0, :fan_out].set(b)
        return w_p.astype(bf16), b_p

    p = {}
    # image encoder stub head: Linear(C -> img_dim) + ReLU on pooled features
    p["w_img"], p["b_img"] = linear_wb(c_in, img_dim, pad_in=LANE)
    # PartModel, zero-padded to LANE lanes (exact: padded zeros contribute nothing)
    p["w_p1"], p["b_p1"] = linear_wb(csv_dim, 64, pad_in=LANE, pad_out=LANE)
    p["w_p2"], p["b_p2"] = linear_wb(64, part_dim, pad_in=LANE, pad_out=LANE)
    # linear_layer: Linear(img_dim + part_dim, d_model); csv-half rows padded 64 -> 128
    bound = 1.0 / ((img_dim + part_dim) ** 0.5)
    w_lin = jax.random.uniform(next(ks), (img_dim + part_dim, d_model), f32, -bound, bound)
    b_lin = jax.random.uniform(next(ks), (d_model,), f32, -bound, bound)
    w_lin_p = jnp.zeros((img_dim + LANE, d_model), f32)
    w_lin_p = w_lin_p.at[:img_dim].set(w_lin[:img_dim])
    w_lin_p = w_lin_p.at[img_dim:img_dim + part_dim].set(w_lin[img_dim:])
    p["w_lin"] = w_lin_p.astype(bf16)
    p["b_lin"] = b_lin.reshape(1, d_model)
    # self-attention (seq_len == 1: only V and out-proj matter)
    p["w_v"], p["b_v"] = linear_wb(d_model, d_model)
    p["w_o"], p["b_o"] = linear_wb(d_model, d_model)
    p["g1"] = jnp.ones((1, d_model), f32)
    p["beta1"] = jnp.zeros((1, d_model), f32)
    # feed-forward
    p["w_f1"], p["b_f1"] = linear_wb(d_model, d_ff)
    p["w_f2"], p["b_f2"] = linear_wb(d_ff, d_model)
    p["g2"] = jnp.ones((1, d_model), f32)
    p["beta2"] = jnp.zeros((1, d_model), f32)
    # classifier head, lane-padded from num_classes to LANE output columns
    p["w_fc"], p["b_fc"] = linear_wb(d_model, num_classes, pad_out=LANE)
    return p


# ----------------------------------------------------------------------------------
# Wrapper
# ----------------------------------------------------------------------------------
def _pick_block_b(B):
    kind = ""
    try:
        kind = jax.devices()[0].device_kind.lower()
    except Exception:
        pass
    # v6e/v7x MXU is 256-wide -> M=256 tiles; v5e's 128x128 MXU is already matched at 128.
    cap = 128 if "v5" in kind else 256
    block_b = min(cap, _round_up(B, 8))
    # v7x has 2 TensorCores per chip: ensure the "parallel" batch axis has >= 2 tiles.
    if "v7" in kind and B > 8:
        block_b = min(block_b, max(8, _round_up(_cdiv(B, 2), 8)))
    return block_b


def transformer_classifier_forward(x, csv, params, *, num_classes=2, block_b=None):
    """x: [B, C, H, W] (NCHW), csv: [B, csv_dim] -> logits [B, num_classes].

    The transformer always runs on a seq_len == 1 sequence (forward does unsqueeze(1)),
    which is what the attention shortcut inside the kernel assumes.
    """
    B, C, H, W = x.shape
    assert C <= LANE  # backbone stub operates on <=128 pooled channels
    if block_b is None:
        block_b = _pick_block_b(B)
    b_pad = _round_up(B, block_b)
    grid_b = b_pad // block_b

    # Image-backbone stub, stage 1 (global average pool) stays wrapper-side as a plain
    # XLA reduction: x is read from HBM exactly once (no f32 cast copy, no jnp.pad of
    # the full image), and the kernel only streams a tiny [b_pad, 128] pooled block.
    pooled = jnp.mean(x, axis=(2, 3), dtype=jnp.float32)                     # [B, C]
    pooled_p = jnp.zeros((b_pad, LANE), jnp.float32).at[:B, :C].set(pooled)
    csv_p = jnp.zeros((b_pad, LANE), jnp.float32).at[:B, :csv.shape[1]].set(
        csv.astype(jnp.float32))

    weights = (
        params["w_img"], params["b_img"],
        params["w_p1"], params["b_p1"], params["w_p2"], params["b_p2"],
        params["w_lin"], params["b_lin"],
        params["w_v"], params["b_v"], params["w_o"], params["b_o"],
        params["g1"], params["beta1"],
        params["w_f1"], params["b_f1"], params["w_f2"], params["b_f2"],
        params["g2"], params["beta2"],
        params["w_fc"], params["b_fc"],
    )

    def resident(a):
        # Full-array block + constant index -> weight is DMA'd HBM->VMEM once and stays
        # resident across batch tiles. With the image stream gone, even the default
        # double-buffered weight footprint (~5 MiB) is far under budget, so we keep the
        # default pipeline mode instead of pl.Buffered(1) for maximum compatibility.
        n = a.ndim
        return pl.BlockSpec(a.shape, lambda i, _n=n: (0,) * _n)

    in_specs = [
        pl.BlockSpec((block_b, LANE), lambda i: (i, 0)),   # pooled image block (per batch tile)
        pl.BlockSpec((block_b, LANE), lambda i: (i, 0)),   # csv block (per batch tile)
    ] + [resident(w) for w in weights]

    # VMEM budget: 2x resident weights (double-buffered) + 2x activation blocks
    # (pooled, csv, out) + [block_b, d_ff] f32 FFN intermediate + headroom; <= 48 MiB
    # is safe on every generation (v7x physical VMEM is 64 MiB).
    d_ff = params["w_f1"].shape[1]
    weight_bytes = sum(int(w.size) * w.dtype.itemsize for w in weights)
    act_bytes = 3 * block_b * LANE * 4
    ffn_tmp_bytes = block_b * d_ff * 4
    vmem_limit = int(min(2 * weight_bytes + 2 * act_bytes + ffn_tmp_bytes + (8 << 20),
                         48 << 20))

    out = pl.pallas_call(
        transformer_classifier_kernel,
        out_shape=jax.ShapeDtypeStruct((b_pad, LANE), jnp.float32),
        grid=(grid_b,),
        in_specs=in_specs,
        out_specs=pl.BlockSpec((block_b, LANE), lambda i: (i, 0)),
        compiler_params=pltpu.CompilerParams(
            dimension_semantics=("parallel",),   # batch tiles -> both TCs on v7x
            vmem_limit_bytes=vmem_limit,
        ),
    )(pooled_p, csv_p, *weights)

    return out[:B, :num_classes]


# ----------------------------------------------------------------------------------
# Pure-JAX reference (same stub + same bf16 weight usage) for tolerance checking.
# ----------------------------------------------------------------------------------
def transformer_classifier_reference(x, csv, params, *, num_classes=2):
    f32, bf16 = jnp.float32, jnp.bfloat16

    def lin(v, w, b):
        return jnp.dot(v.astype(bf16), w, preferred_element_type=f32) + b

    def ln(v, g, b, eps=1e-5):
        mu = jnp.mean(v, -1, keepdims=True)
        var = jnp.mean((v - mu) ** 2, -1, keepdims=True)
        return (v - mu) * jax.lax.rsqrt(var + eps) * g + b

    B, C = x.shape[0], x.shape[1]
    pooled = jnp.mean(x, axis=(2, 3), dtype=f32)
    pooled_p = jnp.zeros((B, LANE), f32).at[:, :C].set(pooled)
    csv_p = jnp.zeros((B, LANE), f32).at[:, :csv.shape[1]].set(csv.astype(f32))

    img = jnp.maximum(lin(pooled_p, params["w_img"], params["b_img"]), 0.0)
    h = jnp.maximum(lin(csv_p, params["w_p1"], params["b_p1"]), 0.0)
    ce = lin(h, params["w_p2"], params["b_p2"])
    red = lin(jnp.concatenate([img, ce], axis=-1), params["w_lin"], params["b_lin"])
    attn = lin(lin(red, params["w_v"], params["b_v"]), params["w_o"], params["b_o"])
    y1 = ln(red + attn, params["g1"], params["beta1"])
    ff = lin(jnp.maximum(lin(y1, params["w_f1"], params["b_f1"]), 0.0),
             params["w_f2"], params["b_f2"])
    y2 = ln(y1 + ff, params["g2"], params["beta2"])
    return lin(y2, params["w_fc"], params["b_fc"])[:, :num_classes]


if __name__ == "__main__":
    # Small shapes consistent with the module's forward:
    #   x:   [B, C, H, W] image batch (NCHW)
    #   csv: [B, 16]      PartModel input (input_dim=16 fixed in the module)
    B, C, H, W = 2, 4, 16, 16
    IMG_DIM, PART_DIM, D_MODEL, D_FF, CSV_DIM = 128, 64, 256, 2048, 16

    key = jax.random.PRNGKey(0)
    kx, kc, kp = jax.random.split(key, 3)
    x = jax.random.normal(kx, (B, C, H, W), jnp.float32)
    csv = jax.random.normal(kc, (B, CSV_DIM), jnp.float32)
    params = init_params(kp, C, IMG_DIM, PART_DIM, D_MODEL, D_FF, CSV_DIM)

    out = transformer_classifier_forward(x, csv, params)
    out = jax.block_until_ready(out)
    assert out.shape == (B, 2) and out.dtype == jnp.float32
    assert bool(jnp.all(jnp.isfinite(out)))

    ref = jax.block_until_ready(transformer_classifier_reference(x, csv, params))
    assert bool(jnp.max(jnp.abs(out - ref)) < 5e-2)

    print("KERNEL_OK")
</pallas_src>

<mosaic_0001>
module attributes {stable_mosaic.version = 11 : i64} {
  func.func @transformer_classifier_kernel(%arg0: i32, %arg1: memref<8x128xf32, #tpu.memory_space<vmem>>, %arg2: memref<8x128xf32, #tpu.memory_space<vmem>>, %arg3: memref<128x128xbf16, #tpu.memory_space<vmem>>, %arg4: memref<1x128xf32, #tpu.memory_space<vmem>>, %arg5: memref<128x128xbf16, #tpu.memory_space<vmem>>, %arg6: memref<1x128xf32, #tpu.memory_space<vmem>>, %arg7: memref<128x128xbf16, #tpu.memory_space<vmem>>, %arg8: memref<1x128xf32, #tpu.memory_space<vmem>>, %arg9: memref<256x256xbf16, #tpu.memory_space<vmem>>, %arg10: memref<1x256xf32, #tpu.memory_space<vmem>>, %arg11: memref<256x256xbf16, #tpu.memory_space<vmem>>, %arg12: memref<1x256xf32, #tpu.memory_space<vmem>>, %arg13: memref<256x256xbf16, #tpu.memory_space<vmem>>, %arg14: memref<1x256xf32, #tpu.memory_space<vmem>>, %arg15: memref<1x256xf32, #tpu.memory_space<vmem>>, %arg16: memref<1x256xf32, #tpu.memory_space<vmem>>, %arg17: memref<256x2048xbf16, #tpu.memory_space<vmem>>, %arg18: memref<1x2048xf32, #tpu.memory_space<vmem>>, %arg19: memref<2048x256xbf16, #tpu.memory_space<vmem>>, %arg20: memref<1x256xf32, #tpu.memory_space<vmem>>, %arg21: memref<1x256xf32, #tpu.memory_space<vmem>>, %arg22: memref<1x256xf32, #tpu.memory_space<vmem>>, %arg23: memref<256x128xbf16, #tpu.memory_space<vmem>>, %arg24: memref<1x128xf32, #tpu.memory_space<vmem>>, %arg25: memref<8x128xf32, #tpu.memory_space<vmem>>) attributes {dimension_semantics = [#tpu.dimension_semantics<parallel>], iteration_bounds = array<i64: 1>, scalar_prefetch = 0 : i64, scratch_operands = 0 : i64, tpu.core_type = #tpu.core_type<tc>, window_params = [{transform_indices = @transform_0, window_bounds = array<i64: 8, 128>}, {transform_indices = @transform_1, window_bounds = array<i64: 8, 128>}, {pipeline_mode = #tpu.pipeline_mode<synchronous>, transform_indices = @transform_2, window_bounds = array<i64: 128, 128>}, {pipeline_mode = #tpu.pipeline_mode<synchronous>, transform_indices = @transform_3, window_bounds = array<i64: 1, 128>}, {pipeline_mode = #tpu.pipeline_mode<synchronous>, transform_indices = @transform_4, window_bounds = array<i64: 128, 128>}, {pipeline_mode = #tpu.pipeline_mode<synchronous>, transform_indices = @transform_5, window_bounds = array<i64: 1, 128>}, {pipeline_mode = #tpu.pipeline_mode<synchronous>, transform_indices = @transform_6, window_bounds = array<i64: 128, 128>}, {pipeline_mode = #tpu.pipeline_mode<synchronous>, transform_indices = @transform_7, window_bounds = array<i64: 1, 128>}, {pipeline_mode = #tpu.pipeline_mode<synchronous>, transform_indices = @transform_8, window_bounds = array<i64: 256, 256>}, {pipeline_mode = #tpu.pipeline_mode<synchronous>, transform_indices = @transform_9, window_bounds = array<i64: 1, 256>}, {pipeline_mode = #tpu.pipeline_mode<synchronous>, transform_indices = @transform_10, window_bounds = array<i64: 256, 256>}, {pipeline_mode = #tpu.pipeline_mode<synchronous>, transform_indices = @transform_11, window_bounds = array<i64: 1, 256>}, {pipeline_mode = #tpu.pipeline_mode<synchronous>, transform_indices = @transform_12, window_bounds = array<i64: 256, 256>}, {pipeline_mode = #tpu.pipeline_mode<synchronous>, transform_indices = @transform_13, window_bounds = array<i64: 1, 256>}, {pipeline_mode = #tpu.pipeline_mode<synchronous>, transform_indices = @transform_14, window_bounds = array<i64: 1, 256>}, {pipeline_mode = #tpu.pipeline_mode<synchronous>, transform_indices = @transform_15, window_bounds = array<i64: 1, 256>}, {pipeline_mode = #tpu.pipeline_mode<synchronous>, transform_indices = @transform_16, window_bounds = array<i64: 256, 2048>}, {pipeline_mode = #tpu.pipeline_mode<synchronous>, transform_indices = @transform_17, window_bounds = array<i64: 1, 2048>}, {pipeline_mode = #tpu.pipeline_mode<synchronous>, transform_indices = @transform_18, window_bounds = array<i64: 2048, 256>}, {pipeline_mode = #tpu.pipeline_mode<synchronous>, transform_indices = @transform_19, window_bounds = array<i64: 1, 256>}, {pipeline_mode = #tpu.pipeline_mode<synchronous>, transform_indices = @transform_20, window_bounds = array<i64: 1, 256>}, {pipeline_mode = #tpu.pipeline_mode<synchronous>, transform_indices = @transform_21, window_bounds = array<i64: 1, 256>}, {pipeline_mode = #tpu.pipeline_mode<synchronous>, transform_indices = @transform_22, window_bounds = array<i64: 256, 128>}, {pipeline_mode = #tpu.pipeline_mode<synchronous>, transform_indices = @transform_23, window_bounds = array<i64: 1, 128>}, {transform_indices = @transform_24, window_bounds = array<i64: 8, 128>}]} {
    %c0 = arith.constant 0 : index
    %c0_0 = arith.constant 0 : index
    %0 = vector.load %arg1[%c0, %c0_0] : memref<8x128xf32, #tpu.memory_space<vmem>>, vector<8x128xf32>
    %1 = arith.truncf %0 : vector<8x128xf32> to vector<8x128xbf16>
    %c0_1 = arith.constant 0 : index
    %c0_2 = arith.constant 0 : index
    %2 = vector.load %arg3[%c0_1, %c0_2] : memref<128x128xbf16, #tpu.memory_space<vmem>>, vector<128x128xbf16>
    %cst = arith.constant dense<0.000000e+00> : vector<8x128xf32>
    %3 = tpu.matmul %1, %2, %cst {dimension_numbers = #tpu.dot_dimension_numbers<[1], [0], [0], [1], [0, 0, 1, 1], [], []>} : vector<8x128xbf16>, vector<128x128xbf16>, vector<8x128xf32> -> vector<8x128xf32>
    %c0_3 = arith.constant 0 : index
    %c0_4 = arith.constant 0 : index
    %4 = vector.load %arg4[%c0_3, %c0_4] : memref<1x128xf32, #tpu.memory_space<vmem>>, vector<1x128xf32>
    %5 = vector.broadcast %4 : vector<1x128xf32> to vector<8x128xf32>
    %6 = arith.addf %3, %5 : vector<8x128xf32>
    %cst_5 = arith.constant 0.000000e+00 : f32
    %7 = vector.broadcast %cst_5 : f32 to vector<8x128xf32>
    %8 = arith.maximumf %6, %7 : vector<8x128xf32>
    %c0_6 = arith.constant 0 : index
    %c0_7 = arith.constant 0 : index
    %9 = vector.load %arg2[%c0_6, %c0_7] : memref<8x128xf32, #tpu.memory_space<vmem>>, vector<8x128xf32>
    %10 = arith.truncf %9 : vector<8x128xf32> to vector<8x128xbf16>
    %c0_8 = arith.constant 0 : index
    %c0_9 = arith.constant 0 : index
    %11 = vector.load %arg5[%c0_8, %c0_9] : memref<128x128xbf16, #tpu.memory_space<vmem>>, vector<128x128xbf16>
    %cst_10 = arith.constant dense<0.000000e+00> : vector<8x128xf32>
    %12 = tpu.matmul %10, %11, %cst_10 {dimension_numbers = #tpu.dot_dimension_numbers<[1], [0], [0], [1], [0, 0, 1, 1], [], []>} : vector<8x128xbf16>, vector<128x128xbf16>, vector<8x128xf32> -> vector<8x128xf32>
    %c0_11 = arith.constant 0 : index
    %c0_12 = arith.constant 0 : index
    %13 = vector.load %arg6[%c0_11, %c0_12] : memref<1x128xf32, #tpu.memory_space<vmem>>, vector<1x128xf32>
    %14 = vector.broadcast %13 : vector<1x128xf32> to vector<8x128xf32>
    %15 = arith.addf %12, %14 : vector<8x128xf32>
    %cst_13 = arith.constant 0.000000e+00 : f32
    %16 = vector.broadcast %cst_13 : f32 to vector<8x128xf32>
    %17 = arith.maximumf %15, %16 : vector<8x128xf32>
    %18 = arith.truncf %17 : vector<8x128xf32> to vector<8x128xbf16>
    %c0_14 = arith.constant 0 : index
    %c0_15 = arith.constant 0 : index
    %19 = vector.load %arg7[%c0_14, %c0_15] : memref<128x128xbf16, #tpu.memory_space<vmem>>, vector<128x128xbf16>
    %cst_16 = arith.constant dense<0.000000e+00> : vector<8x128xf32>
    %20 = tpu.matmul %18, %19, %cst_16 {dimension_numbers = #tpu.dot_dimension_numbers<[1], [0], [0], [1], [0, 0, 1, 1], [], []>} : vector<8x128xbf16>, vector<128x128xbf16>, vector<8x128xf32> -> vector<8x128xf32>
    %c0_17 = arith.constant 0 : index
    %c0_18 = arith.constant 0 : index
    %21 = vector.load %arg8[%c0_17, %c0_18] : memref<1x128xf32, #tpu.memory_space<vmem>>, vector<1x128xf32>
    %22 = vector.broadcast %21 : vector<1x128xf32> to vector<8x128xf32>
    %23 = arith.addf %20, %22 : vector<8x128xf32>
    %24 = tpu.concatenate %8, %23 in 1 : vector<8x128xf32>, vector<8x128xf32> -> vector<8x256xf32>
    %25 = arith.truncf %24 : vector<8x256xf32> to vector<8x256xbf16>
    %c0_19 = arith.constant 0 : index
    %c0_20 = arith.constant 0 : index
    %26 = vector.load %arg9[%c0_19, %c0_20] : memref<256x256xbf16, #tpu.memory_space<vmem>>, vector<256x256xbf16>
    %cst_21 = arith.constant dense<0.000000e+00> : vector<8x256xf32>
    %27 = tpu.matmul %25, %26, %cst_21 {dimension_numbers = #tpu.dot_dimension_numbers<[1], [0], [0], [1], [0, 0, 1, 1], [], []>} : vector<8x256xbf16>, vector<256x256xbf16>, vector<8x256xf32> -> vector<8x256xf32>
    %c0_22 = arith.constant 0 : index
    %c0_23 = arith.constant 0 : index
    %28 = vector.load %arg10[%c0_22, %c0_23] : memref<1x256xf32, #tpu.memory_space<vmem>>, vector<1x256xf32>
    %29 = vector.broadcast %28 : vector<1x256xf32> to vector<8x256xf32>
    %30 = arith.addf %27, %29 : vector<8x256xf32>
    %31 = arith.truncf %30 : vector<8x256xf32> to vector<8x256xbf16>
    %c0_24 = arith.constant 0 : index
    %c0_25 = arith.constant 0 : index
    %32 = vector.load %arg11[%c0_24, %c0_25] : memref<256x256xbf16, #tpu.memory_space<vmem>>, vector<256x256xbf16>
    %cst_26 = arith.constant dense<0.000000e+00> : vector<8x256xf32>
    %33 = tpu.matmul %31, %32, %cst_26 {dimension_numbers = #tpu.dot_dimension_numbers<[1], [0], [0], [1], [0, 0, 1, 1], [], []>} : vector<8x256xbf16>, vector<256x256xbf16>, vector<8x256xf32> -> vector<8x256xf32>
    %c0_27 = arith.constant 0 : index
    %c0_28 = arith.constant 0 : index
    %34 = vector.load %arg12[%c0_27, %c0_28] : memref<1x256xf32, #tpu.memory_space<vmem>>, vector<1x256xf32>
    %35 = vector.broadcast %34 : vector<1x256xf32> to vector<8x256xf32>
    %36 = arith.addf %33, %35 : vector<8x256xf32>
    %37 = arith.truncf %36 : vector<8x256xf32> to vector<8x256xbf16>
    %c0_29 = arith.constant 0 : index
    %c0_30 = arith.constant 0 : index
    %38 = vector.load %arg13[%c0_29, %c0_30] : memref<256x256xbf16, #tpu.memory_space<vmem>>, vector<256x256xbf16>
    %cst_31 = arith.constant dense<0.000000e+00> : vector<8x256xf32>
    %39 = tpu.matmul %37, %38, %cst_31 {dimension_numbers = #tpu.dot_dimension_numbers<[1], [0], [0], [1], [0, 0, 1, 1], [], []>} : vector<8x256xbf16>, vector<256x256xbf16>, vector<8x256xf32> -> vector<8x256xf32>
    %c0_32 = arith.constant 0 : index
    %c0_33 = arith.constant 0 : index
    %40 = vector.load %arg14[%c0_32, %c0_33] : memref<1x256xf32, #tpu.memory_space<vmem>>, vector<1x256xf32>
    %41 = vector.broadcast %40 : vector<1x256xf32> to vector<8x256xf32>
    %42 = arith.addf %39, %41 : vector<8x256xf32>
    %43 = arith.addf %30, %42 : vector<8x256xf32>
    %cst_34 = arith.constant dense<0.000000e+00> : vector<8xf32>
    %44 = vector.multi_reduction <add>, %43, %cst_34 [1] : vector<8x256xf32> to vector<8xf32>
    %45 = vector.shape_cast %44 : vector<8xf32> to vector<8x1xf32>
    %cst_35 = arith.constant 2.560000e+02 : f32
    %46 = vector.broadcast %cst_35 : f32 to vector<8x1xf32>
    %47 = arith.divf %45, %46 : vector<8x1xf32>
    %48 = vector.broadcast %47 : vector<8x1xf32> to vector<8x256xf32>
    %49 = arith.subf %43, %48 : vector<8x256xf32>
    %50 = arith.mulf %49, %49 : vector<8x256xf32>
    %cst_36 = arith.constant dense<0.000000e+00> : vector<8xf32>
    %51 = vector.multi_reduction <add>, %50, %cst_36 [1] : vector<8x256xf32> to vector<8xf32>
    %52 = vector.shape_cast %51 : vector<8xf32> to vector<8x1xf32>
    %cst_37 = arith.constant 2.560000e+02 : f32
    %53 = vector.broadcast %cst_37 : f32 to vector<8x1xf32>
    %54 = arith.divf %52, %53 : vector<8x1xf32>
    %55 = vector.broadcast %47 : vector<8x1xf32> to vector<8x256xf32>
    %56 = arith.subf %43, %55 : vector<8x256xf32>
    %cst_38 = arith.constant 9.99999974E-6 : f32
    %57 = vector.broadcast %cst_38 : f32 to vector<8x1xf32>
    %58 = arith.addf %54, %57 : vector<8x1xf32>
    %59 = math.rsqrt %58 : vector<8x1xf32>
    %60 = vector.broadcast %59 : vector<8x1xf32> to vector<8x256xf32>
    %61 = arith.mulf %56, %60 : vector<8x256xf32>
    %c0_39 = arith.constant 0 : index
    %c0_40 = arith.constant 0 : index
    %62 = vector.load %arg15[%c0_39, %c0_40] : memref<1x256xf32, #tpu.memory_space<vmem>>, vector<1x256xf32>
    %63 = vector.broadcast %62 : vector<1x256xf32> to vector<8x256xf32>
    %64 = arith.mulf %61, %63 : vector<8x256xf32>
    %c0_41 = arith.constant 0 : index
    %c0_42 = arith.constant 0 : index
    %65 = vector.load %arg16[%c0_41, %c0_42] : memref<1x256xf32, #tpu.memory_space<vmem>>, vector<1x256xf32>
    %66 = vector.broadcast %65 : vector<1x256xf32> to vector<8x256xf32>
    %67 = arith.addf %64, %66 : vector<8x256xf32>
    %68 = arith.truncf %67 : vector<8x256xf32> to vector<8x256xbf16>
    %c0_43 = arith.constant 0 : index
    %c0_44 = arith.constant 0 : index
    %69 = vector.load %arg17[%c0_43, %c0_44] : memref<256x2048xbf16, #tpu.memory_space<vmem>>, vector<256x2048xbf16>
    %cst_45 = arith.constant dense<0.000000e+00> : vector<8x2048xf32>
    %70 = tpu.matmul %68, %69, %cst_45 {dimension_numbers = #tpu.dot_dimension_numbers<[1], [0], [0], [1], [0, 0, 1, 1], [], []>} : vector<8x256xbf16>, vector<256x2048xbf16>, vector<8x2048xf32> -> vector<8x2048xf32>
    %c0_46 = arith.constant 0 : index
    %c0_47 = arith.constant 0 : index
    %71 = vector.load %arg18[%c0_46, %c0_47] : memref<1x2048xf32, #tpu.memory_space<vmem>>, vector<1x2048xf32>
    %72 = vector.broadcast %71 : vector<1x2048xf32> to vector<8x2048xf32>
    %73 = arith.addf %70, %72 : vector<8x2048xf32>
    %cst_48 = arith.constant 0.000000e+00 : f32
    %74 = vector.broadcast %cst_48 : f32 to vector<8x2048xf32>
    %75 = arith.maximumf %73, %74 : vector<8x2048xf32>
    %76 = arith.truncf %75 : vector<8x2048xf32> to vector<8x2048xbf16>
    %c0_49 = arith.constant 0 : index
    %c0_50 = arith.constant 0 : index
    %77 = vector.load %arg19[%c0_49, %c0_50] : memref<2048x256xbf16, #tpu.memory_space<vmem>>, vector<2048x256xbf16>
    %cst_51 = arith.constant dense<0.000000e+00> : vector<8x256xf32>
    %78 = tpu.matmul %76, %77, %cst_51 {dimension_numbers = #tpu.dot_dimension_numbers<[1], [0], [0], [1], [0, 0, 1, 1], [], []>} : vector<8x2048xbf16>, vector<2048x256xbf16>, vector<8x256xf32> -> vector<8x256xf32>
    %c0_52 = arith.constant 0 : index
    %c0_53 = arith.constant 0 : index
    %79 = vector.load %arg20[%c0_52, %c0_53] : memref<1x256xf32, #tpu.memory_space<vmem>>, vector<1x256xf32>
    %80 = vector.broadcast %79 : vector<1x256xf32> to vector<8x256xf32>
    %81 = arith.addf %78, %80 : vector<8x256xf32>
    %82 = arith.addf %67, %81 : vector<8x256xf32>
    %cst_54 = arith.constant dense<0.000000e+00> : vector<8xf32>
    %83 = vector.multi_reduction <add>, %82, %cst_54 [1] : vector<8x256xf32> to vector<8xf32>
    %84 = vector.shape_cast %83 : vector<8xf32> to vector<8x1xf32>
    %cst_55 = arith.constant 2.560000e+02 : f32
    %85 = vector.broadcast %cst_55 : f32 to vector<8x1xf32>
    %86 = arith.divf %84, %85 : vector<8x1xf32>
    %87 = vector.broadcast %86 : vector<8x1xf32> to vector<8x256xf32>
    %88 = arith.subf %82, %87 : vector<8x256xf32>
    %89 = arith.mulf %88, %88 : vector<8x256xf32>
    %cst_56 = arith.constant dense<0.000000e+00> : vector<8xf32>
    %90 = vector.multi_reduction <add>, %89, %cst_56 [1] : vector<8x256xf32> to vector<8xf32>
    %91 = vector.shape_cast %90 : vector<8xf32> to vector<8x1xf32>
    %cst_57 = arith.constant 2.560000e+02 : f32
    %92 = vector.broadcast %cst_57 : f32 to vector<8x1xf32>
    %93 = arith.divf %91, %92 : vector<8x1xf32>
    %94 = vector.broadcast %86 : vector<8x1xf32> to vector<8x256xf32>
    %95 = arith.subf %82, %94 : vector<8x256xf32>
    %cst_58 = arith.constant 9.99999974E-6 : f32
    %96 = vector.broadcast %cst_58 : f32 to vector<8x1xf32>
    %97 = arith.addf %93, %96 : vector<8x1xf32>
    %98 = math.rsqrt %97 : vector<8x1xf32>
    %99 = vector.broadcast %98 : vector<8x1xf32> to vector<8x256xf32>
    %100 = arith.mulf %95, %99 : vector<8x256xf32>
    %c0_59 = arith.constant 0 : index
    %c0_60 = arith.constant 0 : index
    %101 = vector.load %arg21[%c0_59, %c0_60] : memref<1x256xf32, #tpu.memory_space<vmem>>, vector<1x256xf32>
    %102 = vector.broadcast %101 : vector<1x256xf32> to vector<8x256xf32>
    %103 = arith.mulf %100, %102 : vector<8x256xf32>
    %c0_61 = arith.constant 0 : index
    %c0_62 = arith.constant 0 : index
    %104 = vector.load %arg22[%c0_61, %c0_62] : memref<1x256xf32, #tpu.memory_space<vmem>>, vector<1x256xf32>
    %105 = vector.broadcast %104 : vector<1x256xf32> to vector<8x256xf32>
    %106 = arith.addf %103, %105 : vector<8x256xf32>
    %107 = arith.truncf %106 : vector<8x256xf32> to vector<8x256xbf16>
    %c0_63 = arith.constant 0 : index
    %c0_64 = arith.constant 0 : index
    %108 = vector.load %arg23[%c0_63, %c0_64] : memref<256x128xbf16, #tpu.memory_space<vmem>>, vector<256x128xbf16>
    %cst_65 = arith.constant dense<0.000000e+00> : vector<8x128xf32>
    %109 = tpu.matmul %107, %108, %cst_65 {dimension_numbers = #tpu.dot_dimension_numbers<[1], [0], [0], [1], [0, 0, 1, 1], [], []>} : vector<8x256xbf16>, vector<256x128xbf16>, vector<8x128xf32> -> vector<8x128xf32>
    %c0_66 = arith.constant 0 : index
    %c0_67 = arith.constant 0 : index
    %110 = vector.load %arg24[%c0_66, %c0_67] : memref<1x128xf32, #tpu.memory_space<vmem>>, vector<1x128xf32>
    %111 = vector.broadcast %110 : vector<1x128xf32> to vector<8x128xf32>
    %112 = arith.addf %109, %111 : vector<8x128xf32>
    %c0_68 = arith.constant 0 : index
    %c0_69 = arith.constant 0 : index
    %113 = vector.load %arg25[%c0_68, %c0_69] : memref<8x128xf32, #tpu.memory_space<vmem>>, vector<8x128xf32>
    tpu.vector_store %arg25[%c0_68, %c0_69], %112 {strides = array<i32>} : memref<8x128xf32, #tpu.memory_space<vmem>>, vector<8x128xf32>,
    return
  }
  func.func @transform_0(%arg0: i32) -> (i32, i32) {
    %c0_i32 = arith.constant 0 : i32
    %c0_i32_0 = arith.constant 0 : i32
    return %arg0, %c0_i32 : i32, i32
  }
  func.func @transform_1(%arg0: i32) -> (i32, i32) {
    %c0_i32 = arith.constant 0 : i32
    %c0_i32_0 = arith.constant 0 : i32
    return %arg0, %c0_i32 : i32, i32
  }
  func.func @transform_2(%arg0: i32) -> (i32, i32) {
    %c0_i32 = arith.constant 0 : i32
    %c0_i32_0 = arith.constant 0 : i32
    %c0_i32_1 = arith.constant 0 : i32
    return %c0_i32, %c0_i32_0 : i32, i32
  }
  func.func @transform_3(%arg0: i32) -> (i32, i32) {
    %c0_i32 = arith.constant 0 : i32
    %c0_i32_0 = arith.constant 0 : i32
    %c0_i32_1 = arith.constant 0 : i32
    return %c0_i32, %c0_i32_0 : i32, i32
  }
  func.func @transform_4(%arg0: i32) -> (i32, i32) {
    %c0_i32 = arith.constant 0 : i32
    %c0_i32_0 = arith.constant 0 : i32
    %c0_i32_1 = arith.constant 0 : i32
    return %c0_i32, %c0_i32_0 : i32, i32
  }
  func.func @transform_5(%arg0: i32) -> (i32, i32) {
    %c0_i32 = arith.constant 0 : i32
    %c0_i32_0 = arith.constant 0 : i32
    %c0_i32_1 = arith.constant 0 : i32
    return %c0_i32, %c0_i32_0 : i32, i32
  }
  func.func @transform_6(%arg0: i32) -> (i32, i32) {
    %c0_i32 = arith.constant 0 : i32
    %c0_i32_0 = arith.constant 0 : i32
    %c0_i32_1 = arith.constant 0 : i32
    return %c0_i32, %c0_i32_0 : i32, i32
  }
  func.func @transform_7(%arg0: i32) -> (i32, i32) {
    %c0_i32 = arith.constant 0 : i32
    %c0_i32_0 = arith.constant 0 : i32
    %c0_i32_1 = arith.constant 0 : i32
    return %c0_i32, %c0_i32_0 : i32, i32
  }
  func.func @transform_8(%arg0: i32) -> (i32, i32) {
    %c0_i32 = arith.constant 0 : i32
    %c0_i32_0 = arith.constant 0 : i32
    %c0_i32_1 = arith.constant 0 : i32
    return %c0_i32, %c0_i32_0 : i32, i32
  }
  func.func @transform_9(%arg0: i32) -> (i32, i32) {
    %c0_i32 = arith.constant 0 : i32
    %c0_i32_0 = arith.constant 0 : i32
    %c0_i32_1 = arith.constant 0 : i32
    return %c0_i32, %c0_i32_0 : i32, i32
  }
  func.func @transform_10(%arg0: i32) -> (i32, i32) {
    %c0_i32 = arith.constant 0 : i32
    %c0_i32_0 = arith.constant 0 : i32
    %c0_i32_1 = arith.constant 0 : i32
    return %c0_i32, %c0_i32_0 : i32, i32
  }
  func.func @transform_11(%arg0: i32) -> (i32, i32) {
    %c0_i32 = arith.constant 0 : i32
    %c0_i32_0 = arith.constant 0 : i32
    %c0_i32_1 = arith.constant 0 : i32
    return %c0_i32, %c0_i32_0 : i32, i32
  }
  func.func @transform_12(%arg0: i32) -> (i32, i32) {
    %c0_i32 = arith.constant 0 : i32
    %c0_i32_0 = arith.constant 0 : i32
    %c0_i32_1 = arith.constant 0 : i32
    return %c0_i32, %c0_i32_0 : i32, i32
  }
  func.func @transform_13(%arg0: i32) -> (i32, i32) {
    %c0_i32 = arith.constant 0 : i32
    %c0_i32_0 = arith.constant 0 : i32
    %c0_i32_1 = arith.constant 0 : i32
    return %c0_i32, %c0_i32_0 : i32, i32
  }
  func.func @transform_14(%arg0: i32) -> (i32, i32) {
    %c0_i32 = arith.constant 0 : i32
    %c0_i32_0 = arith.constant 0 : i32
    %c0_i32_1 = arith.constant 0 : i32
    return %c0_i32, %c0_i32_0 : i32, i32
  }
  func.func @transform_15(%arg0: i32) -> (i32, i32) {
    %c0_i32 = arith.constant 0 : i32
    %c0_i32_0 = arith.constant 0 : i32
    %c0_i32_1 = arith.constant 0 : i32
    return %c0_i32, %c0_i32_0 : i32, i32
  }
  func.func @transform_16(%arg0: i32) -> (i32, i32) {
    %c0_i32 = arith.constant 0 : i32
    %c0_i32_0 = arith.constant 0 : i32
    %c0_i32_1 = arith.constant 0 : i32
    return %c0_i32, %c0_i32_0 : i32, i32
  }
  func.func @transform_17(%arg0: i32) -> (i32, i32) {
    %c0_i32 = arith.constant 0 : i32
    %c0_i32_0 = arith.constant 0 : i32
    %c0_i32_1 = arith.constant 0 : i32
    return %c0_i32, %c0_i32_0 : i32, i32
  }
  func.func @transform_18(%arg0: i32) -> (i32, i32) {
    %c0_i32 = arith.constant 0 : i32
    %c0_i32_0 = arith.constant 0 : i32
    %c0_i32_1 = arith.constant 0 : i32
    return %c0_i32, %c0_i32_0 : i32, i32
  }
  func.func @transform_19(%arg0: i32) -> (i32, i32) {
    %c0_i32 = arith.constant 0 : i32
    %c0_i32_0 = arith.constant 0 : i32
    %c0_i32_1 = arith.constant 0 : i32
    return %c0_i32, %c0_i32_0 : i32, i32
  }
  func.func @transform_20(%arg0: i32) -> (i32, i32) {
    %c0_i32 = arith.constant 0 : i32
    %c0_i32_0 = arith.constant 0 : i32
    %c0_i32_1 = arith.constant 0 : i32
    return %c0_i32, %c0_i32_0 : i32, i32
  }
  func.func @transform_21(%arg0: i32) -> (i32, i32) {
    %c0_i32 = arith.constant 0 : i32
    %c0_i32_0 = arith.constant 0 : i32
    %c0_i32_1 = arith.constant 0 : i32
    return %c0_i32, %c0_i32_0 : i32, i32
  }
  func.func @transform_22(%arg0: i32) -> (i32, i32) {
    %c0_i32 = arith.constant 0 : i32
    %c0_i32_0 = arith.constant 0 : i32
    %c0_i32_1 = arith.constant 0 : i32
    return %c0_i32, %c0_i32_0 : i32, i32
  }
  func.func @transform_23(%arg0: i32) -> (i32, i32) {
    %c0_i32 = arith.constant 0 : i32
    %c0_i32_0 = arith.constant 0 : i32
    %c0_i32_1 = arith.constant 0 : i32
    return %c0_i32, %c0_i32_0 : i32, i32
  }
  func.func @transform_24(%arg0: i32) -> (i32, i32) {
    %c0_i32 = arith.constant 0 : i32
    %c0_i32_0 = arith.constant 0 : i32
    return %arg0, %c0_i32 : i32, i32
  }
}

</mosaic_0001>

<bundles_post_ra>
// kernel: tpu_custom_call.1
= control target key start
LH: loop header
LB: loop body
LE: loop exit
PB: predicated region body
PF: predicated region fallthrough
CT: control target
= control target key end

     0   :  { %s7769_s0 = inlined_call_operand.hbm [shape: f32[8,128], index: 0, kind: input, shape index: {}]   ;;  %s7770_s1 = inlined_call_operand.hbm [shape: f32[8,128], index: 1, kind: input, shape index: {}]   ;;  %s7771_s2 = inlined_call_operand.hbm [shape: bf16[128,128], index: 2, kind: input, shape index: {}]   ;;  %s7772_s3 = inlined_call_operand.hbm [shape: f32[1,128], index: 3, kind: input, shape index: {}]   ;;  %s7773_s4 = inlined_call_operand.hbm [shape: bf16[128,128], index: 4, kind: input, shape index: {}]   ;;  %s7774_s5 = inlined_call_operand.hbm [shape: f32[1,128], index: 5, kind: input, shape index: {}]   ;;  %s7775_s6 = inlined_call_operand.hbm [shape: bf16[128,128], index: 6, kind: input, shape index: {}]   ;;  %s7776_s7 = inlined_call_operand.hbm [shape: f32[1,128], index: 7, kind: input, shape index: {}]   ;;  %s7777_s8 = inlined_call_operand.hbm [shape: bf16[256,256], index: 8, kind: input, shape index: {}]   ;;  %s7778_s9 = inlined_call_operand.vmem [shape: f32[1,256], index: 9, kind: input, shape index: {}]   ;;  %s7779_s10 = inlined_call_operand.hbm [shape: bf16[256,256], index: 10, kind: input, shape index: {}]   ;;  %s7780_s11 = inlined_call_operand.vmem [shape: f32[1,256], index: 11, kind: input, shape index: {}]   ;;  %s7781_s12 = inlined_call_operand.hbm [shape: bf16[256,256], index: 12, kind: input, shape index: {}]   ;;  %s7782_s13 = inlined_call_operand.vmem [shape: f32[1,256], index: 13, kind: input, shape index: {}]   ;;  %s7783_s14 = inlined_call_operand.vmem [shape: f32[1,256], index: 14, kind: input, shape index: {}]   ;;  %s7784_s15 = inlined_call_operand.vmem [shape: f32[1,256], index: 15, kind: input, shape index: {}]   ;;  %s7785_s16 = inlined_call_operand.hbm [shape: bf16[256,2048], index: 16, kind: input, shape index: {}]   ;;  %s7786_s17 = inlined_call_operand.vmem [shape: f32[1,2048], index: 17, kind: input, shape index: {}]   ;;  %s7787_s18 = inlined_call_operand.hbm [shape: bf16[2048,256], index: 18, kind: input, shape index: {}]   ;;  %s7788_s19 = inlined_call_operand.vmem [shape: f32[1,256], index: 19, kind: input, shape index: {}]   ;;  %s7789_s20 = inlined_call_operand.vmem [shape: f32[1,256], index: 20, kind: input, shape index: {}]   ;;  %s7790_s21 = inlined_call_operand.vmem [shape: f32[1,256], index: 21, kind: input, shape index: {}]   ;;  %s7791_s22 = inlined_call_operand.hbm [shape: bf16[256,128], index: 22, kind: input, shape index: {}]   ;;  %s7792_s23 = inlined_call_operand.vmem [shape: f32[1,128], index: 23, kind: input, shape index: {}]   ;;  %s7793_s24 = inlined_call_operand.hbm [shape: f32[8,128], index: 24, kind: output, shape index: {}]  }
   0x1   :  { %7808 = sst [smem:[#allocation35_spill]] %s7769_s0 }
   0x2   :  { %7809 = sst [smem:[#allocation36_spill]] %s7770_s1 }
   0x3   :  { %7810 = sst [smem:[#allocation37_spill]] %s7771_s2 }
   0x4   :  { %7811 = sst [smem:[#allocation38_spill]] %s7772_s3 }
   0x5   :  { %7812 = sst [smem:[#allocation39_spill]] %s7773_s4 }
   0x6   :  { %7813 = sst [smem:[#allocation40_spill]] %s7774_s5 }
   0x7   :  { %7814 = sst [smem:[#allocation41_spill]] %s7775_s6 }
   0x8   :  { %7815 = sst [smem:[#allocation42_spill]] %s7776_s7 }
   0x9   :  { %7816 = sst [smem:[#allocation43_spill]] %s7777_s8 }
   0xa   :  { %7817 = sst [smem:[#allocation44_spill]] %s7793_s24 }
   0xb   :  { %29 = vsyncpa [#allocation3], 0 }
   0xc   :  { %30 = vsyncpa [#allocation6], 0 }
   0xd   :  { %31 = vsyncpa [#allocation9], 0 }
   0xe   :  { %32 = vsyncpa [#allocation12], 0 }
   0xf   :  { %33 = vsyncpa [#allocation15], 0 }
  0x10   :  { %34 = vsyncpa [#allocation18], 0 }
  0x11   :  { %35 = vsyncpa [#allocation21], 0 }
  0x12   :  { %36 = vsyncpa [#allocation24], 0 }
  0x13   :  { %37 = vsyncpa [#allocation4], 0  ;;  %s7194_s5 = smov [#allocation5]   ;;  %s7195_s27 = smov [#allocation8]  }
  0x14   :  { %s54_s26 = sshll.u32 %s7194_s5, 4  ;;  %s76_s28 = sshll.u32 %s7195_s27, 4  ;;  %s55_s26 = int_to_ptr.vmem [resolvable:$true] %s54_s26  ;;  %s77_s28 = int_to_ptr.vmem [resolvable:$true] %s76_s28 }
  0x15   :  { %s7818_s29 = sld [smem:[#allocation36_spill]] }
  0x1b   :  { %s6846_s0 = scalar_lea.hbm %s7818_s29, 128 }
  0x1c   :  { %p6847_p0 = scmp.ne.s32.totalorder %s7818_s29, %s6846_s0  ;;  %p6850_p1 = scmp.lt.u32.totalorder %s6846_s0, %s7818_s29 }
  0x1e   :  { %p6852_p2 = pnand %p6850_p1, %p6847_p0 }
  0x20   :  { %6855 = shalt.err (!%p6852_p2)
}
  0x21   :  { %s6856_s8 = scalar_lea.vmem %s55_s26, 128  ;;  %p6861_p4 = scmp.lt.s32.totalorder %s55_s26, %s55_s26 }
  0x22   :  { %p6857_p3 = scmp.ne.s32.totalorder %s55_s26, %s6856_s8  ;;  %p6862_p5 = scmp.lt.s32.totalorder %s6856_s8, %s6856_s8 }
  0x24   :  { %p6863_p6 = por %p6862_p5, %p6861_p4 }
  0x26   :  { %p6864_p7 = pnand %p6863_p6, %p6857_p3 }
  0x28   :  { %6867 = shalt.err (!%p6864_p7)
}
  0x29   :  { %57 = dma.hbm_to_vmem [thread:$0]  %s7818_s29, 128, %s55_s26, [#allocation6]  }
  0x2a   :  { %s7819_s6 = sld [smem:[#allocation38_spill]] }
  0x30   :  { %s6868_s2 = scalar_lea.hbm %s7819_s6, 16 }
  0x31   :  { %p6869_p8 = scmp.ne.s32.totalorder %s7819_s6, %s6868_s2  ;;  %p6872_p9 = scmp.lt.u32.totalorder %s6868_s2, %s7819_s6 }
  0x33   :  { %p6874_p10 = pnand %p6872_p9, %p6869_p8 }
  0x35   :  { %6877 = shalt.err (!%p6874_p10)
}
  0x36   :  { %s6878_s25 = scalar_lea.vmem %s77_s28, 16  ;;  %s6882_s8 = scalar_lea.vmem %s77_s28, 32 }
  0x37   :  { %p6879_p11 = scmp.ne.s32.totalorder %s77_s28, %s6878_s25  ;;  %p6883_p12 = scmp.lt.s32.totalorder %s77_s28, %s77_s28 }
  0x38   :  { %p6884_p13 = scmp.lt.s32.totalorder %s6882_s8, %s6878_s25 }
  0x3a   :  { %p6885_p0 = por %p6884_p13, %p6883_p12 }
  0x3c   :  { %p6886_p1 = pnand %p6885_p0, %p6879_p11 }
  0x3e   :  { %6889 = shalt.err (!%p6886_p1)
}
  0x3f   :  { %79 = dma.hbm_to_vmem [thread:$0]  %s7819_s6, 16, %s77_s28, [#allocation9]  }
  0x40   :  { %s7196_s4 = smov [#allocation11]   ;;  %s7197_s5 = smov [#allocation14]  }
  0x41   :  { %s98_s1 = sshll.u32 %s7196_s4, 4  ;;  %s120_s27 = sshll.u32 %s7197_s5, 4  ;;  %s99_s1 = int_to_ptr.vmem [resolvable:$true] %s98_s1  ;;  %s121_s27 = int_to_ptr.vmem [resolvable:$true] %s120_s27 }
  0x42   :  { %s7820_s30 = sld [smem:[#allocation40_spill]] }
  0x48   :  { %s6890_s0 = scalar_lea.hbm %s7820_s30, 16 }
  0x49   :  { %p6891_p2 = scmp.ne.s32.totalorder %s7820_s30, %s6890_s0  ;;  %p6894_p3 = scmp.lt.u32.totalorder %s6890_s0, %s7820_s30 }
  0x4b   :  { %p6896_p4 = pnand %p6894_p3, %p6891_p2 }
  0x4d   :  { %6899 = shalt.err (!%p6896_p4)
}
  0x4e   :  { %s6900_s28 = scalar_lea.vmem %s99_s1, 16  ;;  %s6904_s6 = scalar_lea.vmem %s99_s1, 32 }
  0x4f   :  { %p6901_p5 = scmp.ne.s32.totalorder %s99_s1, %s6900_s28  ;;  %p6905_p6 = scmp.lt.s32.totalorder %s99_s1, %s99_s1 }
  0x50   :  { %p6906_p7 = scmp.lt.s32.totalorder %s6904_s6, %s6900_s28 }
  0x52   :  { %p6907_p8 = por %p6906_p7, %p6905_p6 }
  0x54   :  { %p6908_p9 = pnand %p6907_p8, %p6901_p5 }
  0x56   :  { %6911 = shalt.err (!%p6908_p9)
}
  0x57   :  { %101 = dma.hbm_to_vmem [thread:$0]  %s7820_s30, 16, %s99_s1, [#allocation12]  }
  0x58   :  { %s7821_s5 = sld [smem:[#allocation42_spill]] }
  0x5e   :  { %s6912_s2 = scalar_lea.hbm %s7821_s5, 16 }
  0x5f   :  { %p6913_p10 = scmp.ne.s32.totalorder %s7821_s5, %s6912_s2  ;;  %p6916_p11 = scmp.lt.u32.totalorder %s6912_s2, %s7821_s5 }
  0x61   :  { %p6918_p12 = pnand %p6916_p11, %p6913_p10 }
  0x63   :  { %6921 = shalt.err (!%p6918_p12)
}
  0x64   :  { %s6922_s8 = scalar_lea.vmem %s121_s27, 16  ;;  %s6926_s28 = scalar_lea.vmem %s121_s27, 32 }
  0x65   :  { %p6923_p13 = scmp.ne.s32.totalorder %s121_s27, %s6922_s8  ;;  %p6927_p0 = scmp.lt.s32.totalorder %s121_s27, %s121_s27 }
  0x66   :  { %p6928_p1 = scmp.lt.s32.totalorder %s6926_s28, %s6922_s8 }
  0x68   :  { %p6929_p2 = por %p6928_p1, %p6927_p0 }
  0x6a   :  { %p6930_p3 = pnand %p6929_p2, %p6923_p13 }
  0x6c   :  { %6933 = shalt.err (!%p6930_p3)
}
  0x6d   :  { %123 = dma.hbm_to_vmem [thread:$0]  %s7821_s5, 16, %s121_s27, [#allocation15]  }
  0x6e   :  { %s7198_s6 = smov [#allocation17]   ;;  %s7199_s29 = smov [#allocation20]  }
  0x6f   :  { %s143_s26 = sshll.u32 %s7198_s6, 4  ;;  %s175_s24 = sshll.u32 %s7199_s29, 4  ;;  %s144_s26 = int_to_ptr.vmem [resolvable:$true] %s143_s26  ;;  %s176_s24 = int_to_ptr.vmem [resolvable:$true] %s175_s24 }
  0x70   :  { %s6934_s7 = scalar_lea.hbm %s7779_s10, 4096 }
  0x71   :  { %p6935_p4 = scmp.ne.s32.totalorder %s7779_s10, %s6934_s7  ;;  %p6938_p5 = scmp.lt.u32.totalorder %s6934_s7, %s7779_s10 }
  0x73   :  { %p6940_p6 = pnand %p6938_p5, %p6935_p4 }
  0x75   :  { %6943 = shalt.err (!%p6940_p6)
}
  0x76   :  { %s6944_s27 = scalar_lea.vmem %s144_s26, 4096  ;;  %p6949_p8 = scmp.lt.s32.totalorder %s144_s26, %s144_s26 }
  0x77   :  { %p6945_p7 = scmp.ne.s32.totalorder %s144_s26, %s6944_s27  ;;  %p6950_p9 = scmp.lt.s32.totalorder %s6944_s27, %s6944_s27 }
  0x79   :  { %p6951_p10 = por %p6950_p9, %p6949_p8 }
  0x7b   :  { %p6952_p11 = pnand %p6951_p10, %p6945_p7 }
  0x7d   :  { %6955 = shalt.err (!%p6952_p11)
}
  0x7e   :  { %s7804_s5 = smov 128   ;;  %s7806_s28 = smov 8  }
  0x7f   :  { %149 = dma.hbm_to_vmem [thread:$0]  %s7779_s10, 4096, %s144_s26, [#allocation18], %s7804_s5, %s7804_s5, %s7806_s28  }
  0x80   :  { %s6956_s4 = scalar_lea.hbm %s7785_s16, 32768 }
  0x81   :  { %p6957_p12 = scmp.ne.s32.totalorder %s7785_s16, %s6956_s4  ;;  %p6960_p13 = scmp.lt.u32.totalorder %s6956_s4, %s7785_s16 }
  0x83   :  { %p6962_p0 = pnand %p6960_p13, %p6957_p12 }
  0x85   :  { %6965 = shalt.err (!%p6962_p0)
}
  0x86   :  { %s6966_s25 = scalar_lea.vmem %s176_s24, 32768  ;;  %p6971_p2 = scmp.lt.s32.totalorder %s176_s24, %s176_s24 }
  0x87   :  { %p6967_p1 = scmp.ne.s32.totalorder %s176_s24, %s6966_s25  ;;  %p6972_p3 = scmp.lt.s32.totalorder %s6966_s25, %s6966_s25 }
  0x89   :  { %p6973_p4 = por %p6972_p3, %p6971_p2 }
  0x8b   :  { %p6974_p5 = pnand %p6973_p4, %p6967_p1 }
  0x8d   :  { %6977 = shalt.err (!%p6974_p5)
}
  0x8e   :  { %s7202_s10 = smov 1024   ;;  %s7203_s26 = smov 64  }
  0x8f   :  { %181 = dma.hbm_to_vmem [thread:$0]  %s7785_s16, 32768, %s176_s24, [#allocation21], %s7202_s10, %s7202_s10, %s7203_s26  }
  0x90   :  { %s7204_s1 = smov [#allocation2]   ;;  %s7205_s6 = smov [#allocation7]  }
  0x91   :  { %s44_s30 = sshll.u32 %s7204_s1, 4  ;;  %s63_s29 = sshll.u32 %s7205_s6, 4  ;;  %s45_s30 = int_to_ptr.vmem [resolvable:$true] %s44_s30  ;;  %s7417_s29 = int_to_ptr.vmem [resolvable:$true] %s63_s29 }
  0x92   :  { %s7822_s7 = sld [smem:[#allocation35_spill]] }
  0x98   :  { %s6978_s0 = scalar_lea.hbm %s7822_s7, 128 }
  0x99   :  { %p6979_p6 = scmp.ne.s32.totalorder %s7822_s7, %s6978_s0  ;;  %p6982_p7 = scmp.lt.u32.totalorder %s6978_s0, %s7822_s7 }
  0x9b   :  { %p6984_p8 = pnand %p6982_p7, %p6979_p6 }
  0x9d   :  { %6987 = shalt.err (!%p6984_p8)
}
  0x9e   :  { %s6988_s16 = scalar_lea.vmem %s45_s30, 128  ;;  %p6993_p10 = scmp.lt.s32.totalorder %s45_s30, %s45_s30 }
  0x9f   :  { %p6989_p9 = scmp.ne.s32.totalorder %s45_s30, %s6988_s16  ;;  %p6994_p11 = scmp.lt.s32.totalorder %s6988_s16, %s6988_s16 }
  0xa1   :  { %p6995_p12 = por %p6994_p11, %p6993_p10 }
  0xa3   :  { %p6996_p13 = pnand %p6995_p12, %p6989_p9 }
  0xa5   :  { %6999 = shalt.err (!%p6996_p13)
}
  0xa6   :  { %47 = dma.hbm_to_vmem [thread:$0]  %s7822_s7, 128, %s45_s30, [#allocation3]  }
  0xa7   :  { %s7823_s1 = sld [smem:[#allocation37_spill]] }
  0xad   :  { %s7000_s6 = scalar_lea.hbm %s7823_s1, 1024 }
  0xae   :  { %p7001_p0 = scmp.ne.s32.totalorder %s7823_s1, %s7000_s6  ;;  %p7004_p1 = scmp.lt.u32.totalorder %s7000_s6, %s7823_s1 }
  0xb0   :  { %p7006_p2 = pnand %p7004_p1, %p7001_p0 }
  0xb2   :  { %7009 = shalt.err (!%p7006_p2)
}
  0xb3   :  { %s7010_s0 = scalar_lea.vmem %s7417_s29, 1024  ;;  %p7015_p4 = scmp.lt.s32.totalorder %s7417_s29, %s7417_s29 }
  0xb4   :  { %p7011_p3 = scmp.ne.s32.totalorder %s7417_s29, %s7010_s0  ;;  %p7016_p5 = scmp.lt.s32.totalorder %s7010_s0, %s7010_s0 }
  0xb6   :  { %p7017_p6 = por %p7016_p5, %p7015_p4 }
  0xb8   :  { %p7018_p7 = pnand %p7017_p6, %p7011_p3 }
  0xba   :  { %7021 = shalt.err (!%p7018_p7)
}
  0xbb   :  { %s7206_s30 = smov 4   ;;  %s7207_s25 = smov [#allocation10]  }
  0xbc   :  { %69 = dma.hbm_to_vmem [thread:$0]  %s7823_s1, 1024, %s7417_s29, [#allocation6], %s7203_s26, %s7203_s26, %s7206_s30  }
  0xbd   :  { %s85_s16 = sshll.u32 %s7207_s25, 4  ;;  %s7208_s24 = smov [#allocation13]   ;;  %s86_s16 = int_to_ptr.vmem [resolvable:$true] %s85_s16 }
  0xbe   :  { %s107_s10 = sshll.u32 %s7208_s24, 4  ;;  %s7824_s6 = sld [smem:[#allocation39_spill]]  ;;  %s108_s10 = int_to_ptr.vmem [resolvable:$true] %s107_s10 }
  0xc4   :  { %s7022_s4 = scalar_lea.hbm %s7824_s6, 1024 }
  0xc5   :  { %p7023_p8 = scmp.ne.s32.totalorder %s7824_s6, %s7022_s4  ;;  %p7026_p9 = scmp.lt.u32.totalorder %s7022_s4, %s7824_s6 }
  0xc7   :  { %p7028_p10 = pnand %p7026_p9, %p7023_p8 }
  0xc9   :  { %7031 = shalt.err (!%p7028_p10)
}
  0xca   :  { %s7032_s29 = scalar_lea.vmem %s86_s16, 1024  ;;  %p7037_p12 = scmp.lt.s32.totalorder %s86_s16, %s86_s16 }
  0xcb   :  { %p7033_p11 = scmp.ne.s32.totalorder %s86_s16, %s7032_s29  ;;  %p7038_p13 = scmp.lt.s32.totalorder %s7032_s29, %s7032_s29 }
  0xcd   :  { %p7039_p0 = por %p7038_p13, %p7037_p12 }
  0xcf   :  { %p7040_p1 = pnand %p7039_p0, %p7033_p11 }
  0xd1   :  { %7043 = shalt.err (!%p7040_p1)
}
  0xd2   :  { %91 = dma.hbm_to_vmem [thread:$0]  %s7824_s6, 1024, %s86_s16, [#allocation9], %s7203_s26, %s7203_s26, %s7206_s30  }
  0xd3   :  { %s7825_s24 = sld [smem:[#allocation41_spill]] }
  0xd9   :  { %s7044_s8 = scalar_lea.hbm %s7825_s24, 1024 }
  0xda   :  { %p7045_p2 = scmp.ne.s32.totalorder %s7825_s24, %s7044_s8  ;;  %p7048_p3 = scmp.lt.u32.totalorder %s7044_s8, %s7825_s24 }
  0xdc   :  { %p7050_p4 = pnand %p7048_p3, %p7045_p2 }
  0xde   :  { %7053 = shalt.err (!%p7050_p4)
}
  0xdf   :  { %s7054_s2 = scalar_lea.vmem %s108_s10, 1024  ;;  %p7059_p6 = scmp.lt.s32.totalorder %s108_s10, %s108_s10 }
  0xe0   :  { %p7055_p5 = scmp.ne.s32.totalorder %s108_s10, %s7054_s2  ;;  %p7060_p7 = scmp.lt.s32.totalorder %s7054_s2, %s7054_s2 }
  0xe2   :  { %p7061_p8 = por %p7060_p7, %p7059_p6 }
  0xe4   :  { %p7062_p9 = pnand %p7061_p8, %p7055_p5 }
  0xe6   :  { %7065 = shalt.err (!%p7062_p9)
}
  0xe7   :  { %113 = dma.hbm_to_vmem [thread:$0]  %s7825_s24, 1024, %s108_s10, [#allocation12], %s7203_s26, %s7203_s26, %s7206_s30  }
  0xe8   :  { %s7209_s0 = smov [#allocation16]   ;;  %s7210_s1 = smov [#allocation19]  }
  0xe9   :  { %s129_s29 = sshll.u32 %s7209_s0, 4  ;;  %s157_s7 = sshll.u32 %s7210_s1, 4  ;;  %s130_s29 = int_to_ptr.vmem [resolvable:$true] %s129_s29  ;;  %s158_s7 = int_to_ptr.vmem [resolvable:$true] %s157_s7 }
  0xea   :  { %s7826_s8 = sld [smem:[#allocation43_spill]] }
  0xf0   :  { %s7066_s27 = scalar_lea.hbm %s7826_s8, 4096 }
  0xf1   :  { %p7067_p10 = scmp.ne.s32.totalorder %s7826_s8, %s7066_s27  ;;  %p7070_p11 = scmp.lt.u32.totalorder %s7066_s27, %s7826_s8 }
  0xf3   :  { %p7072_p12 = pnand %p7070_p11, %p7067_p10 }
  0xf5   :  { %7075 = shalt.err (!%p7072_p12)
}
  0xf6   :  { %s7076_s10 = scalar_lea.vmem %s130_s29, 4096  ;;  %p7081_p0 = scmp.lt.s32.totalorder %s130_s29, %s130_s29 }
  0xf7   :  { %p7077_p13 = scmp.ne.s32.totalorder %s130_s29, %s7076_s10  ;;  %p7082_p1 = scmp.lt.s32.totalorder %s7076_s10, %s7076_s10 }
  0xf9   :  { %p7083_p2 = por %p7082_p1, %p7081_p0 }
  0xfb   :  { %p7084_p3 = pnand %p7083_p2, %p7077_p13 }
  0xfd   :  { %7087 = shalt.err (!%p7084_p3)
}
  0xfe   :  { %s7827_s24 = smov 8   ;;  %s7828_s16 = smov 128  }
  0xff   :  { %135 = dma.hbm_to_vmem [thread:$0]  %s7826_s8, 4096, %s130_s29, [#allocation15], %s7828_s16, %s7828_s16, %s7827_s24  }
 0x100   :  { %s7088_s25 = scalar_lea.hbm %s7781_s12, 4096 }
 0x101   :  { %p7089_p4 = scmp.ne.s32.totalorder %s7781_s12, %s7088_s25  ;;  %p7092_p5 = scmp.lt.u32.totalorder %s7088_s25, %s7781_s12 }
 0x103   :  { %p7094_p6 = pnand %p7092_p5, %p7089_p4 }
 0x105   :  { %7097 = shalt.err (!%p7094_p6)
}
 0x106   :  { %s7098_s2 = scalar_lea.vmem %s158_s7, 4096  ;;  %p7103_p8 = scmp.lt.s32.totalorder %s158_s7, %s158_s7 }
 0x107   :  { %p7099_p7 = scmp.ne.s32.totalorder %s158_s7, %s7098_s2  ;;  %p7104_p9 = scmp.lt.s32.totalorder %s7098_s2, %s7098_s2 }
 0x109   :  { %p7105_p10 = por %p7104_p9, %p7103_p8 }
 0x10b   :  { %p7106_p11 = pnand %p7105_p10, %p7099_p7 }
 0x10d   :  { %7109 = shalt.err (!%p7106_p11)
}
 0x10e   :  { %163 = dma.hbm_to_vmem [thread:$0]  %s7781_s12, 4096, %s158_s7, [#allocation18], %s7828_s16, %s7828_s16, %s7827_s24  }
 0x10f   :  { %s7211_s10 = smov [#allocation22]   ;;  %s7212_s0 = smov [#allocation23]  }
 0x110   :  { %s189_s6 = sshll.u32 %s7211_s10, 4  ;;  %s207_s1 = sshll.u32 %s7212_s0, 4  ;;  %s190_s6 = int_to_ptr.vmem [resolvable:$true] %s189_s6  ;;  %s208_s1 = int_to_ptr.vmem [resolvable:$true] %s207_s1 }
 0x111   :  { %s7110_s27 = scalar_lea.hbm %s7787_s18, 32768 }
 0x112   :  { %p7111_p12 = scmp.ne.s32.totalorder %s7787_s18, %s7110_s27  ;;  %p7114_p13 = scmp.lt.u32.totalorder %s7110_s27, %s7787_s18 }
 0x114   :  { %p7116_p0 = pnand %p7114_p13, %p7111_p12 }
 0x116   :  { %7119 = shalt.err (!%p7116_p0)
}
 0x117   :  { %s7120_s12 = scalar_lea.vmem %s190_s6, 32768  ;;  %p7125_p2 = scmp.lt.s32.totalorder %s190_s6, %s190_s6 }
 0x118   :  { %p7121_p1 = scmp.ne.s32.totalorder %s190_s6, %s7120_s12  ;;  %p7126_p3 = scmp.lt.s32.totalorder %s7120_s12, %s7120_s12 }
 0x11a   :  { %p7127_p4 = por %p7126_p3, %p7125_p2 }
 0x11c   :  { %p7128_p5 = pnand %p7127_p4, %p7121_p1 }
 0x11e   :  { %7131 = shalt.err (!%p7128_p5)
}
 0x11f   :  { %195 = dma.hbm_to_vmem [thread:$0]  %s7787_s18, 32768, %s190_s6, [#allocation21], %s7828_s16, %s7828_s16, %s7827_s24  }
 0x120   :  { %s7132_s0 = scalar_lea.hbm %s7791_s22, 2048 }
 0x121   :  { %p7133_p6 = scmp.ne.s32.totalorder %s7791_s22, %s7132_s0  ;;  %p7136_p7 = scmp.lt.u32.totalorder %s7132_s0, %s7791_s22 }
 0x123   :  { %p7138_p8 = pnand %p7136_p7, %p7133_p6 }
 0x125   :  { %7141 = shalt.err (!%p7138_p8)
}
 0x126   :  { %s7142_s5 = scalar_lea.vmem %s208_s1, 2048  ;;  %p7147_p10 = scmp.lt.s32.totalorder %s208_s1, %s208_s1 }
 0x127   :  { %p7143_p9 = scmp.ne.s32.totalorder %s208_s1, %s7142_s5  ;;  %p7148_p11 = scmp.lt.s32.totalorder %s7142_s5, %s7142_s5 }
 0x129   :  { %p7149_p12 = por %p7148_p11, %p7147_p10 }
 0x12b   :  { %p7150_p13 = pnand %p7149_p12, %p7143_p9 }
 0x12d   :  { %7153 = shalt.err (!%p7150_p13)
}
 0x12e   :  { %213 = dma.hbm_to_vmem [thread:$0]  %s7791_s22, 2048, %s208_s1, [#allocation24], %s7203_s26, %s7203_s26, %s7206_s30  }
 0x12f   :  { %7176 = dma.done.wait [#allocation3], 128  }
 0x130   :  { %7177 = vsyncadd [#allocation3], 4294967168 }
 0x131   :  { %7178 = dma.done.wait [#allocation6], 1152  }
 0x132   :  { %7179 = vsyncadd [#allocation6], 4294966144 }
 0x133   :  { %7180 = dma.done.wait [#allocation9], 1040  }
 0x134   :  { %7181 = vsyncadd [#allocation9], 4294966256 }
 0x135   :  { %7182 = dma.done.wait [#allocation12], 1040  }
 0x136   :  { %7183 = vsyncadd [#allocation12], 4294966256 }
 0x137   :  { %7184 = dma.done.wait [#allocation15], 4112  }
 0x138   :  { %7185 = vsyncadd [#allocation15], 4294963184 }
 0x139   :  { %7186 = dma.done.wait [#allocation18], 8192  }
 0x13a   :  { %7187 = vsyncadd [#allocation18], 4294959104 }
 0x13b   :  { %7188 = dma.done.wait [#allocation21], 65536  }
 0x13c   :  { %7189 = vsyncadd [#allocation21], 4294901760 }
 0x13d   :  { %7190 = dma.done.wait [#allocation24], 2048  }
 0x13e   :  { %7191 = vsyncadd [#allocation24], 4294965248  ;;  %v7213_v0 = vmov 0.0   ;;  %vm7214_vm0 = vmmov 0   ;;  %v6274_v1 = vld [vmem:[#allocation10] sm:$0xff]   ;;  %v6275_v2 = vld [vmem:[#allocation10 + $0x8] sm:$0xff]  }
 0x13f   :  { %6212 = vmatprep.subr.bf16.mxu1 %v7213_v0  ;;  %6228 = vmatprep.mubr.msk.bf16.mxu1 %vm7214_vm0, %v7213_v0  ;;  %v6276_v3 = vld [vmem:[#allocation10 + $0x10] sm:$0xff]   ;;  %v6282_v4 = vld [vmem:[#allocation7] sm:$0xff]   ;;  %v6283_v6 = vld [vmem:[#allocation7 + $0x8] sm:$0xff]   ;;  %s7215_s0 = smov [#allocation25]  }
 0x140   :  { %6192 = vmatprep.subr.bf16.mxu0 %v7213_v0  ;;  %6208 = vmatprep.mubr.msk.bf16.mxu0 %vm7214_vm0, %v7213_v0  ;;  %v6277_v5 = vld [vmem:[#allocation10 + $0x18] sm:$0xff]   ;;  %v6278_v7 = vld [vmem:[#allocation10 + $0x20] sm:$0xff]   ;;  %v6284_v8 = vld [vmem:[#allocation7 + $0x10] sm:$0xff]   ;;  %s5475_s3 = sshll.u32 %s7215_s0, 4  ;;  %s5476_s3 = int_to_ptr.vmem [resolvable:$true] %s5475_s3 }
 0x141   :  { %6213 = vmatpush3.bf16.msra.mxu1 %v6274_v1  ;;  %6193 = vmatpush3.bf16.msra.mxu0 %v6282_v4  ;;  %v6279_v9 = vld [vmem:[#allocation10 + $0x28] sm:$0xff]   ;;  %v6285_v10 = vld [vmem:[#allocation7 + $0x18] sm:$0xff]   ;;  %v6286_v12 = vld [vmem:[#allocation7 + $0x20] sm:$0xff]   ;;  %s7154_s25 = scalar_lea.vmem %s5476_s3, 128  ;;  %p7159_p1 = scmp.lt.s32.totalorder %s5476_s3, %s5476_s3 }
 0x142   :  { %6214 = vmatprep.subr.bf16.mxu1 %v7213_v0  ;;  %6194 = vmatprep.subr.bf16.mxu0 %v7213_v0  ;;  %v6280_v11 = vld [vmem:[#allocation10 + $0x30] sm:$0xff]   ;;  %v6281_v13 = vld [vmem:[#allocation10 + $0x38] sm:$0xff]   ;;  %v6287_v15 = vld [vmem:[#allocation7 + $0x28] sm:$0xff]   ;;  %p7155_p0 = scmp.ne.s32.totalorder %s5476_s3, %s7154_s25  ;;  %p7160_p2 = scmp.lt.s32.totalorder %s7154_s25, %s7154_s25 }
 0x143   :  { %v373_v14 = vld [vmem:[#allocation5] sm:$0xff]  ;;  %v6288_v17 = vld [vmem:[#allocation7 + $0x30] sm:$0xff]   ;;  %v6290_v20 = vld [vmem:[#allocation13] sm:$0xff]  }
 0x144   :  { %v374_v16 = vpack.c.bf16 %v373_v14, %v373_v14  ;;  %v6289_v18 = vld [vmem:[#allocation7 + $0x38] sm:$0xff]   ;;  %v259_v19 = vld [vmem:[#allocation2] sm:$0xff]  ;;  %v6294_v25 = vld [vmem:[#allocation13 + $0x20] sm:$0xff]   ;;  %p7161_p3 = por %p7160_p2, %p7159_p1 }
 0x145   :  { %6215 = vmatpush3.bf16.msra.mxu1 %v6275_v2  ;;  %6195 = vmatpush3.bf16.msra.mxu0 %v6283_v6  ;;  %v260_v21 = vpack.c.bf16 %v259_v19, %v259_v19  ;;  %v6291_v22 = vld [vmem:[#allocation13 + $0x8] sm:$0xff]   ;;  %v6292_v23 = vld [vmem:[#allocation13 + $0x10] sm:$0xff]   ;;  %v6293_v24 = vld [vmem:[#allocation13 + $0x18] sm:$0xff]  }
 0x146   :  { %6216 = vmatprep.subr.bf16.mxu1 %v7213_v0  ;;  %6196 = vmatprep.subr.bf16.mxu0 %v7213_v0  ;;  %v6295_v26 = vld [vmem:[#allocation13 + $0x28] sm:$0xff]   ;;  %v6296_v27 = vld [vmem:[#allocation13 + $0x30] sm:$0xff]   ;;  %v6297_v28 = vld [vmem:[#allocation13 + $0x38] sm:$0xff]   ;;  %p7162_p4 = pnand %p7161_p3, %p7155_p0 }
 0x147   :  { %v6298_v29 = vld [vmem:[#allocation16] ss:$8 sps:$4 sm:$0xff]   ;;  %v6300_v30 = vld [vmem:[#allocation16 + $0x4] ss:$8 sps:$4 sm:$0xff]   ;;  %v6303_v31 = vld [vmem:[#allocation16 + $0x14] ss:$8 sps:$4 sm:$0xff]  }
 0x148   :  { %v6301_v32 = vld [vmem:[#allocation16 + $0x10] ss:$8 sps:$4 sm:$0xff]   ;;  %v6306_v33 = vld [vmem:[#allocation16 + $0x24] ss:$8 sps:$4 sm:$0xff]   ;;  %v6304_v34 = vld [vmem:[#allocation16 + $0x20] ss:$8 sps:$4 sm:$0xff]  }
 0x149   :  { %6217 = vmatpush3.bf16.msra.mxu1 %v6276_v3  ;;  %6197 = vmatpush3.bf16.msra.mxu0 %v6284_v8  ;;  %v6309_v35 = vld [vmem:[#allocation16 + $0x34] ss:$8 sps:$4 sm:$0xff]   ;;  %v6307_v36 = vld [vmem:[#allocation16 + $0x30] ss:$8 sps:$4 sm:$0xff]   ;;  %v6312_v37 = vld [vmem:[#allocation16 + $0x44] ss:$8 sps:$4 sm:$0xff]  }
 0x14a   :  { %6218 = vmatprep.subr.bf16.mxu1 %v7213_v0  ;;  %6198 = vmatprep.subr.bf16.mxu0 %v7213_v0  ;;  %v6310_v38 = vld [vmem:[#allocation16 + $0x40] ss:$8 sps:$4 sm:$0xff]   ;;  %v6315_v39 = vld [vmem:[#allocation16 + $0x54] ss:$8 sps:$4 sm:$0xff]   ;;  %v6313_v40 = vld [vmem:[#allocation16 + $0x50] ss:$8 sps:$4 sm:$0xff]  }
 0x14b   :  { %v6318_v41 = vld [vmem:[#allocation16 + $0x64] ss:$8 sps:$4 sm:$0xff]   ;;  %v6316_v42 = vld [vmem:[#allocation16 + $0x60] ss:$8 sps:$4 sm:$0xff]   ;;  %v6321_v43 = vld [vmem:[#allocation16 + $0x74] ss:$8 sps:$4 sm:$0xff]  }
 0x14c   :  { %v6319_v44 = vld [vmem:[#allocation16 + $0x70] ss:$8 sps:$4 sm:$0xff]   ;;  %v6324_v45 = vld [vmem:[#allocation16 + $0x84] ss:$8 sps:$4 sm:$0xff]   ;;  %v6322_v46 = vld [vmem:[#allocation16 + $0x80] ss:$8 sps:$4 sm:$0xff]  }
 0x14d   :  { %6219 = vmatpush3.bf16.msra.mxu1 %v6277_v5  ;;  %6199 = vmatpush3.bf16.msra.mxu0 %v6285_v10  ;;  %v6327_v47 = vld [vmem:[#allocation16 + $0x94] ss:$8 sps:$4 sm:$0xff]   ;;  %v6325_v48 = vld [vmem:[#allocation16 + $0x90] ss:$8 sps:$4 sm:$0xff]   ;;  %v6330_v49 = vld [vmem:[#allocation16 + $0xa4] ss:$8 sps:$4 sm:$0xff]  }
 0x14e   :  { %6220 = vmatprep.subr.bf16.mxu1 %v7213_v0  ;;  %6200 = vmatprep.subr.bf16.mxu0 %v7213_v0  ;;  %v6328_v50 = vld [vmem:[#allocation16 + $0xa0] ss:$8 sps:$4 sm:$0xff]   ;;  %v6333_v51 = vld [vmem:[#allocation16 + $0xb4] ss:$8 sps:$4 sm:$0xff]   ;;  %v6331_v52 = vld [vmem:[#allocation16 + $0xb0] ss:$8 sps:$4 sm:$0xff]  }
 0x14f   :  { %v6336_v53 = vld [vmem:[#allocation16 + $0xc4] ss:$8 sps:$4 sm:$0xff]   ;;  %v6334_v54 = vld [vmem:[#allocation16 + $0xc0] ss:$8 sps:$4 sm:$0xff]   ;;  %v6339_v55 = vld [vmem:[#allocation16 + $0xd4] ss:$8 sps:$4 sm:$0xff]  }
 0x150   :  { %v6337_v56 = vld [vmem:[#allocation16 + $0xd0] ss:$8 sps:$4 sm:$0xff]   ;;  %v6342_v57 = vld [vmem:[#allocation16 + $0xe4] ss:$8 sps:$4 sm:$0xff]   ;;  %v6340_v58 = vld [vmem:[#allocation16 + $0xe0] ss:$8 sps:$4 sm:$0xff]  }
 0x151   :  { %6221 = vmatpush3.bf16.msra.mxu1 %v6278_v7  ;;  %6201 = vmatpush3.bf16.msra.mxu0 %v6286_v12  ;;  %v5500_v59 = vld [vmem:[#allocation11] ss:$0 sm:$0xff]  ;;  %v6343_v8 = vld [vmem:[#allocation16 + $0xf0] ss:$8 sps:$4 sm:$0xff]   ;;  %v6348_v10 = vld [vmem:[#allocation17 + $0x4] ss:$8 sps:$4 sm:$0xff]  }
 0x152   :  { %6222 = vmatprep.subr.bf16.mxu1 %v7213_v0  ;;  %6202 = vmatprep.subr.bf16.mxu0 %v7213_v0  ;;  %v6345_v7 = vld [vmem:[#allocation16 + $0xf4] ss:$8 sps:$4 sm:$0xff]   ;;  %v6349_v12 = vld [vmem:[#allocation17 + $0x10] ss:$8 sps:$4 sm:$0xff]   ;;  %v6352_v14 = vld [vmem:[#allocation17 + $0x20] ss:$8 sps:$4 sm:$0xff]  }
 0x153   :  { %v6363_v19 = vld [vmem:[#allocation17 + $0x54] ss:$8 sps:$4 sm:$0xff]  }
 0x155   :  { %6223 = vmatpush3.bf16.msra.mxu1 %v6279_v9  ;;  %6203 = vmatpush3.bf16.msra.mxu0 %v6287_v15  ;;  %v6346_v9 = vld [vmem:[#allocation17] ss:$8 sps:$4 sm:$0xff]   ;;  %v6357_v15 = vld [vmem:[#allocation17 + $0x34] ss:$8 sps:$4 sm:$0xff]  }
 0x156   :  { %6224 = vmatprep.subr.bf16.mxu1 %v7213_v0  ;;  %6204 = vmatprep.subr.bf16.mxu0 %v7213_v0 }
 0x159   :  { %6225 = vmatpush3.bf16.msra.mxu1 %v6280_v11  ;;  %6205 = vmatpush3.bf16.msra.mxu0 %v6288_v17  ;;  %v6351_v11 = vld [vmem:[#allocation17 + $0x14] ss:$8 sps:$4 sm:$0xff]   ;;  %v6360_v17 = vld [vmem:[#allocation17 + $0x44] ss:$8 sps:$4 sm:$0xff]  }
 0x15a   :  { %6226 = vmatprep.subr.bf16.mxu1 %v7213_v0  ;;  %6206 = vmatprep.subr.bf16.mxu0 %v7213_v0 }
 0x15d   :  { %6227 = vmatpush3.bf16.msra.mxu1 %v6281_v13  ;;  %6207 = vmatpush3.bf16.msra.mxu0 %v6289_v18  ;;  %v6354_v13 = vld [vmem:[#allocation17 + $0x24] ss:$8 sps:$4 sm:$0xff]   ;;  %v6358_v18 = vld [vmem:[#allocation17 + $0x40] ss:$8 sps:$4 sm:$0xff]  }
 0x15e   :  { %6232 = vmatprep.subr.bf16.mxu0 %v7213_v0  ;;  %805 = vmatprep.subr.bf16.mxu1 %v6300_v30  ;;  %v6376_v30 = vld [vmem:[#allocation17 + $0xa0] ss:$8 sps:$4 sm:$0xff]  }
 0x160   :  { %6229 = vmatmul.mubr.bf16.vlgmr.msra.gmra.mrb[0].mxu1 %v374_v16  ;;  %6209 = vmatmul.mubr.bf16.vlgmr.msra.gmra.mrb[0].mxu0 %v260_v21  ;;  %v6355_v16 = vld [vmem:[#allocation17 + $0x30] ss:$8 sps:$4 sm:$0xff]   ;;  %v6366_v21 = vld [vmem:[#allocation17 + $0x64] ss:$8 sps:$4 sm:$0xff]  }
 0x161   :  { %6233 = vmatpush3.bf16.msra.mxu0 %v6290_v20  ;;  %6248 = vmatprep.mubr.msk.bf16.mxu0 %vm7214_vm0, %v7213_v0  ;;  %v6361_v20 = vld [vmem:[#allocation17 + $0x50] ss:$8 sps:$4 sm:$0xff]  }
 0x162   :  { %6234 = vmatprep.subr.bf16.mxu0 %v7213_v0  ;;  %806 = vmatpush1.bf16.msra.mxu1 %v6298_v29  ;;  %v6378_v29 = vld [vmem:[#allocation17 + $0xa4] ss:$8 sps:$4 sm:$0xff]  }
 0x163   :  { %807 = vmatprep.subr.bf16.mxu1 %v6303_v31  ;;  %v6381_v31 = vld [vmem:[#allocation17 + $0xb4] ss:$8 sps:$4 sm:$0xff]  }
 0x165   :  { %6235 = vmatpush3.bf16.msra.mxu0 %v6291_v22  ;;  %v6364_v22 = vld [vmem:[#allocation17 + $0x60] ss:$8 sps:$4 sm:$0xff]  }
 0x166   :  { %6236 = vmatprep.subr.bf16.mxu0 %v7213_v0  ;;  %808 = vmatpush1.bf16.msra.mxu1 %v6301_v32  ;;  %v6379_v32 = vld [vmem:[#allocation17 + $0xb0] ss:$8 sps:$4 sm:$0xff]  }
 0x167   :  { %809 = vmatprep.subr.bf16.mxu1 %v6306_v33  ;;  %v6384_v33 = vld [vmem:[#allocation17 + $0xc4] ss:$8 sps:$4 sm:$0xff]  }
 0x169   :  { %6237 = vmatpush3.bf16.msra.mxu0 %v6292_v23  ;;  %v6369_v23 = vld [vmem:[#allocation17 + $0x74] ss:$8 sps:$4 sm:$0xff]  }
 0x16a   :  { %6238 = vmatprep.subr.bf16.mxu0 %v7213_v0  ;;  %810 = vmatpush1.bf16.msra.mxu1 %v6304_v34  ;;  %v6382_v34 = vld [vmem:[#allocation17 + $0xc0] ss:$8 sps:$4 sm:$0xff]  }
 0x16b   :  { %811 = vmatprep.subr.bf16.mxu1 %v6309_v35  ;;  %v6387_v35 = vld [vmem:[#allocation17 + $0xd4] ss:$8 sps:$4 sm:$0xff]  }
 0x16d   :  { %6239 = vmatpush3.bf16.msra.mxu0 %v6293_v24  ;;  %v6367_v24 = vld [vmem:[#allocation17 + $0x70] ss:$8 sps:$4 sm:$0xff]  }
 0x16e   :  { %6240 = vmatprep.subr.bf16.mxu0 %v7213_v0  ;;  %812 = vmatpush1.bf16.msra.mxu1 %v6307_v36  ;;  %v6385_v36 = vld [vmem:[#allocation17 + $0xd0] ss:$8 sps:$4 sm:$0xff]  }
 0x16f   :  { %813 = vmatprep.subr.bf16.mxu1 %v6312_v37  ;;  %v6390_v37 = vld [vmem:[#allocation17 + $0xe4] ss:$8 sps:$4 sm:$0xff]  }
 0x171   :  { %6241 = vmatpush3.bf16.msra.mxu0 %v6294_v25  ;;  %v6372_v25 = vld [vmem:[#allocation17 + $0x84] ss:$8 sps:$4 sm:$0xff]  }
 0x172   :  { %6242 = vmatprep.subr.bf16.mxu0 %v7213_v0  ;;  %814 = vmatpush1.bf16.msra.mxu1 %v6310_v38  ;;  %v6388_v38 = vld [vmem:[#allocation17 + $0xe0] ss:$8 sps:$4 sm:$0xff]  }
 0x173   :  { %815 = vmatprep.subr.bf16.mxu1 %v6315_v39  ;;  %v5491_v39 = vld [vmem:[#allocation8] ss:$0 sm:$0xff] }
 0x175   :  { %6243 = vmatpush3.bf16.msra.mxu0 %v6295_v26  ;;  %v6370_v26 = vld [vmem:[#allocation17 + $0x80] ss:$8 sps:$4 sm:$0xff]  }
 0x176   :  { %6244 = vmatprep.subr.bf16.mxu0 %v7213_v0  ;;  %816 = vmatpush1.bf16.msra.mxu1 %v6313_v40 }
 0x177   :  { %817 = vmatprep.subr.bf16.mxu1 %v6318_v41  ;;  %v5509_v41 = vld [vmem:[#allocation14] ss:$0 sm:$0xff] }
 0x179   :  { %6245 = vmatpush3.bf16.msra.mxu0 %v6296_v27  ;;  %v6375_v27 = vld [vmem:[#allocation17 + $0x94] ss:$8 sps:$4 sm:$0xff]  }
 0x17a   :  { %6246 = vmatprep.subr.bf16.mxu0 %v7213_v0  ;;  %818 = vmatpush1.bf16.msra.mxu1 %v6316_v42 }
 0x17b   :  { %819 = vmatprep.subr.bf16.mxu1 %v6321_v43 }
 0x17d   :  { %6247 = vmatpush3.bf16.msra.mxu0 %v6297_v28  ;;  %v6373_v28 = vld [vmem:[#allocation17 + $0x90] ss:$8 sps:$4 sm:$0xff]  }
 0x17e   :  { %820 = vmatpush1.bf16.msra.mxu1 %v6319_v44  ;;  %1052 = vmatprep.subr.bf16.mxu0 %v6348_v10  ;;  %v6429_v10 = vld [vmem:[#allocation19 + $0xb4] ss:$8 sps:$4 sm:$0xff]  }
 0x17f   :  { %821 = vmatprep.subr.bf16.mxu1 %v6324_v45 }
 0x182   :  { %822 = vmatpush1.bf16.msra.mxu1 %v6322_v46 }
 0x183   :  { %823 = vmatprep.subr.bf16.mxu1 %v6327_v47 }
 0x186   :  { %824 = vmatpush1.bf16.msra.mxu1 %v6325_v48 }
 0x187   :  { %825 = vmatprep.subr.bf16.mxu1 %v6330_v49 }
 0x18a   :  { %826 = vmatpush1.bf16.msra.mxu1 %v6328_v50  ;;  %v6393_v50 = vld [vmem:[#allocation17 + $0xf4] ss:$8 sps:$4 sm:$0xff]  }
 0x18b   :  { %827 = vmatprep.subr.bf16.mxu1 %v6333_v51  ;;  %v6391_v51 = vld [vmem:[#allocation17 + $0xf0] ss:$8 sps:$4 sm:$0xff]  }
 0x18e   :  { %828 = vmatpush1.bf16.msra.mxu1 %v6331_v52  ;;  %v6394_v52 = vld [vmem:[#allocation19] ss:$8 sps:$4 sm:$0xff]  }
 0x18f   :  { %829 = vmatprep.subr.bf16.mxu1 %v6336_v53  ;;  %v6396_v53 = vld [vmem:[#allocation19 + $0x4] ss:$8 sps:$4 sm:$0xff]  }
 0x192   :  { %830 = vmatpush1.bf16.msra.mxu1 %v6334_v54  ;;  %v6399_v54 = vld [vmem:[#allocation19 + $0x14] ss:$8 sps:$4 sm:$0xff]  }
 0x193   :  { %831 = vmatprep.subr.bf16.mxu1 %v6339_v55  ;;  %v6397_v55 = vld [vmem:[#allocation19 + $0x10] ss:$8 sps:$4 sm:$0xff]  }
 0x196   :  { %832 = vmatpush1.bf16.msra.mxu1 %v6337_v56  ;;  %v6402_v56 = vld [vmem:[#allocation19 + $0x24] ss:$8 sps:$4 sm:$0xff]  }
 0x197   :  { %833 = vmatprep.subr.bf16.mxu1 %v6342_v57  ;;  %v6400_v57 = vld [vmem:[#allocation19 + $0x20] ss:$8 sps:$4 sm:$0xff]  }
 0x19a   :  { %834 = vmatpush1.bf16.msra.mxu1 %v6340_v58  ;;  %v6405_v58 = vld [vmem:[#allocation19 + $0x34] ss:$8 sps:$4 sm:$0xff]  }
 0x19b   :  { %835 = vmatprep.subr.bf16.mxu1 %v6345_v7  ;;  %v6421_v7 = vld [vmem:[#allocation19 + $0x90] ss:$8 sps:$4 sm:$0xff]  }
 0x19e   :  { %836 = vmatpush1.bf16.msra.mxu1 %v6343_v8  ;;  %v6426_v8 = vld [vmem:[#allocation19 + $0xa4] ss:$8 sps:$4 sm:$0xff]  }
 0x19f   :  { %1299 = vmatprep.subr.bf16.mxu1 %v6396_v53 }
 0x233   :  { %v480_v60 = vpop.f32.mrb[0].mxu1  ;;  %v7571_v3 = vpop.f32.mrb[0].mxu0 }
 0x234   :  { %v481_v61 = vadd.f32 %v5500_v59, %v480_v60  ;;  %v6230_v62 = vpop.f32.mrb[1].mxu1  ;;  %v6210_v4 = vpop.f32.mrb[1].mxu0  ;;  %v367_v40 = vadd.f32 %v5491_v39, %v7571_v3  ;;  %v6403_v59 = vld [vmem:[#allocation19 + $0x30] ss:$8 sps:$4 sm:$0xff]   ;;  %v6408_v60 = vld [vmem:[#allocation19 + $0x44] ss:$8 sps:$4 sm:$0xff]  }
 0x235   :  { %v483_v63 = vpop.f32.mrb[2].mxu1  ;;  %v369_v5 = vpop.f32.mrb[2].mxu0  ;;  %v6411_v62 = vld [vmem:[#allocation19 + $0x54] ss:$8 sps:$4 sm:$0xff]   ;;  %v6415_v3 = vld [vmem:[#allocation19 + $0x70] ss:$8 sps:$4 sm:$0xff]  }
 0x236   :  { %v486_v0 = vmax.f32 %v481_v61, 0.0  ;;  %v6231_v1 = vpop.f32.mrb[3].mxu1  ;;  %v6211_v6 = vpop.f32.mrb[3].mxu0  ;;  %v372_v42 = vmax.f32 %v367_v40, 0.0  ;;  %v6406_v61 = vld [vmem:[#allocation19 + $0x40] ss:$8 sps:$4 sm:$0xff]  }
 0x237   :  { %v6409_v63 = vld [vmem:[#allocation19 + $0x50] ss:$8 sps:$4 sm:$0xff]   ;;  %v6412_v1 = vld [vmem:[#allocation19 + $0x60] ss:$8 sps:$4 sm:$0xff]   ;;  %v6420_v4 = vld [vmem:[#allocation19 + $0x84] ss:$8 sps:$4 sm:$0xff]  }
 0x238   :  { %v487_v2 = vpack.c.bf16 %v486_v0, %v486_v0  ;;  %v599_v49 = vpack.c.bf16 %v372_v42, %v372_v42  ;;  %v6414_v0 = vld [vmem:[#allocation19 + $0x64] ss:$8 sps:$4 sm:$0xff]   ;;  %v6418_v5 = vld [vmem:[#allocation19 + $0x80] ss:$8 sps:$4 sm:$0xff]   ;;  %v6423_v6 = vld [vmem:[#allocation19 + $0x94] ss:$8 sps:$4 sm:$0xff]  }
 0x23a   :  { %6249 = vmatmul.mubr.bf16.vlgmr.msra.gmra.mrb[4].mxu0 %v487_v2  ;;  %v6417_v2 = vld [vmem:[#allocation19 + $0x74] ss:$8 sps:$4 sm:$0xff]  }
 0x23b   :  { %1053 = vmatpush1.bf16.msra.mxu0 %v6346_v9  ;;  %v6424_v9 = vld [vmem:[#allocation19 + $0xa0] ss:$8 sps:$4 sm:$0xff]  }
 0x23c   :  { %1054 = vmatprep.subr.bf16.mxu0 %v6351_v11  ;;  %v6427_v11 = vld [vmem:[#allocation19 + $0xb0] ss:$8 sps:$4 sm:$0xff]  }
 0x23f   :  { %1055 = vmatpush1.bf16.msra.mxu0 %v6349_v12  ;;  %v6432_v12 = vld [vmem:[#allocation19 + $0xc4] ss:$8 sps:$4 sm:$0xff]  }
 0x240   :  { %1056 = vmatprep.subr.bf16.mxu0 %v6354_v13  ;;  %v6430_v13 = vld [vmem:[#allocation19 + $0xc0] ss:$8 sps:$4 sm:$0xff]  }
 0x243   :  { %1057 = vmatpush1.bf16.msra.mxu0 %v6352_v14  ;;  %v6435_v14 = vld [vmem:[#allocation19 + $0xd4] ss:$8 sps:$4 sm:$0xff]  }
 0x244   :  { %1058 = vmatprep.subr.bf16.mxu0 %v6357_v15  ;;  %v6433_v15 = vld [vmem:[#allocation19 + $0xd0] ss:$8 sps:$4 sm:$0xff]  }
 0x247   :  { %1059 = vmatpush1.bf16.msra.mxu0 %v6355_v16  ;;  %v6438_v16 = vld [vmem:[#allocation19 + $0xe4] ss:$8 sps:$4 sm:$0xff]  }
 0x248   :  { %1060 = vmatprep.subr.bf16.mxu0 %v6360_v17  ;;  %v6436_v17 = vld [vmem:[#allocation19 + $0xe0] ss:$8 sps:$4 sm:$0xff]  }
 0x24b   :  { %1061 = vmatpush1.bf16.msra.mxu0 %v6358_v18  ;;  %v635_v18 = vlaneseq }
 0x24c   :  { %1062 = vmatprep.subr.bf16.mxu0 %v6363_v19 }
 0x24d   :  { %v7574_v19 = vshrl.u32 %v635_v18, 7  ;;  %v1438_v18 = vld [vmem:[#allocation20 + $0x188] sm:$0xff] }
 0x24f   :  { %1063 = vmatpush1.bf16.msra.mxu0 %v6361_v20  ;;  %v7577_v20 = vsub.s32 0, %v7574_v19 }
 0x250   :  { %1064 = vmatprep.subr.bf16.mxu0 %v6366_v21  ;;  %v633_v21 = vld [vmem:[%s7778_s9] sm:$0x3] }
 0x253   :  { %1065 = vmatpush1.bf16.msra.mxu0 %v6364_v22  ;;  %v7583_v22 = vsub.s32 1, %v7574_v19 }
 0x254   :  { %1066 = vmatprep.subr.bf16.mxu0 %v6369_v23  ;;  %v638_v23 = vrot.slane %v633_v21, %v7577_v20 }
 0x257   :  { %1067 = vmatpush1.bf16.msra.mxu0 %v6367_v24  ;;  %v642_v24 = vrot.slane %v633_v21, %v7583_v22  ;;  %v1446_v21 = vld [vmem:[#allocation20 + $0x1c8] sm:$0xff] }
 0x258   :  { %1068 = vmatprep.subr.bf16.mxu0 %v6372_v25 }
 0x25b   :  { %1069 = vmatpush1.bf16.msra.mxu0 %v6370_v26 }
 0x25c   :  { %1070 = vmatprep.subr.bf16.mxu0 %v6375_v27 }
 0x25f   :  { %1071 = vmatpush1.bf16.msra.mxu0 %v6373_v28 }
 0x260   :  { %1072 = vmatprep.subr.bf16.mxu0 %v6378_v29 }
 0x263   :  { %1073 = vmatpush1.bf16.msra.mxu0 %v6376_v30 }
 0x264   :  { %1074 = vmatprep.subr.bf16.mxu0 %v6381_v31 }
 0x267   :  { %1075 = vmatpush1.bf16.msra.mxu0 %v6379_v32 }
 0x268   :  { %1076 = vmatprep.subr.bf16.mxu0 %v6384_v33  ;;  %v6441_v33 = vld [vmem:[#allocation19 + $0xf4] ss:$8 sps:$4 sm:$0xff]  }
 0x26b   :  { %1077 = vmatpush1.bf16.msra.mxu0 %v6382_v34  ;;  %v6439_v34 = vld [vmem:[#allocation19 + $0xf0] ss:$8 sps:$4 sm:$0xff]  }
 0x26c   :  { %1078 = vmatprep.subr.bf16.mxu0 %v6387_v35  ;;  %v880_v35 = vld [vmem:[%s7780_s11] sm:$0x3] }
 0x26f   :  { %1079 = vmatpush1.bf16.msra.mxu0 %v6385_v36  ;;  %v885_v36 = vrot.slane %v880_v35, %v7577_v20 }
 0x270   :  { %1080 = vmatprep.subr.bf16.mxu0 %v6390_v37  ;;  %v889_v37 = vrot.slane %v880_v35, %v7583_v22  ;;  %v1469_v35 = vld [vmem:[#allocation20 + $0x280] sm:$0xff] }
 0x273   :  { %1081 = vmatpush1.bf16.msra.mxu0 %v6388_v38 }
 0x274   :  { %1082 = vmatprep.subr.bf16.mxu0 %v6393_v50 }
 0x277   :  { %1083 = vmatpush1.bf16.msra.mxu0 %v6391_v51 }
 0x30d   :  { %v593_v43 = vpop.f32.mrb[4].mxu0 }
 0x30e   :  { %v594_v44 = vadd.f32 %v5509_v41, %v593_v43  ;;  %v6250_v45 = vpop.f32.mrb[5].mxu0 }
 0x30f   :  { %v596_v46 = vpop.f32.mrb[6].mxu0 }
 0x310   :  { %v600_v47 = vpack.c.bf16 %v594_v44, %v594_v44  ;;  %v6251_v48 = vpop.f32.mrb[7].mxu0  ;;  %v1127_v46 = vld [vmem:[%s7782_s13] sm:$0x3] }
 0x311   :  { %v1136_v48 = vrot.slane %v1127_v46, %v7583_v22 }
 0x312   :  { %837 = vmatprep.mubr.bf16.mxu1 %v600_v47  ;;  %v1132_v47 = vrot.slane %v1127_v46, %v7577_v20  ;;  %v1494_v46 = vld [vmem:[#allocation20 + $0x348] sm:$0xff] }
 0x313   :  { %838 = vmatmul.mubr.bf16.vlgmr.msra.gmra.mrb[4].mxu1 %v599_v49 }
 0x314   :  { %1300 = vmatpush1.bf16.msra.mxu1 %v6394_v52 }
 0x315   :  { %1301 = vmatprep.subr.bf16.mxu1 %v6399_v54 }
 0x318   :  { %1302 = vmatpush1.bf16.msra.mxu1 %v6397_v55 }
 0x319   :  { %1303 = vmatprep.subr.bf16.mxu1 %v6402_v56 }
 0x31c   :  { %1304 = vmatpush1.bf16.msra.mxu1 %v6400_v57 }
 0x31d   :  { %1305 = vmatprep.subr.bf16.mxu1 %v6405_v58  ;;  %v1389_v58 = vld [vmem:[#allocation20] sm:$0xff] }
 0x320   :  { %1306 = vmatpush1.bf16.msra.mxu1 %v6403_v59  ;;  %v1397_v59 = vld [vmem:[#allocation20 + $0x40] sm:$0xff] }
 0x321   :  { %1307 = vmatprep.subr.bf16.mxu1 %v6408_v60  ;;  %v1390_v60 = vld [vmem:[#allocation20 + $0x8] sm:$0xff] }
 0x324   :  { %1308 = vmatpush1.bf16.msra.mxu1 %v6406_v61  ;;  %v5614_v61 = vcombine.low %v1389_v58, %v1397_v59 }
 0x325   :  { %1309 = vmatprep.subr.bf16.mxu1 %v6411_v62  ;;  %v5615_v62 = vcombine.high %v1389_v58, %v1397_v59 }
 0x327   :  { %3009 = vmatprep.subr.bf16.mxu0 %v5615_v62  ;;  %v1525_v62 = vld [vmem:[#allocation20 + $0x440] sm:$0xff] }
 0x328   :  { %1310 = vmatpush1.bf16.msra.mxu1 %v6409_v63  ;;  %v1398_v63 = vld [vmem:[#allocation20 + $0x48] sm:$0xff] }
 0x329   :  { %1311 = vmatprep.subr.bf16.mxu1 %v6414_v0  ;;  %v1405_v0 = vld [vmem:[#allocation20 + $0x80] sm:$0xff] }
 0x32c   :  { %1312 = vmatpush1.bf16.msra.mxu1 %v6412_v1  ;;  %v1413_v1 = vld [vmem:[#allocation20 + $0xc0] sm:$0xff] }
 0x32d   :  { %1313 = vmatprep.subr.bf16.mxu1 %v6417_v2  ;;  %v5616_v2 = vcombine.low %v1390_v60, %v1398_v63 }
 0x330   :  { %1314 = vmatpush1.bf16.msra.mxu1 %v6415_v3  ;;  %v5617_v3 = vcombine.high %v1390_v60, %v1398_v63  ;;  %v1518_v63 = vld [vmem:[#allocation20 + $0x408] sm:$0xff] }
 0x331   :  { %1315 = vmatprep.subr.bf16.mxu1 %v6420_v4  ;;  %v5631_v4 = vcombine.high %v1405_v0, %v1413_v1 }
 0x334   :  { %1316 = vmatpush1.bf16.msra.mxu1 %v6418_v5  ;;  %v1406_v5 = vld [vmem:[#allocation20 + $0x88] sm:$0xff] }
 0x335   :  { %1317 = vmatprep.subr.bf16.mxu1 %v6423_v6  ;;  %v1414_v6 = vld [vmem:[#allocation20 + $0xc8] sm:$0xff] }
 0x338   :  { %1318 = vmatpush1.bf16.msra.mxu1 %v6421_v7  ;;  %v1421_v7 = vld [vmem:[#allocation20 + $0x100] sm:$0xff] }
 0x339   :  { %1319 = vmatprep.subr.bf16.mxu1 %v6426_v8  ;;  %v5633_v8 = vcombine.high %v1406_v5, %v1414_v6 }
 0x33c   :  { %1320 = vmatpush1.bf16.msra.mxu1 %v6424_v9  ;;  %v1429_v9 = vld [vmem:[#allocation20 + $0x140] sm:$0xff] }
 0x33d   :  { %1321 = vmatprep.subr.bf16.mxu1 %v6429_v10  ;;  %v1422_v10 = vld [vmem:[#allocation20 + $0x108] sm:$0xff] }
 0x340   :  { %1322 = vmatpush1.bf16.msra.mxu1 %v6427_v11  ;;  %v1430_v11 = vld [vmem:[#allocation20 + $0x148] sm:$0xff] }
 0x341   :  { %1323 = vmatprep.subr.bf16.mxu1 %v6432_v12  ;;  %v5630_v12 = vcombine.low %v1405_v0, %v1413_v1  ;;  %v1526_v0 = vld [vmem:[#allocation20 + $0x448] sm:$0xff] }
 0x344   :  { %1324 = vmatpush1.bf16.msra.mxu1 %v6430_v13  ;;  %v5632_v13 = vcombine.low %v1406_v5, %v1414_v6  ;;  %v1533_v5 = vld [vmem:[#allocation20 + $0x480] sm:$0xff] }
 0x345   :  { %1325 = vmatprep.subr.bf16.mxu1 %v6435_v14  ;;  %v5647_v14 = vcombine.high %v1421_v7, %v1429_v9  ;;  %v1541_v6 = vld [vmem:[#allocation20 + $0x4c0] sm:$0xff] }
 0x348   :  { %1326 = vmatpush1.bf16.msra.mxu1 %v6433_v15  ;;  %v5649_v15 = vcombine.high %v1422_v10, %v1430_v11 }
 0x349   :  { %1327 = vmatprep.subr.bf16.mxu1 %v6438_v16  ;;  %v1437_v16 = vld [vmem:[#allocation20 + $0x180] sm:$0xff] }
 0x34c   :  { %1328 = vmatpush1.bf16.msra.mxu1 %v6436_v17  ;;  %v1445_v17 = vld [vmem:[#allocation20 + $0x1c0] sm:$0xff] }
 0x34d   :  { %1329 = vmatprep.subr.bf16.mxu1 %v6441_v33 }
 0x350   :  { %1330 = vmatpush1.bf16.msra.mxu1 %v6439_v34 }
 0x351   :  { %3050 = vmatprep.subr.bf16.mxu1 %v5617_v3 }
 0x3e6   :  { %v839_v25 = vpop.f32.mrb[4].mxu1 }
 0x3e7   :  { %v840_v26 = vadd.f32 %v839_v25, %v638_v23  ;;  %v841_v27 = vpop.f32.mrb[5].mxu1  ;;  %v5646_v23 = vcombine.low %v1421_v7, %v1429_v9  ;;  %v5663_v25 = vcombine.high %v1437_v16, %v1445_v17  ;;  %v1534_v7 = vld [vmem:[#allocation20 + $0x488] sm:$0xff] }
 0x3e8   :  { %v842_v28 = vadd.f32 %v841_v27, %v642_v24  ;;  %v843_v29 = vpop.f32.mrb[6].mxu1  ;;  %v5648_v24 = vcombine.low %v1422_v10, %v1430_v11  ;;  %v1453_v27 = vld [vmem:[#allocation20 + $0x200] sm:$0xff]  ;;  %v5744_v10 = vcombine.low %v1518_v63, %v1526_v0  ;;  %v5759_v11 = vcombine.high %v1533_v5, %v1541_v6 }
 0x3e9   :  { %v844_v30 = vpop.f32.mrb[7].mxu1  ;;  %v846_v32 = vpack.c.bf16 %v840_v26, %v840_v26  ;;  %v1454_v29 = vld [vmem:[#allocation20 + $0x208] sm:$0xff] }
 0x3ea   :  { %v847_v31 = vpack.c.bf16 %v842_v28, %v842_v28  ;;  %v1462_v30 = vld [vmem:[#allocation20 + $0x248] sm:$0xff] }
 0x3eb   :  { %v5681_v34 = vcombine.high %v1454_v29, %v1462_v30 }
 0x3ec   :  { %1084 = vmatprep.mubr.bf16.mxu0 %v847_v31  ;;  %v5662_v31 = vcombine.low %v1437_v16, %v1445_v17  ;;  %v1558_v16 = vld [vmem:[#allocation20 + $0x548] sm:$0xff]  ;;  %v5758_v17 = vcombine.low %v1533_v5, %v1541_v6 }
 0x3ed   :  { %1085 = vmatmul.mubr.bf16.vlgmr.msra.gmra.mrb[8].mxu0 %v846_v32  ;;  %v5664_v32 = vcombine.low %v1438_v18, %v1446_v21  ;;  %v1638_v5 = vld [vmem:[#allocation20 + $0x7c8] sm:$0xff] }
 0x3ee   :  { %3010 = vmatpush1.bf16.msra.mxu0 %v5614_v61  ;;  %v1517_v61 = vld [vmem:[#allocation20 + $0x400] sm:$0xff] }
 0x3ef   :  { %3011 = vmatprep.subr.bf16.mxu0 %v5631_v4  ;;  %v5743_v3 = vcombine.high %v1517_v61, %v1525_v62  ;;  %v5745_v4 = vcombine.high %v1518_v63, %v1526_v0  ;;  %v5742_v9 = vcombine.low %v1517_v61, %v1525_v62  ;;  %v1622_v61 = vld [vmem:[#allocation20 + $0x748] sm:$0xff] }
 0x3f2   :  { %3012 = vmatpush1.bf16.msra.mxu0 %v5630_v12 }
 0x3f3   :  { %3013 = vmatprep.subr.bf16.mxu0 %v5647_v14  ;;  %v1557_v14 = vld [vmem:[#allocation20 + $0x540] sm:$0xff] }
 0x3f6   :  { %3014 = vmatpush1.bf16.msra.mxu0 %v5646_v23 }
 0x3f7   :  { %3015 = vmatprep.subr.bf16.mxu0 %v5663_v25 }
 0x3fa   :  { %3016 = vmatpush1.bf16.msra.mxu0 %v5662_v31 }
 0x4c0   :  { %v1086_v38 = vpop.f32.mrb[8].mxu0 }
 0x4c1   :  { %v1087_v39 = vadd.f32 %v1086_v38, %v885_v36  ;;  %v1088_v40 = vpop.f32.mrb[9].mxu0  ;;  %v1477_v36 = vld [vmem:[#allocation20 + $0x2c0] sm:$0xff]  ;;  %v1478_v38 = vld [vmem:[#allocation20 + $0x2c8] sm:$0xff] }
 0x4c2   :  { %v1089_v41 = vadd.f32 %v1088_v40, %v889_v37  ;;  %v1090_v42 = vpop.f32.mrb[10].mxu0  ;;  %v1470_v37 = vld [vmem:[#allocation20 + $0x288] sm:$0xff]  ;;  %v5680_v40 = vcombine.low %v1454_v29, %v1462_v30 }
 0x4c3   :  { %v1091_v43 = vpop.f32.mrb[11].mxu0  ;;  %v1093_v45 = vpack.c.bf16 %v1087_v39, %v1087_v39  ;;  %v5697_v42 = vcombine.high %v1470_v37, %v1478_v38 }
 0x4c4   :  { %v1094_v44 = vpack.c.bf16 %v1089_v41, %v1089_v41  ;;  %v5695_v41 = vcombine.high %v1469_v35, %v1477_v36  ;;  %v1485_v43 = vld [vmem:[#allocation20 + $0x300] sm:$0xff] }
 0x4c6   :  { %1331 = vmatprep.mubr.bf16.mxu1 %v1094_v44  ;;  %v1493_v44 = vld [vmem:[#allocation20 + $0x340] sm:$0xff] }
 0x4c7   :  { %1332 = vmatmul.mubr.bf16.vlgmr.msra.gmra.mrb[8].mxu1 %v1093_v45  ;;  %v1486_v45 = vld [vmem:[#allocation20 + $0x308] sm:$0xff] }
 0x4c8   :  { %3051 = vmatpush1.bf16.msra.mxu1 %v5616_v2  ;;  %v5712_v58 = vcombine.low %v1486_v45, %v1494_v46 }
 0x4c9   :  { %3052 = vmatprep.subr.bf16.mxu1 %v5633_v8  ;;  %v1542_v8 = vld [vmem:[#allocation20 + $0x4c8] sm:$0xff] }
 0x4ca   :  { %v5761_v12 = vcombine.high %v1534_v7, %v1542_v8 }
 0x4cc   :  { %3053 = vmatpush1.bf16.msra.mxu1 %v5632_v13  ;;  %v1549_v13 = vld [vmem:[#allocation20 + $0x500] sm:$0xff] }
 0x4cd   :  { %3054 = vmatprep.subr.bf16.mxu1 %v5649_v15  ;;  %v1550_v15 = vld [vmem:[#allocation20 + $0x508] sm:$0xff] }
 0x4ce   :  { %v5777_v23 = vcombine.high %v1550_v15, %v1558_v16  ;;  %v5776_v25 = vcombine.low %v1550_v15, %v1558_v16 }
 0x4d0   :  { %3055 = vmatpush1.bf16.msra.mxu1 %v5648_v24  ;;  %v5774_v24 = vcombine.low %v1549_v13, %v1557_v14 }
 0x59a   :  { %v1333_v49 = vpop.f32.mrb[8].mxu1 }
 0x59b   :  { %v1334_v50 = vadd.f32 %v1333_v49, %v1132_v47  ;;  %v1335_v51 = vpop.f32.mrb[9].mxu1  ;;  %v5694_v47 = vcombine.low %v1469_v35, %v1477_v36  ;;  %v5711_v49 = vcombine.high %v1485_v43, %v1493_v44  ;;  %v1566_v35 = vld [vmem:[#allocation20 + $0x588] sm:$0xff] }
 0x59c   :  { %v1336_v52 = vadd.f32 %v1335_v51, %v1136_v48  ;;  %v1337_v53 = vpop.f32.mrb[10].mxu1  ;;  %v5696_v48 = vcombine.low %v1470_v37, %v1478_v38  ;;  %v1501_v51 = vld [vmem:[#allocation20 + $0x380] sm:$0xff]  ;;  %v1574_v37 = vld [vmem:[#allocation20 + $0x5c8] sm:$0xff] }
 0x59d   :  { %v1338_v54 = vpop.f32.mrb[11].mxu1  ;;  %v7597_v55 = vadd.f32 %v1334_v50, %v840_v26  ;;  %v5665_v26 = vcombine.high %v1438_v18, %v1446_v21  ;;  %v5713_v50 = vcombine.high %v1486_v45, %v1494_v46  ;;  %v1502_v53 = vld [vmem:[#allocation20 + $0x388] sm:$0xff]  ;;  %v5760_v18 = vcombine.low %v1534_v7, %v1542_v8 }
 0x59e   :  { %v7599_v56 = vadd.f32 %v1336_v52, %v842_v28  ;;  %v1461_v28 = vld [vmem:[#allocation20 + $0x240] sm:$0xff]  ;;  %v1510_v54 = vld [vmem:[#allocation20 + $0x3c8] sm:$0xff]  ;;  %v5775_v21 = vcombine.high %v1549_v13, %v1557_v14  ;;  %v1400_v13 = vld [vmem:[#allocation20 + $0x58] sm:$0xff] }
 0x59f   :  { %v5679_v33 = vcombine.high %v1453_v27, %v1461_v28  ;;  %3056 = vmatprep.subr.bf16.mxu1 %v5665_v26  ;;  %v5678_v39 = vcombine.low %v1453_v27, %v1461_v28  ;;  %v1509_v52 = vld [vmem:[#allocation20 + $0x3c0] sm:$0xff]  ;;  %v5729_v60 = vcombine.high %v1502_v53, %v1510_v54  ;;  %v5728_v2 = vcombine.low %v1502_v53, %v1510_v54 }
 0x5a0   :  { %v1342_v57 = vadd.f32 %v7599_v56, %v7597_v55  ;;  %3057 = vmatpush1.bf16.msra.mxu1 %v5664_v32  ;;  %v5727_v59 = vcombine.high %v1501_v51, %v1509_v52  ;;  %v5726_v1 = vcombine.low %v1501_v51, %v1509_v52  ;;  %v1606_v51 = vld [vmem:[#allocation20 + $0x6c8] sm:$0xff] }
 0x5a1   :  { %3017 = vmatprep.subr.bf16.mxu0 %v5679_v33  ;;  %3058 = vmatprep.subr.bf16.mxu1 %v5681_v34  ;;  %v1565_v33 = vld [vmem:[#allocation20 + $0x580] sm:$0xff] }
 0x5a2   :  { %1343 = vadd.xlane.f32.xlu0 %v1342_v57  ;;  %3018 = vmatpush1.bf16.msra.mxu0 %v5678_v39  ;;  %v5710_v57 = vcombine.low %v1485_v43, %v1493_v44  ;;  %v1573_v34 = vld [vmem:[#allocation20 + $0x5c0] sm:$0xff]  ;;  %v5792_v39 = vcombine.low %v1566_v35, %v1574_v37  ;;  %v1590_v43 = vld [vmem:[#allocation20 + $0x648] sm:$0xff] }
 0x5a3   :  { %3019 = vmatprep.subr.bf16.mxu0 %v5695_v41  ;;  %v5791_v36 = vcombine.high %v1565_v33, %v1573_v34  ;;  %v5790_v38 = vcombine.low %v1565_v33, %v1573_v34  ;;  %v1582_v41 = vld [vmem:[#allocation20 + $0x608] sm:$0xff] }
 0x5a4   :  { %3059 = vmatpush1.bf16.msra.mxu1 %v5680_v40  ;;  %v1589_v40 = vld [vmem:[#allocation20 + $0x640] sm:$0xff]  ;;  %v5808_v45 = vcombine.low %v1582_v41, %v1590_v43  ;;  %v5809_v46 = vcombine.high %v1582_v41, %v1590_v43  ;;  %v1431_v43 = vld [vmem:[#allocation20 + $0x150] sm:$0xff] }
 0x5a5   :  { %3060 = vmatprep.subr.bf16.mxu1 %v5697_v42 }
 0x5a6   :  { %3020 = vmatpush1.bf16.msra.mxu0 %v5694_v47  ;;  %v1597_v47 = vld [vmem:[#allocation20 + $0x680] sm:$0xff] }
 0x5a7   :  { %3021 = vmatprep.subr.bf16.mxu0 %v5711_v49  ;;  %v1598_v49 = vld [vmem:[#allocation20 + $0x688] sm:$0xff] }
 0x5a8   :  { %3061 = vmatpush1.bf16.msra.mxu1 %v5696_v48  ;;  %v1605_v48 = vld [vmem:[#allocation20 + $0x6c0] sm:$0xff]  ;;  %v5824_v53 = vcombine.low %v1598_v49, %v1606_v51  ;;  %v5825_v54 = vcombine.high %v1598_v49, %v1606_v51  ;;  %v1447_v51 = vld [vmem:[#allocation20 + $0x1d0] sm:$0xff] }
 0x5a9   :  { %3062 = vmatprep.subr.bf16.mxu1 %v5713_v50  ;;  %v5823_v50 = vcombine.high %v1597_v47, %v1605_v48  ;;  %v5822_v52 = vcombine.low %v1597_v47, %v1605_v48 }
 0x5aa   :  { %3022 = vmatpush1.bf16.msra.mxu0 %v5710_v57  ;;  %v1613_v57 = vld [vmem:[#allocation20 + $0x700] sm:$0xff] }
 0x5ab   :  { %3023 = vmatprep.subr.bf16.mxu0 %v5727_v59  ;;  %v1614_v59 = vld [vmem:[#allocation20 + $0x708] sm:$0xff] }
 0x5ac   :  { %3063 = vmatpush1.bf16.msra.mxu1 %v5712_v58  ;;  %v1621_v58 = vld [vmem:[#allocation20 + $0x740] sm:$0xff]  ;;  %v5840_v63 = vcombine.low %v1614_v59, %v1622_v61  ;;  %v5841_v0 = vcombine.high %v1614_v59, %v1622_v61  ;;  %v1463_v61 = vld [vmem:[#allocation20 + $0x250] sm:$0xff] }
 0x5ad   :  { %3064 = vmatprep.subr.bf16.mxu1 %v5729_v60  ;;  %v5839_v60 = vcombine.high %v1613_v57, %v1621_v58  ;;  %v5838_v62 = vcombine.low %v1613_v57, %v1621_v58 }
 0x5ae   :  { %3024 = vmatpush1.bf16.msra.mxu0 %v5726_v1  ;;  %v1629_v1 = vld [vmem:[#allocation20 + $0x780] sm:$0xff] }
 0x5af   :  { %3025 = vmatprep.subr.bf16.mxu0 %v5743_v3  ;;  %v1630_v3 = vld [vmem:[#allocation20 + $0x788] sm:$0xff] }
 0x5b0   :  { %3065 = vmatpush1.bf16.msra.mxu1 %v5728_v2  ;;  %v1637_v2 = vld [vmem:[#allocation20 + $0x7c0] sm:$0xff]  ;;  %v5856_v7 = vcombine.low %v1630_v3, %v1638_v5  ;;  %v5857_v8 = vcombine.high %v1630_v3, %v1638_v5  ;;  %v1479_v5 = vld [vmem:[#allocation20 + $0x2d0] sm:$0xff] }
 0x5b1   :  { %3066 = vmatprep.subr.bf16.mxu1 %v5745_v4  ;;  %v5855_v4 = vcombine.high %v1629_v1, %v1637_v2  ;;  %v5854_v6 = vcombine.low %v1629_v1, %v1637_v2 }
 0x5b2   :  { %3026 = vmatpush1.bf16.msra.mxu0 %v5742_v9  ;;  %v1391_v9 = vld [vmem:[#allocation20 + $0x10] sm:$0xff] }
 0x5b3   :  { %3027 = vmatprep.subr.bf16.mxu0 %v5759_v11  ;;  %v1392_v11 = vld [vmem:[#allocation20 + $0x18] sm:$0xff] }
 0x5b4   :  { %3067 = vmatpush1.bf16.msra.mxu1 %v5744_v10  ;;  %v1399_v10 = vld [vmem:[#allocation20 + $0x50] sm:$0xff]  ;;  %v5620_v15 = vcombine.low %v1392_v11, %v1400_v13  ;;  %v5621_v16 = vcombine.high %v1392_v11, %v1400_v13 }
 0x5b5   :  { %3068 = vmatprep.subr.bf16.mxu1 %v5761_v12  ;;  %v5619_v12 = vcombine.high %v1391_v9, %v1399_v10  ;;  %v5618_v14 = vcombine.low %v1391_v9, %v1399_v10  ;;  %v1495_v13 = vld [vmem:[#allocation20 + $0x350] sm:$0xff] }
 0x5b6   :  { %3028 = vmatpush1.bf16.msra.mxu0 %v5758_v17 }
 0x5b7   :  { %3029 = vmatprep.subr.bf16.mxu0 %v5775_v21 }
 0x5b8   :  { %3069 = vmatpush1.bf16.msra.mxu1 %v5760_v18 }
 0x5b9   :  { %3070 = vmatprep.subr.bf16.mxu1 %v5777_v23  ;;  %v1359_v23 = vld [vmem:[%s7783_s14] sm:$0x3] }
 0x5ba   :  { %3030 = vmatpush1.bf16.msra.mxu0 %v5774_v24  ;;  %v1373_v24 = vld [vmem:[%s7784_s15] sm:$0x3] }
 0x5bb   :  { %3031 = vmatprep.subr.bf16.mxu0 %v5791_v36 }
 0x5bc   :  { %3071 = vmatpush1.bf16.msra.mxu1 %v5776_v25  ;;  %v1364_v25 = vrot.slane %v1359_v23, %v7577_v20 }
 0x5be   :  { %3032 = vmatpush1.bf16.msra.mxu0 %v5790_v38  ;;  %v1407_v38 = vld [vmem:[#allocation20 + $0x90] sm:$0xff] }
 0x62f   :  { %v1344_v26 = vpop.xlane.xlu0 %1343 }
 0x630   :  { %v1346_v27 = vmul.f32 0.00390625, %v1344_v26  ;;  %v1368_v26 = vrot.slane %v1359_v23, %v7583_v22  ;;  %v1503_v23 = vld [vmem:[#allocation20 + $0x390] sm:$0xff] }
 0x632   :  { %v7604_v28 = vsub.f32 %v7597_v55, %v1346_v27  ;;  %v7607_v29 = vsub.f32 %v7599_v56, %v1346_v27  ;;  %v5793_v55 = vcombine.high %v1566_v35, %v1574_v37  ;;  %v1581_v56 = vld [vmem:[#allocation20 + $0x600] sm:$0xff] }
 0x633   :  { %v5807_v42 = vcombine.high %v1581_v56, %v1589_v40  ;;  %v5806_v44 = vcombine.low %v1581_v56, %v1589_v40  ;;  %v1416_v56 = vld [vmem:[#allocation20 + $0xd8] sm:$0xff] }
 0x634   :  { %v1349_v30 = vmul.f32 %v7604_v28, %v7604_v28  ;;  %v1350_v31 = vmul.f32 %v7607_v29, %v7607_v29  ;;  %3072 = vmatprep.subr.bf16.mxu1 %v5793_v55  ;;  %v1408_v55 = vld [vmem:[#allocation20 + $0x98] sm:$0xff] }
 0x635   :  { %3073 = vmatpush1.bf16.msra.mxu1 %v5792_v39  ;;  %3033 = vmatprep.subr.bf16.mxu0 %v5807_v42  ;;  %v1415_v39 = vld [vmem:[#allocation20 + $0xd0] sm:$0xff]  ;;  %v5637_v42 = vcombine.high %v1408_v55, %v1416_v56  ;;  %v5636_v47 = vcombine.low %v1408_v55, %v1416_v56 }
 0x636   :  { %v1351_v32 = vadd.f32 %v1350_v31, %v1349_v30  ;;  %3074 = vmatprep.subr.bf16.mxu1 %v5809_v46  ;;  %3034 = vmatpush1.bf16.msra.mxu0 %v5806_v44  ;;  %v1378_v30 = vrot.slane %v1373_v24, %v7577_v20  ;;  %v1382_v31 = vrot.slane %v1373_v24, %v7583_v22  ;;  %v1424_v44 = vld [vmem:[#allocation20 + $0x118] sm:$0xff]  ;;  %v1511_v24 = vld [vmem:[#allocation20 + $0x3d0] sm:$0xff] }
 0x637   :  { %3035 = vmatprep.subr.bf16.mxu0 %v5823_v50  ;;  %v5634_v46 = vcombine.low %v1407_v38, %v1415_v39  ;;  %v1439_v50 = vld [vmem:[#allocation20 + $0x190] sm:$0xff] }
 0x638   :  { %1352 = vadd.xlane.f32.xlu0 %v1351_v32  ;;  %v5667_v58 = vcombine.high %v1439_v50, %v1447_v51 }
 0x639   :  { %3075 = vmatpush1.bf16.msra.mxu1 %v5808_v45  ;;  %v1432_v45 = vld [vmem:[#allocation20 + $0x158] sm:$0xff] }
 0x63a   :  { %3076 = vmatprep.subr.bf16.mxu1 %v5825_v54  ;;  %3036 = vmatpush1.bf16.msra.mxu0 %v5822_v52  ;;  %v5653_v49 = vcombine.high %v1424_v44, %v1432_v45  ;;  %v1440_v52 = vld [vmem:[#allocation20 + $0x198] sm:$0xff]  ;;  %v5652_v57 = vcombine.low %v1424_v44, %v1432_v45 }
 0x63b   :  { %3037 = vmatprep.subr.bf16.mxu0 %v5839_v60  ;;  %v1455_v60 = vld [vmem:[#allocation20 + $0x210] sm:$0xff]  ;;  %v1544_v44 = vld [vmem:[#allocation20 + $0x4d8] sm:$0xff] }
 0x63c   :  { %v5683_v2 = vcombine.high %v1455_v60, %v1463_v61 }
 0x63d   :  { %3077 = vmatpush1.bf16.msra.mxu1 %v5824_v53  ;;  %v1448_v53 = vld [vmem:[#allocation20 + $0x1d8] sm:$0xff] }
 0x63e   :  { %3078 = vmatprep.subr.bf16.mxu1 %v5841_v0  ;;  %3038 = vmatpush1.bf16.msra.mxu0 %v5838_v62  ;;  %v5669_v59 = vcombine.high %v1440_v52, %v1448_v53  ;;  %v1456_v62 = vld [vmem:[#allocation20 + $0x218] sm:$0xff]  ;;  %v5666_v0 = vcombine.low %v1439_v50, %v1447_v51  ;;  %v5668_v1 = vcombine.low %v1440_v52, %v1448_v53  ;;  %v1559_v50 = vld [vmem:[#allocation20 + $0x550] sm:$0xff] }
 0x63f   :  { %3039 = vmatprep.subr.bf16.mxu0 %v5855_v4  ;;  %v1471_v4 = vld [vmem:[#allocation20 + $0x290] sm:$0xff]  ;;  %v1552_v51 = vld [vmem:[#allocation20 + $0x518] sm:$0xff] }
 0x640   :  { %v5699_v10 = vcombine.high %v1471_v4, %v1479_v5  ;;  %v1560_v52 = vld [vmem:[#allocation20 + $0x558] sm:$0xff] }
 0x641   :  { %3079 = vmatpush1.bf16.msra.mxu1 %v5840_v63  ;;  %v1464_v63 = vld [vmem:[#allocation20 + $0x258] sm:$0xff] }
 0x642   :  { %3080 = vmatprep.subr.bf16.mxu1 %v5857_v8  ;;  %3040 = vmatpush1.bf16.msra.mxu0 %v5854_v6  ;;  %v5685_v3 = vcombine.high %v1456_v62, %v1464_v63  ;;  %v1472_v6 = vld [vmem:[#allocation20 + $0x298] sm:$0xff]  ;;  %v5682_v8 = vcombine.low %v1455_v60, %v1463_v61  ;;  %v5684_v9 = vcombine.low %v1456_v62, %v1464_v63  ;;  %v1575_v60 = vld [vmem:[#allocation20 + $0x5d0] sm:$0xff] }
 0x643   :  { %3091 = vmatprep.subr.bf16.mxu0 %v5619_v12  ;;  %v1487_v12 = vld [vmem:[#allocation20 + $0x310] sm:$0xff]  ;;  %v1568_v61 = vld [vmem:[#allocation20 + $0x598] sm:$0xff] }
 0x644   :  { %v1576_v62 = vld [vmem:[#allocation20 + $0x5d8] sm:$0xff] }
 0x645   :  { %3081 = vmatpush1.bf16.msra.mxu1 %v5856_v7  ;;  %v1480_v7 = vld [vmem:[#allocation20 + $0x2d8] sm:$0xff] }
 0x646   :  { %3132 = vmatprep.subr.bf16.mxu1 %v5621_v16  ;;  %v5701_v11 = vcombine.high %v1472_v6, %v1480_v7  ;;  %v5698_v16 = vcombine.low %v1471_v4, %v1479_v5  ;;  %v1591_v4 = vld [vmem:[#allocation20 + $0x650] sm:$0xff]  ;;  %v1584_v5 = vld [vmem:[#allocation20 + $0x618] sm:$0xff] }
 0x6c5   :  { %v1353_v17 = vpop.xlane.xlu0 %1352 }
 0x6c6   :  { %v1354_v18 = vmul.f32 0.00390625, %v1353_v17  ;;  %v5700_v17 = vcombine.low %v1472_v6, %v1480_v7  ;;  %v1592_v6 = vld [vmem:[#allocation20 + $0x658] sm:$0xff] }
 0x6c8   :  { %v1355_v21 = vadd.f32 1e-05, %v1354_v18  ;;  %v5715_v18 = vcombine.high %v1487_v12, %v1495_v13 }
 0x6ca   :  { %6842 = vrsqrt.f32 %v1355_v21 }
 0x6d4   :  { %v6843_v27 = vpop.eup %6842 }
 0x6d5   :  { %v1357_v32 = vmul.f32 %v6843_v27, %v7604_v28  ;;  %v1358_v33 = vmul.f32 %v6843_v27, %v7607_v29  ;;  %v1423_v28 = vld [vmem:[#allocation20 + $0x110] sm:$0xff]  ;;  %v5635_v29 = vcombine.high %v1407_v38, %v1415_v39  ;;  %v5714_v27 = vcombine.low %v1487_v12, %v1495_v13  ;;  %v1528_v38 = vld [vmem:[#allocation20 + $0x458] sm:$0xff] }
 0x6d6   :  { %v5651_v48 = vcombine.high %v1423_v28, %v1431_v43  ;;  %v5650_v54 = vcombine.low %v1423_v28, %v1431_v43  ;;  %v5730_v39 = vcombine.low %v1503_v23, %v1511_v24  ;;  %v1536_v43 = vld [vmem:[#allocation20 + $0x498] sm:$0xff]  ;;  %v1607_v12 = vld [vmem:[#allocation20 + $0x6d0] sm:$0xff] }
 0x6d7   :  { %v1371_v34 = vmul.f32 %v1364_v25, %v1357_v32  ;;  %v1372_v35 = vmul.f32 %v1368_v26, %v1358_v33  ;;  %v1504_v25 = vld [vmem:[#allocation20 + $0x398] sm:$0xff]  ;;  %v1519_v33 = vld [vmem:[#allocation20 + $0x410] sm:$0xff] }
 0x6d8   :  { %v1512_v26 = vld [vmem:[#allocation20 + $0x3d8] sm:$0xff] }
 0x6d9   :  { %v7625_v36 = vadd.f32 %v1378_v30, %v1371_v34  ;;  %v7627_v37 = vadd.f32 %v1382_v31, %v1372_v35  ;;  %v5731_v31 = vcombine.high %v1503_v23, %v1511_v24  ;;  %v5733_v32 = vcombine.high %v1504_v25, %v1512_v26  ;;  %v1527_v34 = vld [vmem:[#allocation20 + $0x450] sm:$0xff]  ;;  %v1520_v35 = vld [vmem:[#allocation20 + $0x418] sm:$0xff] }
 0x6da   :  { %v5732_v55 = vcombine.low %v1504_v25, %v1512_v26  ;;  %v5747_v56 = vcombine.high %v1519_v33, %v1527_v34  ;;  %v5749_v28 = vcombine.high %v1520_v35, %v1528_v38  ;;  %v5746_v45 = vcombine.low %v1519_v33, %v1527_v34  ;;  %v1600_v13 = vld [vmem:[#allocation20 + $0x698] sm:$0xff]  ;;  %v1623_v23 = vld [vmem:[#allocation20 + $0x750] sm:$0xff] }
 0x6db   :  { %v7631_v40 = vpack.c.bf16 %v7625_v36, %v7625_v36  ;;  %v7635_v41 = vpack.c.bf16 %v7627_v37, %v7627_v37  ;;  %v1616_v24 = vld [vmem:[#allocation20 + $0x718] sm:$0xff]  ;;  %v1639_v33 = vld [vmem:[#allocation20 + $0x7d0] sm:$0xff] }
 0x6dc   :  { %v1624_v25 = vld [vmem:[#allocation20 + $0x758] sm:$0xff] }
 0x6dd   :  { %3041 = vmatprep.mubr.bf16.mxu0 %v7635_v41  ;;  %3082 = vmatprep.mubr.bf16.mxu1 %v7635_v41  ;;  %v1632_v34 = vld [vmem:[#allocation20 + $0x798] sm:$0xff] }
 0x6de   :  { %3042 = vmatmul.mubr.bf16.vlgmr.msra.gmra.mrb[12].mxu0 %v7631_v40  ;;  %3083 = vmatmul.mubr.bf16.vlgmr.msra.gmra.mrb[12].mxu1 %v7631_v40 }
 0x6df   :  { %3092 = vmatpush1.bf16.msra.mxu0 %v5618_v14  ;;  %3133 = vmatpush1.bf16.msra.mxu1 %v5620_v15  ;;  %v1488_v14 = vld [vmem:[#allocation20 + $0x318] sm:$0xff] }
 0x6e0   :  { %3123 = vmatprep.mubr.bf16.mxu0 %v7635_v41  ;;  %3164 = vmatprep.mubr.bf16.mxu1 %v7635_v41  ;;  %v1496_v15 = vld [vmem:[#allocation20 + $0x358] sm:$0xff] }
 0x6e1   :  { %3093 = vmatprep.subr.bf16.mxu0 %v5635_v29  ;;  %3134 = vmatprep.subr.bf16.mxu1 %v5637_v42  ;;  %v5717_v21 = vcombine.high %v1488_v14, %v1496_v15  ;;  %v5716_v30 = vcombine.low %v1488_v14, %v1496_v15  ;;  %v1535_v29 = vld [vmem:[#allocation20 + $0x490] sm:$0xff]  ;;  %v1608_v14 = vld [vmem:[#allocation20 + $0x6d8] sm:$0xff] }
 0x6e2   :  { %v1543_v42 = vld [vmem:[#allocation20 + $0x4d0] sm:$0xff] }
 0x6e3   :  { %3094 = vmatpush1.bf16.msra.mxu0 %v5634_v46  ;;  %3135 = vmatpush1.bf16.msra.mxu1 %v5636_v47  ;;  %v5748_v46 = vcombine.low %v1520_v35, %v1528_v38  ;;  %v5763_v47 = vcombine.high %v1535_v29, %v1543_v42  ;;  %v5762_v53 = vcombine.low %v1535_v29, %v1543_v42  ;;  %v1640_v35 = vld [vmem:[#allocation20 + $0x7d8] sm:$0xff]  ;;  %v1401_v29 = vld [vmem:[#allocation20 + $0x60] sm:$0xff]  ;;  %v1394_v42 = vld [vmem:[#allocation20 + $0x28] sm:$0xff] }
 0x6e4   :  { %3095 = vmatprep.subr.bf16.mxu0 %v5651_v48  ;;  %3136 = vmatprep.subr.bf16.mxu1 %v5653_v49  ;;  %v5765_v48 = vcombine.high %v1536_v43, %v1544_v44  ;;  %v1551_v49 = vld [vmem:[#allocation20 + $0x510] sm:$0xff] }
 0x6e5   :  { %v5778_v63 = vcombine.low %v1551_v49, %v1559_v50 }
 0x6e7   :  { %3096 = vmatpush1.bf16.msra.mxu0 %v5650_v54  ;;  %3137 = vmatpush1.bf16.msra.mxu1 %v5652_v57  ;;  %v5764_v54 = vcombine.low %v1536_v43, %v1544_v44  ;;  %v5779_v57 = vcombine.high %v1551_v49, %v1559_v50  ;;  %v1402_v43 = vld [vmem:[#allocation20 + $0x68] sm:$0xff]  ;;  %v1417_v49 = vld [vmem:[#allocation20 + $0xe0] sm:$0xff] }
 0x6e8   :  { %3097 = vmatprep.subr.bf16.mxu0 %v5667_v58  ;;  %3138 = vmatprep.subr.bf16.mxu1 %v5669_v59  ;;  %v5781_v58 = vcombine.high %v1552_v51, %v1560_v52  ;;  %v1567_v59 = vld [vmem:[#allocation20 + $0x590] sm:$0xff]  ;;  %v1410_v50 = vld [vmem:[#allocation20 + $0xa8] sm:$0xff] }
 0x6e9   :  { %v5794_v7 = vcombine.low %v1567_v59, %v1575_v60 }
 0x6eb   :  { %3098 = vmatpush1.bf16.msra.mxu0 %v5666_v0  ;;  %3139 = vmatpush1.bf16.msra.mxu1 %v5668_v1  ;;  %v5780_v0 = vcombine.low %v1552_v51, %v1560_v52  ;;  %v5795_v1 = vcombine.high %v1567_v59, %v1575_v60  ;;  %v1418_v51 = vld [vmem:[#allocation20 + $0xe8] sm:$0xff]  ;;  %v1433_v59 = vld [vmem:[#allocation20 + $0x160] sm:$0xff] }
 0x6ec   :  { %3099 = vmatprep.subr.bf16.mxu0 %v5683_v2  ;;  %3140 = vmatprep.subr.bf16.mxu1 %v5685_v3  ;;  %v5797_v2 = vcombine.high %v1568_v61, %v1576_v62  ;;  %v1583_v3 = vld [vmem:[#allocation20 + $0x610] sm:$0xff]  ;;  %v1426_v60 = vld [vmem:[#allocation20 + $0x128] sm:$0xff] }
 0x6ed   :  { %v5810_v15 = vcombine.low %v1583_v3, %v1591_v4 }
 0x6ef   :  { %3100 = vmatpush1.bf16.msra.mxu0 %v5682_v8  ;;  %3141 = vmatpush1.bf16.msra.mxu1 %v5684_v9  ;;  %v5796_v8 = vcombine.low %v1568_v61, %v1576_v62  ;;  %v5811_v9 = vcombine.high %v1583_v3, %v1591_v4  ;;  %v1434_v61 = vld [vmem:[#allocation20 + $0x168] sm:$0xff]  ;;  %v1449_v3 = vld [vmem:[#allocation20 + $0x1e0] sm:$0xff] }
 0x6f0   :  { %3101 = vmatprep.subr.bf16.mxu0 %v5699_v10  ;;  %3142 = vmatprep.subr.bf16.mxu1 %v5701_v11  ;;  %v5813_v10 = vcombine.high %v1584_v5, %v1592_v6  ;;  %v1599_v11 = vld [vmem:[#allocation20 + $0x690] sm:$0xff]  ;;  %v1442_v4 = vld [vmem:[#allocation20 + $0x1a8] sm:$0xff] }
 0x6f1   :  { %v5826_v26 = vcombine.low %v1599_v11, %v1607_v12 }
 0x6f3   :  { %3102 = vmatpush1.bf16.msra.mxu0 %v5698_v16  ;;  %3143 = vmatpush1.bf16.msra.mxu1 %v5700_v17  ;;  %v5812_v16 = vcombine.low %v1584_v5, %v1592_v6  ;;  %v5827_v17 = vcombine.high %v1599_v11, %v1607_v12  ;;  %v1450_v5 = vld [vmem:[#allocation20 + $0x1e8] sm:$0xff]  ;;  %v1465_v11 = vld [vmem:[#allocation20 + $0x260] sm:$0xff] }
 0x6f4   :  { %3103 = vmatprep.subr.bf16.mxu0 %v5715_v18  ;;  %3144 = vmatprep.subr.bf16.mxu1 %v5717_v21  ;;  %v5829_v18 = vcombine.high %v1600_v13, %v1608_v14  ;;  %v1615_v21 = vld [vmem:[#allocation20 + $0x710] sm:$0xff]  ;;  %v1458_v12 = vld [vmem:[#allocation20 + $0x228] sm:$0xff] }
 0x6f5   :  { %v5842_v38 = vcombine.low %v1615_v21, %v1623_v23 }
 0x6f7   :  { %3104 = vmatpush1.bf16.msra.mxu0 %v5714_v27  ;;  %3145 = vmatpush1.bf16.msra.mxu1 %v5716_v30  ;;  %v5828_v27 = vcombine.low %v1600_v13, %v1608_v14  ;;  %v5843_v30 = vcombine.high %v1615_v21, %v1623_v23  ;;  %v1466_v13 = vld [vmem:[#allocation20 + $0x268] sm:$0xff]  ;;  %v1481_v21 = vld [vmem:[#allocation20 + $0x2e0] sm:$0xff] }
 0x6f8   :  { %3105 = vmatprep.subr.bf16.mxu0 %v5731_v31  ;;  %3146 = vmatprep.subr.bf16.mxu1 %v5733_v32  ;;  %v5845_v31 = vcombine.high %v1616_v24, %v1624_v25  ;;  %v1631_v32 = vld [vmem:[#allocation20 + $0x790] sm:$0xff]  ;;  %v1474_v23 = vld [vmem:[#allocation20 + $0x2a8] sm:$0xff] }
 0x6f9   :  { %v5858_v44 = vcombine.low %v1631_v32, %v1639_v33 }
 0x6fb   :  { %3106 = vmatpush1.bf16.msra.mxu0 %v5730_v39  ;;  %3147 = vmatpush1.bf16.msra.mxu1 %v5732_v55  ;;  %v5844_v39 = vcombine.low %v1616_v24, %v1624_v25  ;;  %v5859_v55 = vcombine.high %v1631_v32, %v1639_v33  ;;  %v1482_v24 = vld [vmem:[#allocation20 + $0x2e8] sm:$0xff]  ;;  %v1497_v32 = vld [vmem:[#allocation20 + $0x360] sm:$0xff] }
 0x6fc   :  { %3107 = vmatprep.subr.bf16.mxu0 %v5747_v56  ;;  %3148 = vmatprep.subr.bf16.mxu1 %v5749_v28  ;;  %v5861_v56 = vcombine.high %v1632_v34, %v1640_v35  ;;  %v1393_v28 = vld [vmem:[#allocation20 + $0x20] sm:$0xff]  ;;  %v1490_v33 = vld [vmem:[#allocation20 + $0x328] sm:$0xff] }
 0x6fd   :  { %v5622_v52 = vcombine.low %v1393_v28, %v1401_v29 }
 0x6ff   :  { %3108 = vmatpush1.bf16.msra.mxu0 %v5746_v45  ;;  %3149 = vmatpush1.bf16.msra.mxu1 %v5748_v46  ;;  %v5860_v45 = vcombine.low %v1632_v34, %v1640_v35  ;;  %v5623_v46 = vcombine.high %v1393_v28, %v1401_v29  ;;  %v1498_v34 = vld [vmem:[#allocation20 + $0x368] sm:$0xff]  ;;  %v1513_v28 = vld [vmem:[#allocation20 + $0x3e0] sm:$0xff] }
 0x700   :  { %3109 = vmatprep.subr.bf16.mxu0 %v5763_v47  ;;  %3150 = vmatprep.subr.bf16.mxu1 %v5765_v48  ;;  %v5625_v47 = vcombine.high %v1394_v42, %v1402_v43  ;;  %v1409_v48 = vld [vmem:[#allocation20 + $0xa0] sm:$0xff]  ;;  %v1506_v29 = vld [vmem:[#allocation20 + $0x3a8] sm:$0xff] }
 0x701   :  { %v5638_v62 = vcombine.low %v1409_v48, %v1417_v49 }
 0x703   :  { %3110 = vmatpush1.bf16.msra.mxu0 %v5762_v53  ;;  %3151 = vmatpush1.bf16.msra.mxu1 %v5764_v54  ;;  %v5624_v53 = vcombine.low %v1394_v42, %v1402_v43  ;;  %v5639_v54 = vcombine.high %v1409_v48, %v1417_v49  ;;  %v1514_v42 = vld [vmem:[#allocation20 + $0x3e8] sm:$0xff]  ;;  %v1529_v48 = vld [vmem:[#allocation20 + $0x460] sm:$0xff] }
 0x704   :  { %3111 = vmatprep.subr.bf16.mxu0 %v5779_v57  ;;  %3152 = vmatprep.subr.bf16.mxu1 %v5781_v58  ;;  %v5641_v57 = vcombine.high %v1410_v50, %v1418_v51  ;;  %v1425_v58 = vld [vmem:[#allocation20 + $0x120] sm:$0xff]  ;;  %v1522_v49 = vld [vmem:[#allocation20 + $0x428] sm:$0xff] }
 0x705   :  { %v5654_v6 = vcombine.low %v1425_v58, %v1433_v59 }
 0x707   :  { %3112 = vmatpush1.bf16.msra.mxu0 %v5778_v63  ;;  %3153 = vmatpush1.bf16.msra.mxu1 %v5780_v0  ;;  %v5640_v63 = vcombine.low %v1410_v50, %v1418_v51  ;;  %v5655_v0 = vcombine.high %v1425_v58, %v1433_v59  ;;  %v1530_v50 = vld [vmem:[#allocation20 + $0x468] sm:$0xff]  ;;  %v1545_v58 = vld [vmem:[#allocation20 + $0x4e0] sm:$0xff] }
 0x708   :  { %3113 = vmatprep.subr.bf16.mxu0 %v5795_v1  ;;  %3154 = vmatprep.subr.bf16.mxu1 %v5797_v2  ;;  %v5657_v1 = vcombine.high %v1426_v60, %v1434_v61  ;;  %v1441_v2 = vld [vmem:[#allocation20 + $0x1a0] sm:$0xff]  ;;  %v1538_v59 = vld [vmem:[#allocation20 + $0x4a8] sm:$0xff] }
 0x709   :  { %v5670_v14 = vcombine.low %v1441_v2, %v1449_v3 }
 0x70b   :  { %3114 = vmatpush1.bf16.msra.mxu0 %v5794_v7  ;;  %3155 = vmatpush1.bf16.msra.mxu1 %v5796_v8  ;;  %v5656_v7 = vcombine.low %v1426_v60, %v1434_v61  ;;  %v5671_v8 = vcombine.high %v1441_v2, %v1449_v3  ;;  %v1546_v60 = vld [vmem:[#allocation20 + $0x4e8] sm:$0xff]  ;;  %v1561_v2 = vld [vmem:[#allocation20 + $0x560] sm:$0xff] }
 0x70c   :  { %3115 = vmatprep.subr.bf16.mxu0 %v5811_v9  ;;  %3156 = vmatprep.subr.bf16.mxu1 %v5813_v10  ;;  %v5673_v9 = vcombine.high %v1442_v4, %v1450_v5  ;;  %v1457_v10 = vld [vmem:[#allocation20 + $0x220] sm:$0xff]  ;;  %v1554_v3 = vld [vmem:[#allocation20 + $0x528] sm:$0xff] }
 0x70d   :  { %v5686_v25 = vcombine.low %v1457_v10, %v1465_v11 }
 0x70f   :  { %3116 = vmatpush1.bf16.msra.mxu0 %v5810_v15  ;;  %3157 = vmatpush1.bf16.msra.mxu1 %v5812_v16  ;;  %v5672_v15 = vcombine.low %v1442_v4, %v1450_v5  ;;  %v5687_v16 = vcombine.high %v1457_v10, %v1465_v11  ;;  %v1562_v4 = vld [vmem:[#allocation20 + $0x568] sm:$0xff]  ;;  %v1577_v10 = vld [vmem:[#allocation20 + $0x5e0] sm:$0xff] }
 0x710   :  { %3117 = vmatprep.subr.bf16.mxu0 %v5827_v17  ;;  %3158 = vmatprep.subr.bf16.mxu1 %v5829_v18  ;;  %v5689_v17 = vcombine.high %v1458_v12, %v1466_v13  ;;  %v1473_v18 = vld [vmem:[#allocation20 + $0x2a0] sm:$0xff]  ;;  %v1570_v11 = vld [vmem:[#allocation20 + $0x5a8] sm:$0xff] }
 0x711   :  { %v5702_v35 = vcombine.low %v1473_v18, %v1481_v21 }
 0x713   :  { %3118 = vmatpush1.bf16.msra.mxu0 %v5826_v26  ;;  %3159 = vmatpush1.bf16.msra.mxu1 %v5828_v27  ;;  %v5688_v26 = vcombine.low %v1458_v12, %v1466_v13  ;;  %v5703_v27 = vcombine.high %v1473_v18, %v1481_v21  ;;  %v1578_v12 = vld [vmem:[#allocation20 + $0x5e8] sm:$0xff]  ;;  %v1593_v18 = vld [vmem:[#allocation20 + $0x660] sm:$0xff] }
 0x714   :  { %3119 = vmatprep.subr.bf16.mxu0 %v5843_v30  ;;  %3160 = vmatprep.subr.bf16.mxu1 %v5845_v31  ;;  %v5705_v30 = vcombine.high %v1474_v23, %v1482_v24  ;;  %v1489_v31 = vld [vmem:[#allocation20 + $0x320] sm:$0xff]  ;;  %v1586_v21 = vld [vmem:[#allocation20 + $0x628] sm:$0xff] }
 0x715   :  { %v5718_v43 = vcombine.low %v1489_v31, %v1497_v32 }
 0x717   :  { %3120 = vmatpush1.bf16.msra.mxu0 %v5842_v38  ;;  %3161 = vmatpush1.bf16.msra.mxu1 %v5844_v39  ;;  %v5704_v38 = vcombine.low %v1474_v23, %v1482_v24  ;;  %v5719_v39 = vcombine.high %v1489_v31, %v1497_v32  ;;  %v1594_v23 = vld [vmem:[#allocation20 + $0x668] sm:$0xff]  ;;  %v1609_v31 = vld [vmem:[#allocation20 + $0x6e0] sm:$0xff] }
 0x718   :  { %3121 = vmatprep.subr.bf16.mxu0 %v5859_v55  ;;  %3162 = vmatprep.subr.bf16.mxu1 %v5861_v56  ;;  %v5721_v55 = vcombine.high %v1490_v33, %v1498_v34  ;;  %v1505_v56 = vld [vmem:[#allocation20 + $0x3a0] sm:$0xff]  ;;  %v1602_v32 = vld [vmem:[#allocation20 + $0x6a8] sm:$0xff] }
 0x719   :  { %v5734_v51 = vcombine.low %v1505_v56, %v1513_v28 }
 0x71b   :  { %3122 = vmatpush1.bf16.msra.mxu0 %v5858_v44  ;;  %3163 = vmatpush1.bf16.msra.mxu1 %v5860_v45  ;;  %v5720_v44 = vcombine.low %v1490_v33, %v1498_v34  ;;  %v5735_v45 = vcombine.high %v1505_v56, %v1513_v28  ;;  %v1610_v33 = vld [vmem:[#allocation20 + $0x6e8] sm:$0xff]  ;;  %v1625_v56 = vld [vmem:[#allocation20 + $0x760] sm:$0xff] }
 0x71c   :  { %3173 = vmatprep.subr.bf16.mxu0 %v5623_v46  ;;  %3214 = vmatprep.subr.bf16.mxu1 %v5625_v47  ;;  %v5737_v46 = vcombine.high %v1506_v29, %v1514_v42  ;;  %v1521_v47 = vld [vmem:[#allocation20 + $0x420] sm:$0xff]  ;;  %v1618_v28 = vld [vmem:[#allocation20 + $0x728] sm:$0xff] }
 0x71d   :  { %v5750_v61 = vcombine.low %v1521_v47, %v1529_v48 }
 0x71e   :  { %3124 = vmatmul.mubr.bf16.vlgmr.msra.gmra.mrb[16].mxu0 %v7631_v40  ;;  %3165 = vmatmul.mubr.bf16.vlgmr.msra.gmra.mrb[16].mxu1 %v7631_v40 }
 0x71f   :  { %3174 = vmatpush1.bf16.msra.mxu0 %v5622_v52  ;;  %3205 = vmatprep.mubr.bf16.mxu0 %v7635_v41  ;;  %v5736_v52 = vcombine.low %v1506_v29, %v1514_v42  ;;  %v1626_v29 = vld [vmem:[#allocation20 + $0x768] sm:$0xff] }
 0x720   :  { %3215 = vmatpush1.bf16.msra.mxu1 %v5624_v53  ;;  %3246 = vmatprep.mubr.bf16.mxu1 %v7635_v41  ;;  %v5751_v53 = vcombine.high %v1521_v47, %v1529_v48  ;;  %v1641_v47 = vld [vmem:[#allocation20 + $0x7e0] sm:$0xff]  ;;  %v1634_v48 = vld [vmem:[#allocation20 + $0x7a8] sm:$0xff] }
 0x721   :  { %3175 = vmatprep.subr.bf16.mxu0 %v5639_v54  ;;  %3216 = vmatprep.subr.bf16.mxu1 %v5641_v57  ;;  %v5753_v54 = vcombine.high %v1522_v49, %v1530_v50  ;;  %v1537_v57 = vld [vmem:[#allocation20 + $0x4a0] sm:$0xff] }
 0x722   :  { %v5766_v5 = vcombine.low %v1537_v57, %v1545_v58 }
 0x723   :  { %3176 = vmatpush1.bf16.msra.mxu0 %v5638_v62  ;;  %v5752_v62 = vcombine.low %v1522_v49, %v1530_v50  ;;  %v1642_v49 = vld [vmem:[#allocation20 + $0x7e8] sm:$0xff] }
 0x724   :  { %3217 = vmatpush1.bf16.msra.mxu1 %v5640_v63  ;;  %3177 = vmatprep.subr.bf16.mxu0 %v5655_v0  ;;  %v5767_v63 = vcombine.high %v1537_v57, %v1545_v58  ;;  %v5769_v0 = vcombine.high %v1538_v59, %v1546_v60  ;;  %v1403_v57 = vld [vmem:[#allocation20 + $0x70] sm:$0xff]  ;;  %v1396_v58 = vld [vmem:[#allocation20 + $0x38] sm:$0xff] }
 0x725   :  { %3218 = vmatprep.subr.bf16.mxu1 %v5657_v1  ;;  %v1553_v1 = vld [vmem:[#allocation20 + $0x520] sm:$0xff] }
 0x726   :  { %v5782_v13 = vcombine.low %v1553_v1, %v1561_v2 }
 0x727   :  { %3178 = vmatpush1.bf16.msra.mxu0 %v5654_v6  ;;  %v5768_v6 = vcombine.low %v1538_v59, %v1546_v60  ;;  %v1404_v59 = vld [vmem:[#allocation20 + $0x78] sm:$0xff] }
 0x728   :  { %3219 = vmatpush1.bf16.msra.mxu1 %v5656_v7  ;;  %3179 = vmatprep.subr.bf16.mxu0 %v5671_v8  ;;  %v5783_v7 = vcombine.high %v1553_v1, %v1561_v2  ;;  %v5785_v8 = vcombine.high %v1554_v3, %v1562_v4  ;;  %v1419_v1 = vld [vmem:[#allocation20 + $0xf0] sm:$0xff] }
 0x729   :  { %3220 = vmatprep.subr.bf16.mxu1 %v5673_v9  ;;  %v1569_v9 = vld [vmem:[#allocation20 + $0x5a0] sm:$0xff] }
 0x72a   :  { %v5798_v24 = vcombine.low %v1569_v9, %v1577_v10 }
 0x72b   :  { %3180 = vmatpush1.bf16.msra.mxu0 %v5670_v14  ;;  %v5784_v14 = vcombine.low %v1554_v3, %v1562_v4  ;;  %v1412_v3 = vld [vmem:[#allocation20 + $0xb8] sm:$0xff] }
 0x72c   :  { %3221 = vmatpush1.bf16.msra.mxu1 %v5672_v15  ;;  %3181 = vmatprep.subr.bf16.mxu0 %v5687_v16  ;;  %v5799_v15 = vcombine.high %v1569_v9, %v1577_v10  ;;  %v5801_v16 = vcombine.high %v1570_v11, %v1578_v12  ;;  %v1420_v4 = vld [vmem:[#allocation20 + $0xf8] sm:$0xff] }
 0x72d   :  { %3222 = vmatprep.subr.bf16.mxu1 %v5689_v17  ;;  %v1585_v17 = vld [vmem:[#allocation20 + $0x620] sm:$0xff]  ;;  %v5645_v9 = vcombine.high %v1412_v3, %v1420_v4  ;;  %v1428_v10 = vld [vmem:[#allocation20 + $0x138] sm:$0xff] }
 0x72e   :  { %v5814_v34 = vcombine.low %v1585_v17, %v1593_v18 }
 0x72f   :  { %3182 = vmatpush1.bf16.msra.mxu0 %v5686_v25  ;;  %v5800_v25 = vcombine.low %v1570_v11, %v1578_v12  ;;  %v1436_v11 = vld [vmem:[#allocation20 + $0x178] sm:$0xff] }
 0x730   :  { %3223 = vmatpush1.bf16.msra.mxu1 %v5688_v26  ;;  %3183 = vmatprep.subr.bf16.mxu0 %v5703_v27  ;;  %v5815_v26 = vcombine.high %v1585_v17, %v1593_v18  ;;  %v5817_v27 = vcombine.high %v1586_v21, %v1594_v23  ;;  %v1451_v17 = vld [vmem:[#allocation20 + $0x1f0] sm:$0xff]  ;;  %v1444_v18 = vld [vmem:[#allocation20 + $0x1b8] sm:$0xff] }
 0x731   :  { %3224 = vmatprep.subr.bf16.mxu1 %v5705_v30  ;;  %v1601_v30 = vld [vmem:[#allocation20 + $0x6a0] sm:$0xff] }
 0x732   :  { %v5830_v42 = vcombine.low %v1601_v30, %v1609_v31 }
 0x733   :  { %3184 = vmatpush1.bf16.msra.mxu0 %v5702_v35  ;;  %v5816_v35 = vcombine.low %v1586_v21, %v1594_v23  ;;  %v1452_v21 = vld [vmem:[#allocation20 + $0x1f8] sm:$0xff] }
 0x734   :  { %3225 = vmatpush1.bf16.msra.mxu1 %v5704_v38  ;;  %3185 = vmatprep.subr.bf16.mxu0 %v5719_v39  ;;  %v5831_v38 = vcombine.high %v1601_v30, %v1609_v31  ;;  %v5833_v39 = vcombine.high %v1602_v32, %v1610_v33  ;;  %v1467_v30 = vld [vmem:[#allocation20 + $0x270] sm:$0xff]  ;;  %v1460_v31 = vld [vmem:[#allocation20 + $0x238] sm:$0xff] }
 0x735   :  { %3226 = vmatprep.subr.bf16.mxu1 %v5721_v55  ;;  %v1617_v55 = vld [vmem:[#allocation20 + $0x720] sm:$0xff] }
 0x736   :  { %v5846_v50 = vcombine.low %v1617_v55, %v1625_v56 }
 0x737   :  { %3186 = vmatpush1.bf16.msra.mxu0 %v5718_v43  ;;  %v5832_v43 = vcombine.low %v1602_v32, %v1610_v33  ;;  %v1468_v32 = vld [vmem:[#allocation20 + $0x278] sm:$0xff]  ;;  %v5676_v33 = vcombine.low %v1444_v18, %v1452_v21 }
 0x738   :  { %3227 = vmatpush1.bf16.msra.mxu1 %v5720_v44  ;;  %3187 = vmatprep.subr.bf16.mxu0 %v5735_v45  ;;  %v5847_v44 = vcombine.high %v1617_v55, %v1625_v56  ;;  %v5849_v45 = vcombine.high %v1618_v28, %v1626_v29  ;;  %v1476_v55 = vld [vmem:[#allocation20 + $0x2b8] sm:$0xff] }
 0x739   :  { %3228 = vmatprep.subr.bf16.mxu1 %v5737_v46  ;;  %v1633_v46 = vld [vmem:[#allocation20 + $0x7a0] sm:$0xff]  ;;  %v1484_v56 = vld [vmem:[#allocation20 + $0x2f8] sm:$0xff] }
 0x73a   :  { %v5862_v60 = vcombine.low %v1633_v46, %v1641_v47 }
 0x73b   :  { %3188 = vmatpush1.bf16.msra.mxu0 %v5734_v51  ;;  %v5848_v51 = vcombine.low %v1618_v28, %v1626_v29  ;;  %v5692_v29 = vcombine.low %v1460_v31, %v1468_v32 }
 0x73c   :  { %3229 = vmatpush1.bf16.msra.mxu1 %v5736_v52  ;;  %3189 = vmatprep.subr.bf16.mxu0 %v5751_v53  ;;  %v5863_v52 = vcombine.high %v1633_v46, %v1641_v47  ;;  %v5865_v53 = vcombine.high %v1634_v48, %v1642_v49  ;;  %v1492_v46 = vld [vmem:[#allocation20 + $0x338] sm:$0xff] }
 0x73d   :  { %3230 = vmatprep.subr.bf16.mxu1 %v5753_v54  ;;  %v1395_v54 = vld [vmem:[#allocation20 + $0x30] sm:$0xff]  ;;  %v1500_v47 = vld [vmem:[#allocation20 + $0x378] sm:$0xff] }
 0x73e   :  { %v5626_v2 = vcombine.low %v1395_v54, %v1403_v57 }
 0x73f   :  { %3190 = vmatpush1.bf16.msra.mxu0 %v5750_v61  ;;  %v5864_v61 = vcombine.low %v1634_v48, %v1642_v49  ;;  %v5708_v49 = vcombine.low %v1476_v55, %v1484_v56 }
 0x740   :  { %3231 = vmatpush1.bf16.msra.mxu1 %v5752_v62  ;;  %3191 = vmatprep.subr.bf16.mxu0 %v5767_v63  ;;  %v5627_v62 = vcombine.high %v1395_v54, %v1403_v57  ;;  %v5629_v63 = vcombine.high %v1396_v58, %v1404_v59  ;;  %v1508_v54 = vld [vmem:[#allocation20 + $0x3b8] sm:$0xff] }
 0x741   :  { %3232 = vmatprep.subr.bf16.mxu1 %v5769_v0  ;;  %v1411_v0 = vld [vmem:[#allocation20 + $0xb0] sm:$0xff]  ;;  %v1516_v57 = vld [vmem:[#allocation20 + $0x3f8] sm:$0xff] }
 0x742   :  { %v5642_v12 = vcombine.low %v1411_v0, %v1419_v1 }
 0x743   :  { %3192 = vmatpush1.bf16.msra.mxu0 %v5766_v5  ;;  %v5628_v5 = vcombine.low %v1396_v58, %v1404_v59  ;;  %v5724_v59 = vcombine.low %v1492_v46, %v1500_v47 }
 0x744   :  { %3233 = vmatpush1.bf16.msra.mxu1 %v5768_v6  ;;  %3193 = vmatprep.subr.bf16.mxu0 %v5783_v7  ;;  %v5643_v6 = vcombine.high %v1411_v0, %v1419_v1  ;;  %v1427_v7 = vld [vmem:[#allocation20 + $0x130] sm:$0xff]  ;;  %v1524_v0 = vld [vmem:[#allocation20 + $0x438] sm:$0xff] }
 0x745   :  { %3234 = vmatprep.subr.bf16.mxu1 %v5785_v8  ;;  %v1435_v8 = vld [vmem:[#allocation20 + $0x170] sm:$0xff]  ;;  %v1532_v1 = vld [vmem:[#allocation20 + $0x478] sm:$0xff] }
 0x746   :  { %v5658_v23 = vcombine.low %v1427_v7, %v1435_v8 }
 0x747   :  { %3194 = vmatpush1.bf16.msra.mxu0 %v5782_v13  ;;  %v5644_v13 = vcombine.low %v1412_v3, %v1420_v4  ;;  %v5740_v3 = vcombine.low %v1508_v54, %v1516_v57 }
 0x748   :  { %3235 = vmatpush1.bf16.msra.mxu1 %v5784_v14  ;;  %3195 = vmatprep.subr.bf16.mxu0 %v5799_v15  ;;  %v5659_v14 = vcombine.high %v1427_v7, %v1435_v8  ;;  %v5661_v15 = vcombine.high %v1428_v10, %v1436_v11  ;;  %v1547_v7 = vld [vmem:[#allocation20 + $0x4f0] sm:$0xff]  ;;  %v1540_v8 = vld [vmem:[#allocation20 + $0x4b8] sm:$0xff] }
 0x749   :  { %3236 = vmatprep.subr.bf16.mxu1 %v5801_v16  ;;  %v1443_v16 = vld [vmem:[#allocation20 + $0x1b0] sm:$0xff] }
 0x74b   :  { %3196 = vmatpush1.bf16.msra.mxu0 %v5798_v24  ;;  %v5660_v24 = vcombine.low %v1428_v10, %v1436_v11  ;;  %v5756_v11 = vcombine.low %v1524_v0, %v1532_v1 }
 0x74c   :  { %3237 = vmatpush1.bf16.msra.mxu1 %v5800_v25  ;;  %3197 = vmatprep.subr.bf16.mxu0 %v5815_v26  ;;  %v5675_v25 = vcombine.high %v1443_v16, %v1451_v17  ;;  %v5677_v26 = vcombine.high %v1444_v18, %v1452_v21 }
 0x74d   :  { %3238 = vmatprep.subr.bf16.mxu1 %v5817_v27  ;;  %v1459_v27 = vld [vmem:[#allocation20 + $0x230] sm:$0xff] }
 0x74e   :  { %v5690_v28 = vcombine.low %v1459_v27, %v1467_v30 }
 0x74f   :  { %3198 = vmatpush1.bf16.msra.mxu0 %v5814_v34  ;;  %v5691_v34 = vcombine.high %v1459_v27, %v1467_v30  ;;  %v1572_v27 = vld [vmem:[#allocation20 + $0x5b8] sm:$0xff] }
 0x750   :  { %3239 = vmatpush1.bf16.msra.mxu1 %v5816_v35  ;;  %3199 = vmatprep.subr.bf16.mxu0 %v5831_v38  ;;  %v5693_v35 = vcombine.high %v1460_v31, %v1468_v32  ;;  %v1475_v38 = vld [vmem:[#allocation20 + $0x2b0] sm:$0xff]  ;;  %v1580_v30 = vld [vmem:[#allocation20 + $0x5f8] sm:$0xff] }
 0x751   :  { %3240 = vmatprep.subr.bf16.mxu1 %v5833_v39  ;;  %v1483_v39 = vld [vmem:[#allocation20 + $0x2f0] sm:$0xff] }
 0x752   :  { %v5706_v48 = vcombine.low %v1475_v38, %v1483_v39 }
 0x753   :  { %3200 = vmatpush1.bf16.msra.mxu0 %v5830_v42  ;;  %v5707_v42 = vcombine.high %v1475_v38, %v1483_v39  ;;  %v1588_v38 = vld [vmem:[#allocation20 + $0x638] sm:$0xff] }
 0x754   :  { %3241 = vmatpush1.bf16.msra.mxu1 %v5832_v43  ;;  %3201 = vmatprep.subr.bf16.mxu0 %v5847_v44  ;;  %v5709_v43 = vcombine.high %v1476_v55, %v1484_v56  ;;  %v1491_v44 = vld [vmem:[#allocation20 + $0x330] sm:$0xff]  ;;  %v1596_v39 = vld [vmem:[#allocation20 + $0x678] sm:$0xff]  ;;  %v5804_v56 = vcombine.low %v1572_v27, %v1580_v30 }
 0x755   :  { %3242 = vmatprep.subr.bf16.mxu1 %v5849_v45  ;;  %v1499_v45 = vld [vmem:[#allocation20 + $0x370] sm:$0xff] }
 0x756   :  { %v5722_v58 = vcombine.low %v1491_v44, %v1499_v45 }
 0x757   :  { %3202 = vmatpush1.bf16.msra.mxu0 %v5846_v50  ;;  %v5723_v50 = vcombine.high %v1491_v44, %v1499_v45  ;;  %v1604_v44 = vld [vmem:[#allocation20 + $0x6b8] sm:$0xff] }
 0x758   :  { %3243 = vmatpush1.bf16.msra.mxu1 %v5848_v51  ;;  %3203 = vmatprep.subr.bf16.mxu0 %v5863_v52  ;;  %v5725_v51 = vcombine.high %v1492_v46, %v1500_v47  ;;  %v1507_v52 = vld [vmem:[#allocation20 + $0x3b0] sm:$0xff]  ;;  %v1612_v45 = vld [vmem:[#allocation20 + $0x6f8] sm:$0xff]  ;;  %v5820_v47 = vcombine.low %v1588_v38, %v1596_v39 }
 0x759   :  { %3244 = vmatprep.subr.bf16.mxu1 %v5865_v53  ;;  %v1515_v53 = vld [vmem:[#allocation20 + $0x3f0] sm:$0xff] }
 0x75b   :  { %3204 = vmatpush1.bf16.msra.mxu0 %v5862_v60  ;;  %v5739_v60 = vcombine.high %v1507_v52, %v1515_v53 }
 0x75c   :  { %3245 = vmatpush1.bf16.msra.mxu1 %v5864_v61  ;;  %3255 = vmatprep.subr.bf16.mxu0 %v5627_v62  ;;  %v5741_v61 = vcombine.high %v1508_v54, %v1516_v57  ;;  %v1523_v62 = vld [vmem:[#allocation20 + $0x430] sm:$0xff]  ;;  %v5836_v57 = vcombine.low %v1604_v44, %v1612_v45 }
 0x75d   :  { %3296 = vmatprep.subr.bf16.mxu1 %v5629_v63  ;;  %v1531_v63 = vld [vmem:[#allocation20 + $0x470] sm:$0xff] }
 0x75e   :  { %3206 = vmatmul.mubr.bf16.vlgmr.msra.gmra.mrb[20].mxu0 %v7631_v40  ;;  %v5755_v4 = vcombine.high %v1523_v62, %v1531_v63  ;;  %v5754_v10 = vcombine.low %v1523_v62, %v1531_v63  ;;  %v1636_v62 = vld [vmem:[#allocation20 + $0x7b8] sm:$0xff] }
 0x75f   :  { %3247 = vmatmul.mubr.bf16.vlgmr.msra.gmra.mrb[20].mxu1 %v7631_v40  ;;  %3256 = vmatpush1.bf16.msra.mxu0 %v5626_v2  ;;  %v5738_v2 = vcombine.low %v1507_v52, %v1515_v53  ;;  %v1620_v52 = vld [vmem:[#allocation20 + $0x738] sm:$0xff] }
 0x760   :  { %3287 = vmatprep.mubr.bf16.mxu0 %v7635_v41  ;;  %3297 = vmatpush1.bf16.msra.mxu1 %v5628_v5  ;;  %v5757_v5 = vcombine.high %v1524_v0, %v1532_v1  ;;  %v1628_v53 = vld [vmem:[#allocation20 + $0x778] sm:$0xff] }
 0x761   :  { %3328 = vmatprep.mubr.bf16.mxu1 %v7635_v41  ;;  %3257 = vmatprep.subr.bf16.mxu0 %v5643_v6  ;;  %v5674_v41 = vcombine.low %v1443_v16, %v1451_v17  ;;  %v1539_v6 = vld [vmem:[#allocation20 + $0x4b0] sm:$0xff]  ;;  %v1556_v16 = vld [vmem:[#allocation20 + $0x538] sm:$0xff]  ;;  %v5852_v1 = vcombine.low %v1620_v52, %v1628_v53 }
 0x762   :  { %3298 = vmatprep.subr.bf16.mxu1 %v5645_v9  ;;  %v1548_v9 = vld [vmem:[#allocation20 + $0x4f8] sm:$0xff]  ;;  %v5770_v18 = vcombine.low %v1539_v6, %v1547_v7 }
 0x763   :  { %3258 = vmatpush1.bf16.msra.mxu0 %v5642_v12  ;;  %v5771_v12 = vcombine.high %v1539_v6, %v1547_v7  ;;  %v1564_v17 = vld [vmem:[#allocation20 + $0x578] sm:$0xff]  ;;  %v5772_v21 = vcombine.low %v1540_v8, %v1548_v9  ;;  %v6444_v6 = vld [vmem:[#allocation22 + $0x4] ss:$8 sps:$4 sm:$0xff]  }
 0x764   :  { %3299 = vmatpush1.bf16.msra.mxu1 %v5644_v13  ;;  %3259 = vmatprep.subr.bf16.mxu0 %v5659_v14  ;;  %v5773_v13 = vcombine.high %v1540_v8, %v1548_v9  ;;  %v1555_v14 = vld [vmem:[#allocation20 + $0x530] sm:$0xff]  ;;  %v5788_v32 = vcombine.low %v1556_v16, %v1564_v17  ;;  %v1644_v63 = vld [vmem:[#allocation20 + $0x7f8] sm:$0xff]  ;;  %v6447_v7 = vld [vmem:[#allocation22 + $0x104] ss:$8 sps:$4 sm:$0xff]  }
 0x765   :  { %3300 = vmatprep.subr.bf16.mxu1 %v5661_v15  ;;  %v1563_v15 = vld [vmem:[#allocation20 + $0x570] sm:$0xff]  ;;  %v6442_v8 = vld [vmem:[#allocation22] ss:$8 sps:$4 sm:$0xff]  }
 0x766   :  { %v5786_v31 = vcombine.low %v1555_v14, %v1563_v15  ;;  %v6445_v9 = vld [vmem:[#allocation22 + $0x100] ss:$8 sps:$4 sm:$0xff]  }
 0x767   :  { %3260 = vmatpush1.bf16.msra.mxu0 %v5658_v23  ;;  %v5787_v23 = vcombine.high %v1555_v14, %v1563_v15  ;;  %v6456_v14 = vld [vmem:[#allocation22 + $0x24] ss:$8 sps:$4 sm:$0xff]  }
 0x768   :  { %3301 = vmatpush1.bf16.msra.mxu1 %v5660_v24  ;;  %3261 = vmatprep.subr.bf16.mxu0 %v5675_v25  ;;  %v5789_v24 = vcombine.high %v1556_v16, %v1564_v17  ;;  %v1571_v25 = vld [vmem:[#allocation20 + $0x5b0] sm:$0xff]  ;;  %v6459_v15 = vld [vmem:[#allocation22 + $0x124] ss:$8 sps:$4 sm:$0xff]   ;;  %v6454_v16 = vld [vmem:[#allocation22 + $0x20] ss:$8 sps:$4 sm:$0xff]  }
 0x769   :  { %3302 = vmatprep.subr.bf16.mxu1 %v5677_v26  ;;  %v1579_v26 = vld [vmem:[#allocation20 + $0x5f0] sm:$0xff]  ;;  %v6457_v17 = vld [vmem:[#allocation22 + $0x120] ss:$8 sps:$4 sm:$0xff]  }
 0x76a   :  { %v5802_v55 = vcombine.low %v1571_v25, %v1579_v26 }
 0x76b   :  { %3262 = vmatpush1.bf16.msra.mxu0 %v5674_v41  ;;  %v5803_v41 = vcombine.high %v1571_v25, %v1579_v26  ;;  %v6471_v25 = vld [vmem:[#allocation22 + $0x144] ss:$8 sps:$4 sm:$0xff]   ;;  %v6466_v26 = vld [vmem:[#allocation22 + $0x40] ss:$8 sps:$4 sm:$0xff]  }
 0x76c   :  { %3303 = vmatpush1.bf16.msra.mxu1 %v5676_v33  ;;  %3263 = vmatprep.subr.bf16.mxu0 %v5691_v34  ;;  %v5805_v33 = vcombine.high %v1572_v27, %v1580_v30  ;;  %v1587_v34 = vld [vmem:[#allocation20 + $0x630] sm:$0xff]  ;;  %v1663_v27 = vsub.s32 3, %v7574_v19  ;;  %v6469_v30 = vld [vmem:[#allocation22 + $0x140] ss:$8 sps:$4 sm:$0xff]  }
 0x76d   :  { %3304 = vmatprep.subr.bf16.mxu1 %v5693_v35  ;;  %v1595_v35 = vld [vmem:[#allocation20 + $0x670] sm:$0xff] }
 0x76e   :  { %v5818_v46 = vcombine.low %v1587_v34, %v1595_v35 }
 0x76f   :  { %3264 = vmatpush1.bf16.msra.mxu0 %v5690_v28  ;;  %v5819_v28 = vcombine.high %v1587_v34, %v1595_v35 }
 0x770   :  { %3305 = vmatpush1.bf16.msra.mxu1 %v5692_v29  ;;  %3265 = vmatprep.subr.bf16.mxu0 %v5707_v42  ;;  %v5821_v29 = vcombine.high %v1588_v38, %v1596_v39  ;;  %v1603_v42 = vld [vmem:[#allocation20 + $0x6b0] sm:$0xff]  ;;  %v6480_v39 = vld [vmem:[#allocation22 + $0x64] ss:$8 sps:$4 sm:$0xff]  }
 0x771   :  { %3306 = vmatprep.subr.bf16.mxu1 %v5709_v43  ;;  %v1611_v43 = vld [vmem:[#allocation20 + $0x6f0] sm:$0xff] }
 0x772   :  { %v5834_v54 = vcombine.low %v1603_v42, %v1611_v43  ;;  %v6475_v38 = vld [vmem:[#allocation22 + $0x150] ss:$8 sps:$4 sm:$0xff]  }
 0x773   :  { %3266 = vmatpush1.bf16.msra.mxu0 %v5706_v48  ;;  %v5835_v48 = vcombine.high %v1603_v42, %v1611_v43 }
 0x774   :  { %3307 = vmatpush1.bf16.msra.mxu1 %v5708_v49  ;;  %3267 = vmatprep.subr.bf16.mxu0 %v5723_v50  ;;  %v5837_v49 = vcombine.high %v1604_v44, %v1612_v45  ;;  %v1619_v50 = vld [vmem:[#allocation20 + $0x730] sm:$0xff] }
 0x775   :  { %3308 = vmatprep.subr.bf16.mxu1 %v5725_v51  ;;  %v1627_v51 = vld [vmem:[#allocation20 + $0x770] sm:$0xff] }
 0x776   :  { %v5850_v0 = vcombine.low %v1619_v50, %v1627_v51 }
 0x777   :  { %3268 = vmatpush1.bf16.msra.mxu0 %v5722_v58  ;;  %v5851_v58 = vcombine.high %v1619_v50, %v1627_v51  ;;  %v6481_v50 = vld [vmem:[#allocation22 + $0x160] ss:$8 sps:$4 sm:$0xff]   ;;  %v6486_v51 = vld [vmem:[#allocation22 + $0x74] ss:$8 sps:$4 sm:$0xff]  }
 0x778   :  { %3309 = vmatpush1.bf16.msra.mxu1 %v5724_v59  ;;  %3269 = vmatprep.subr.bf16.mxu0 %v5739_v60  ;;  %v5853_v59 = vcombine.high %v1620_v52, %v1628_v53  ;;  %v1635_v60 = vld [vmem:[#allocation20 + $0x7b0] sm:$0xff] }
 0x779   :  { %3310 = vmatprep.subr.bf16.mxu1 %v5741_v61  ;;  %v1643_v61 = vld [vmem:[#allocation20 + $0x7f0] sm:$0xff] }
 0x77b   :  { %3270 = vmatpush1.bf16.msra.mxu0 %v5738_v2  ;;  %v5867_v2 = vcombine.high %v1635_v60, %v1643_v61 }
 0x77c   :  { %3311 = vmatpush1.bf16.msra.mxu1 %v5740_v3  ;;  %3271 = vmatprep.subr.bf16.mxu0 %v5755_v4  ;;  %v5869_v3 = vcombine.high %v1636_v62, %v1644_v63  ;;  %v5866_v4 = vcombine.low %v1635_v60, %v1643_v61  ;;  %v6487_v60 = vld [vmem:[#allocation22 + $0x170] ss:$8 sps:$4 sm:$0xff]   ;;  %v6492_v61 = vld [vmem:[#allocation22 + $0x84] ss:$8 sps:$4 sm:$0xff]  }
 0x77d   :  { %3312 = vmatprep.subr.bf16.mxu1 %v5757_v5  ;;  %v5868_v5 = vcombine.low %v1636_v62, %v1644_v63  ;;  %v6495_v62 = vld [vmem:[#allocation22 + $0x184] ss:$8 sps:$4 sm:$0xff]   ;;  %v6490_v63 = vld [vmem:[#allocation22 + $0x80] ss:$8 sps:$4 sm:$0xff]  }
 0x77f   :  { %3272 = vmatpush1.bf16.msra.mxu0 %v5754_v10  ;;  %v6450_v10 = vld [vmem:[#allocation22 + $0x14] ss:$8 sps:$4 sm:$0xff]  }
 0x780   :  { %3313 = vmatpush1.bf16.msra.mxu1 %v5756_v11  ;;  %3273 = vmatprep.subr.bf16.mxu0 %v5771_v12  ;;  %v6453_v11 = vld [vmem:[#allocation22 + $0x114] ss:$8 sps:$4 sm:$0xff]   ;;  %v6448_v12 = vld [vmem:[#allocation22 + $0x10] ss:$8 sps:$4 sm:$0xff]  }
 0x781   :  { %3314 = vmatprep.subr.bf16.mxu1 %v5773_v13  ;;  %v6451_v13 = vld [vmem:[#allocation22 + $0x110] ss:$8 sps:$4 sm:$0xff]  }
 0x783   :  { %3274 = vmatpush1.bf16.msra.mxu0 %v5770_v18  ;;  %v6462_v18 = vld [vmem:[#allocation22 + $0x34] ss:$8 sps:$4 sm:$0xff]  }
 0x784   :  { %3315 = vmatpush1.bf16.msra.mxu1 %v5772_v21  ;;  %3275 = vmatprep.subr.bf16.mxu0 %v5787_v23  ;;  %v6465_v21 = vld [vmem:[#allocation22 + $0x134] ss:$8 sps:$4 sm:$0xff]   ;;  %v6460_v23 = vld [vmem:[#allocation22 + $0x30] ss:$8 sps:$4 sm:$0xff]  }
 0x785   :  { %3316 = vmatprep.subr.bf16.mxu1 %v5789_v24  ;;  %v6468_v24 = vld [vmem:[#allocation22 + $0x44] ss:$8 sps:$4 sm:$0xff]  }
 0x787   :  { %3276 = vmatpush1.bf16.msra.mxu0 %v5786_v31  ;;  %v7657_v31 = vld [vmem:[%s7786_s17] sm:$0xff] }
 0x788   :  { %3317 = vmatpush1.bf16.msra.mxu1 %v5788_v32  ;;  %3277 = vmatprep.subr.bf16.mxu0 %v5803_v41  ;;  %v6474_v32 = vld [vmem:[#allocation22 + $0x54] ss:$8 sps:$4 sm:$0xff]   ;;  %v1656_v34 = vrot.slane %v7657_v31, %v7583_v22  ;;  %v1664_v35 = vrot.slane %v7657_v31, %v1663_v27 }
 0x789   :  { %3318 = vmatprep.subr.bf16.mxu1 %v5805_v33  ;;  %v6477_v41 = vld [vmem:[#allocation22 + $0x154] ss:$8 sps:$4 sm:$0xff]   ;;  %v6472_v33 = vld [vmem:[#allocation22 + $0x50] ss:$8 sps:$4 sm:$0xff]  }
 0x78b   :  { %3278 = vmatpush1.bf16.msra.mxu0 %v5802_v55 }
 0x78c   :  { %3319 = vmatpush1.bf16.msra.mxu1 %v5804_v56  ;;  %3279 = vmatprep.subr.bf16.mxu0 %v5819_v28  ;;  %v6483_v28 = vld [vmem:[#allocation22 + $0x164] ss:$8 sps:$4 sm:$0xff]  }
 0x78d   :  { %3320 = vmatprep.subr.bf16.mxu1 %v5821_v29 }
 0x78f   :  { %3280 = vmatpush1.bf16.msra.mxu0 %v5818_v46 }
 0x790   :  { %3321 = vmatpush1.bf16.msra.mxu1 %v5820_v47  ;;  %3281 = vmatprep.subr.bf16.mxu0 %v5835_v48  ;;  %v6478_v47 = vld [vmem:[#allocation22 + $0x60] ss:$8 sps:$4 sm:$0xff]  }
 0x791   :  { %3322 = vmatprep.subr.bf16.mxu1 %v5837_v49 }
 0x793   :  { %3282 = vmatpush1.bf16.msra.mxu0 %v5834_v54  ;;  %v6489_v54 = vld [vmem:[#allocation22 + $0x174] ss:$8 sps:$4 sm:$0xff]  }
 0x794   :  { %3323 = vmatpush1.bf16.msra.mxu1 %v5836_v57  ;;  %3283 = vmatprep.subr.bf16.mxu0 %v5851_v58 }
 0x795   :  { %3324 = vmatprep.subr.bf16.mxu1 %v5853_v59  ;;  %v6484_v59 = vld [vmem:[#allocation22 + $0x70] ss:$8 sps:$4 sm:$0xff]  }
 0x797   :  { %3284 = vmatpush1.bf16.msra.mxu0 %v5850_v0  ;;  %v6493_v0 = vld [vmem:[#allocation22 + $0x180] ss:$8 sps:$4 sm:$0xff]  }
 0x798   :  { %3325 = vmatpush1.bf16.msra.mxu1 %v5852_v1  ;;  %3285 = vmatprep.subr.bf16.mxu0 %v5867_v2  ;;  %v6498_v1 = vld [vmem:[#allocation22 + $0x94] ss:$8 sps:$4 sm:$0xff]  }
 0x799   :  { %3326 = vmatprep.subr.bf16.mxu1 %v5869_v3  ;;  %v6501_v2 = vld [vmem:[#allocation22 + $0x194] ss:$8 sps:$4 sm:$0xff]   ;;  %v6496_v3 = vld [vmem:[#allocation22 + $0x90] ss:$8 sps:$4 sm:$0xff]  }
 0x79b   :  { %3286 = vmatpush1.bf16.msra.mxu0 %v5866_v4  ;;  %v6499_v4 = vld [vmem:[#allocation22 + $0x190] ss:$8 sps:$4 sm:$0xff]  }
 0x79c   :  { %3327 = vmatpush1.bf16.msra.mxu1 %v5868_v5  ;;  %4917 = vmatprep.subr.bf16.mxu0 %v6444_v6  ;;  %v6504_v5 = vld [vmem:[#allocation22 + $0xa4] ss:$8 sps:$4 sm:$0xff]  }
 0x79d   :  { %4958 = vmatprep.subr.bf16.mxu1 %v6447_v7  ;;  %v6507_v6 = vld [vmem:[#allocation22 + $0x1a4] ss:$8 sps:$4 sm:$0xff]   ;;  %v6502_v7 = vld [vmem:[#allocation22 + $0xa0] ss:$8 sps:$4 sm:$0xff]  }
 0x79e   :  { %3288 = vmatmul.mubr.bf16.vlgmr.msra.gmra.mrb[24].mxu0 %v7631_v40 }
 0x79f   :  { %3329 = vmatmul.mubr.bf16.vlgmr.msra.gmra.mrb[24].mxu1 %v7631_v40  ;;  %4918 = vmatpush1.bf16.msra.mxu0 %v6442_v8  ;;  %v6463_v40 = vld [vmem:[#allocation22 + $0x130] ss:$8 sps:$4 sm:$0xff]   ;;  %v6505_v8 = vld [vmem:[#allocation22 + $0x1a0] ss:$8 sps:$4 sm:$0xff]  }
 0x7a0   :  { %4959 = vmatpush1.bf16.msra.mxu1 %v6445_v9  ;;  %4919 = vmatprep.subr.bf16.mxu0 %v6450_v10  ;;  %v6510_v9 = vld [vmem:[#allocation22 + $0xb4] ss:$8 sps:$4 sm:$0xff]  }
 0x7a1   :  { %4960 = vmatprep.subr.bf16.mxu1 %v6453_v11  ;;  %v6513_v10 = vld [vmem:[#allocation22 + $0x1b4] ss:$8 sps:$4 sm:$0xff]   ;;  %v6508_v11 = vld [vmem:[#allocation22 + $0xb0] ss:$8 sps:$4 sm:$0xff]  }
 0x7a3   :  { %4920 = vmatpush1.bf16.msra.mxu0 %v6448_v12  ;;  %v6511_v12 = vld [vmem:[#allocation22 + $0x1b0] ss:$8 sps:$4 sm:$0xff]  }
 0x7a4   :  { %4961 = vmatpush1.bf16.msra.mxu1 %v6451_v13  ;;  %4921 = vmatprep.subr.bf16.mxu0 %v6456_v14  ;;  %v6516_v13 = vld [vmem:[#allocation22 + $0xc4] ss:$8 sps:$4 sm:$0xff]  }
 0x7a5   :  { %4962 = vmatprep.subr.bf16.mxu1 %v6459_v15  ;;  %v6519_v14 = vld [vmem:[#allocation22 + $0x1c4] ss:$8 sps:$4 sm:$0xff]   ;;  %v6514_v15 = vld [vmem:[#allocation22 + $0xc0] ss:$8 sps:$4 sm:$0xff]  }
 0x7a7   :  { %4922 = vmatpush1.bf16.msra.mxu0 %v6454_v16  ;;  %v6517_v16 = vld [vmem:[#allocation22 + $0x1c0] ss:$8 sps:$4 sm:$0xff]  }
 0x7a8   :  { %4963 = vmatpush1.bf16.msra.mxu1 %v6457_v17  ;;  %4923 = vmatprep.subr.bf16.mxu0 %v6462_v18  ;;  %v6522_v17 = vld [vmem:[#allocation22 + $0xd4] ss:$8 sps:$4 sm:$0xff]   ;;  %v1659_v18 = vsub.s32 2, %v7574_v19 }
 0x7a9   :  { %4964 = vmatprep.subr.bf16.mxu1 %v6465_v21  ;;  %v6525_v21 = vld [vmem:[#allocation22 + $0x1d4] ss:$8 sps:$4 sm:$0xff]  }
 0x7ab   :  { %4924 = vmatpush1.bf16.msra.mxu0 %v6460_v23  ;;  %v6520_v23 = vld [vmem:[#allocation22 + $0xd0] ss:$8 sps:$4 sm:$0xff]  }
 0x7ac   :  { %4965 = vmatpush1.bf16.msra.mxu1 %v6463_v40  ;;  %4925 = vmatprep.subr.bf16.mxu0 %v6468_v24  ;;  %v1652_v40 = vrot.slane %v7657_v31, %v7577_v20  ;;  %v6523_v24 = vld [vmem:[#allocation22 + $0x1d0] ss:$8 sps:$4 sm:$0xff]  }
 0x7ad   :  { %4966 = vmatprep.subr.bf16.mxu1 %v6471_v25  ;;  %v6528_v25 = vld [vmem:[#allocation22 + $0xe4] ss:$8 sps:$4 sm:$0xff]  }
 0x7af   :  { %4926 = vmatpush1.bf16.msra.mxu0 %v6466_v26  ;;  %v1660_v26 = vrot.slane %v7657_v31, %v1659_v18 }
 0x7b0   :  { %4967 = vmatpush1.bf16.msra.mxu1 %v6469_v30  ;;  %4927 = vmatprep.subr.bf16.mxu0 %v6474_v32  ;;  %v6531_v30 = vld [vmem:[#allocation22 + $0x1e4] ss:$8 sps:$4 sm:$0xff]   ;;  %v6526_v32 = vld [vmem:[#allocation22 + $0xe0] ss:$8 sps:$4 sm:$0xff]  }
 0x7b1   :  { %v7664_v55 = vpop.f32.mrb[12].mxu0  ;;  %v7666_v56 = vpop.f32.mrb[12].mxu1  ;;  %4968 = vmatprep.subr.bf16.mxu1 %v6477_v41 }
 0x7b2   :  { %v3045_v29 = vpop.f32.mrb[13].mxu0  ;;  %v3086_v42 = vpop.f32.mrb[13].mxu1  ;;  %v3044_v41 = vadd.f32 %v7664_v55, %v1652_v40  ;;  %v6538_v55 = vld [vmem:[#allocation22 + $0x200] ss:$8 sps:$4 sm:$0xff]  }
 0x7b3   :  { %v3046_v43 = vadd.f32 %v3045_v29, %v1656_v34  ;;  %v3087_v44 = vadd.f32 %v3086_v42, %v1664_v35  ;;  %4928 = vmatpush1.bf16.msra.mxu0 %v6472_v33  ;;  %v3047_v45 = vpop.f32.mrb[14].mxu0  ;;  %v3088_v46 = vpop.f32.mrb[14].mxu1  ;;  %v6529_v33 = vld [vmem:[#allocation22 + $0x1e0] ss:$8 sps:$4 sm:$0xff]   ;;  %v6534_v34 = vld [vmem:[#allocation22 + $0xf4] ss:$8 sps:$4 sm:$0xff]   ;;  %v3085_v35 = vadd.f32 %v7666_v56, %v1660_v26 }
 0x7b4   :  { %4969 = vmatpush1.bf16.msra.mxu1 %v6475_v38  ;;  %v3048_v48 = vpop.f32.mrb[15].mxu0  ;;  %v3089_v49 = vpop.f32.mrb[15].mxu1  ;;  %4929 = vmatprep.subr.bf16.mxu0 %v6480_v39  ;;  %v6537_v38 = vld [vmem:[#allocation22 + $0x1f4] ss:$8 sps:$4 sm:$0xff]   ;;  %v6532_v39 = vld [vmem:[#allocation22 + $0xf0] ss:$8 sps:$4 sm:$0xff]  }
 0x7b5   :  { %v3338_v52 = vmax.f32 %v3046_v43, 0.0  ;;  %v3340_v53 = vmax.f32 %v3087_v44, 0.0  ;;  %4970 = vmatprep.subr.bf16.mxu1 %v6483_v28  ;;  %v3337_v28 = vmax.f32 %v3044_v41, 0.0  ;;  %v6535_v29 = vld [vmem:[#allocation22 + $0x1f0] ss:$8 sps:$4 sm:$0xff]   ;;  %v3339_v43 = vmax.f32 %v3085_v35, 0.0 }
 0x7b6   :  { %v6540_v42 = vld [vmem:[#allocation22 + $0x204] ss:$8 sps:$4 sm:$0xff]   ;;  %v6541_v46 = vld [vmem:[#allocation22 + $0x300] ss:$8 sps:$4 sm:$0xff]   ;;  %v6549_v48 = vld [vmem:[#allocation22 + $0x314] ss:$8 sps:$4 sm:$0xff]  }
 0x7b7   :  { %v3354_v57 = vpack.c.bf16 %v3338_v52, %v3338_v52  ;;  %v3356_v58 = vpack.c.bf16 %v3340_v53, %v3340_v53  ;;  %4930 = vmatpush1.bf16.msra.mxu0 %v6478_v47  ;;  %v6543_v44 = vld [vmem:[#allocation22 + $0x304] ss:$8 sps:$4 sm:$0xff]   ;;  %v3353_v45 = vpack.c.bf16 %v3337_v28, %v3337_v28  ;;  %v6546_v47 = vld [vmem:[#allocation22 + $0x214] ss:$8 sps:$4 sm:$0xff]   ;;  %v3355_v56 = vpack.c.bf16 %v3339_v43, %v3339_v43  ;;  %v6544_v49 = vld [vmem:[#allocation22 + $0x210] ss:$8 sps:$4 sm:$0xff]  }
 0x7b8   :  { %4971 = vmatpush1.bf16.msra.mxu1 %v6481_v50  ;;  %4931 = vmatprep.subr.bf16.mxu0 %v6486_v51  ;;  %v6547_v50 = vld [vmem:[#allocation22 + $0x310] ss:$8 sps:$4 sm:$0xff]   ;;  %v6552_v51 = vld [vmem:[#allocation22 + $0x224] ss:$8 sps:$4 sm:$0xff]   ;;  %v6550_v53 = vld [vmem:[#allocation22 + $0x220] ss:$8 sps:$4 sm:$0xff]  }
 0x7b9   :  { %4949 = vmatprep.mubr.bf16.mxu0 %v3354_v57  ;;  %4972 = vmatprep.subr.bf16.mxu1 %v6489_v54  ;;  %v6555_v52 = vld [vmem:[#allocation22 + $0x324] ss:$8 sps:$4 sm:$0xff]   ;;  %v6553_v54 = vld [vmem:[#allocation22 + $0x320] ss:$8 sps:$4 sm:$0xff]   ;;  %v6558_v57 = vld [vmem:[#allocation22 + $0x234] ss:$8 sps:$4 sm:$0xff]  }
 0x7ba   :  { %4990 = vmatprep.mubr.bf16.mxu1 %v3356_v58  ;;  %v6561_v58 = vld [vmem:[#allocation22 + $0x334] ss:$8 sps:$4 sm:$0xff]   ;;  %v6580_v35 = vld [vmem:[#allocation22 + $0x270] ss:$8 sps:$4 sm:$0xff]   ;;  %v6591_v28 = vld [vmem:[#allocation22 + $0x384] ss:$8 sps:$4 sm:$0xff]  }
 0x7bb   :  { %4932 = vmatpush1.bf16.msra.mxu0 %v6484_v59  ;;  %v6556_v59 = vld [vmem:[#allocation22 + $0x230] ss:$8 sps:$4 sm:$0xff]   ;;  %v6582_v26 = vld [vmem:[#allocation22 + $0x274] ss:$8 sps:$4 sm:$0xff]  }
 0x7bc   :  { %4973 = vmatpush1.bf16.msra.mxu1 %v6487_v60  ;;  %4933 = vmatprep.subr.bf16.mxu0 %v6492_v61  ;;  %v6559_v60 = vld [vmem:[#allocation22 + $0x330] ss:$8 sps:$4 sm:$0xff]   ;;  %v6564_v61 = vld [vmem:[#allocation22 + $0x244] ss:$8 sps:$4 sm:$0xff]   ;;  %v6585_v41 = vld [vmem:[#allocation22 + $0x374] ss:$8 sps:$4 sm:$0xff]  }
 0x7bd   :  { %4974 = vmatprep.subr.bf16.mxu1 %v6495_v62  ;;  %v6567_v62 = vld [vmem:[#allocation22 + $0x344] ss:$8 sps:$4 sm:$0xff]   ;;  %v6594_v43 = vld [vmem:[#allocation22 + $0x294] ss:$8 sps:$4 sm:$0xff]  }
 0x7bf   :  { %4934 = vmatpush1.bf16.msra.mxu0 %v6490_v63  ;;  %v6562_v63 = vld [vmem:[#allocation22 + $0x240] ss:$8 sps:$4 sm:$0xff]  }
 0x7c0   :  { %4975 = vmatpush1.bf16.msra.mxu1 %v6493_v0  ;;  %4935 = vmatprep.subr.bf16.mxu0 %v6498_v1  ;;  %v1671_v0 = vsub.s32 5, %v7574_v19  ;;  %v1679_v1 = vsub.s32 7, %v7574_v19 }
 0x7c1   :  { %4976 = vmatprep.subr.bf16.mxu1 %v6501_v2  ;;  %v6565_v2 = vld [vmem:[#allocation22 + $0x340] ss:$8 sps:$4 sm:$0xff]  }
 0x7c3   :  { %4936 = vmatpush1.bf16.msra.mxu0 %v6496_v3  ;;  %v6570_v3 = vld [vmem:[#allocation22 + $0x254] ss:$8 sps:$4 sm:$0xff]  }
 0x7c4   :  { %4977 = vmatpush1.bf16.msra.mxu1 %v6499_v4  ;;  %4937 = vmatprep.subr.bf16.mxu0 %v6504_v5  ;;  %v6573_v4 = vld [vmem:[#allocation22 + $0x354] ss:$8 sps:$4 sm:$0xff]   ;;  %v1672_v5 = vrot.slane %v7657_v31, %v1671_v0 }
 0x7c5   :  { %4978 = vmatprep.subr.bf16.mxu1 %v6507_v6  ;;  %v1680_v6 = vrot.slane %v7657_v31, %v1679_v1 }
 0x7c7   :  { %4938 = vmatpush1.bf16.msra.mxu0 %v6502_v7  ;;  %v6568_v7 = vld [vmem:[#allocation22 + $0x250] ss:$8 sps:$4 sm:$0xff]  }
 0x7c8   :  { %4979 = vmatpush1.bf16.msra.mxu1 %v6505_v8  ;;  %4939 = vmatprep.subr.bf16.mxu0 %v6510_v9  ;;  %v6571_v8 = vld [vmem:[#allocation22 + $0x350] ss:$8 sps:$4 sm:$0xff]   ;;  %v6576_v9 = vld [vmem:[#allocation22 + $0x264] ss:$8 sps:$4 sm:$0xff]  }
 0x7c9   :  { %4980 = vmatprep.subr.bf16.mxu1 %v6513_v10 }
 0x7cb   :  { %4940 = vmatpush1.bf16.msra.mxu0 %v6508_v11 }
 0x7cc   :  { %4981 = vmatpush1.bf16.msra.mxu1 %v6511_v12  ;;  %4941 = vmatprep.subr.bf16.mxu0 %v6516_v13  ;;  %v6579_v12 = vld [vmem:[#allocation22 + $0x364] ss:$8 sps:$4 sm:$0xff]  }
 0x7cd   :  { %4982 = vmatprep.subr.bf16.mxu1 %v6519_v14 }
 0x7cf   :  { %4942 = vmatpush1.bf16.msra.mxu0 %v6514_v15 }
 0x7d0   :  { %4983 = vmatpush1.bf16.msra.mxu1 %v6517_v16  ;;  %4943 = vmatprep.subr.bf16.mxu0 %v6522_v17 }
 0x7d1   :  { %4984 = vmatprep.subr.bf16.mxu1 %v6525_v21 }
 0x7d3   :  { %4944 = vmatpush1.bf16.msra.mxu0 %v6520_v23  ;;  %v6574_v23 = vld [vmem:[#allocation22 + $0x260] ss:$8 sps:$4 sm:$0xff]  }
 0x7d4   :  { %4985 = vmatpush1.bf16.msra.mxu1 %v6523_v24  ;;  %4945 = vmatprep.subr.bf16.mxu0 %v6528_v25  ;;  %v6577_v25 = vld [vmem:[#allocation22 + $0x360] ss:$8 sps:$4 sm:$0xff]  }
 0x7d5   :  { %4986 = vmatprep.subr.bf16.mxu1 %v6531_v30 }
 0x7d7   :  { %4946 = vmatpush1.bf16.msra.mxu0 %v6526_v32 }
 0x7d8   :  { %4987 = vmatpush1.bf16.msra.mxu1 %v6529_v33  ;;  %4947 = vmatprep.subr.bf16.mxu0 %v6534_v34 }
 0x7d9   :  { %4988 = vmatprep.subr.bf16.mxu1 %v6537_v38  ;;  %v6583_v38 = vld [vmem:[#allocation22 + $0x370] ss:$8 sps:$4 sm:$0xff]  }
 0x7db   :  { %4948 = vmatpush1.bf16.msra.mxu0 %v6532_v39  ;;  %v6588_v39 = vld [vmem:[#allocation22 + $0x284] ss:$8 sps:$4 sm:$0xff]  }
 0x7dc   :  { %4989 = vmatpush1.bf16.msra.mxu1 %v6535_v29  ;;  %4999 = vmatprep.subr.bf16.mxu0 %v6540_v42  ;;  %v6586_v29 = vld [vmem:[#allocation22 + $0x280] ss:$8 sps:$4 sm:$0xff]  }
 0x7dd   :  { %5040 = vmatprep.subr.bf16.mxu1 %v6543_v44  ;;  %v6589_v42 = vld [vmem:[#allocation22 + $0x380] ss:$8 sps:$4 sm:$0xff]   ;;  %v6597_v44 = vld [vmem:[#allocation22 + $0x394] ss:$8 sps:$4 sm:$0xff]  }
 0x7de   :  { %4950 = vmatmul.mubr.bf16.vlgmr.msra.gmra.mrb[28].mxu0 %v3353_v45  ;;  %v6595_v45 = vld [vmem:[#allocation22 + $0x390] ss:$8 sps:$4 sm:$0xff]  }
 0x7df   :  { %4991 = vmatmul.mubr.bf16.vlgmr.msra.gmra.mrb[28].mxu1 %v3355_v56  ;;  %5000 = vmatpush1.bf16.msra.mxu0 %v6538_v55  ;;  %v6592_v55 = vld [vmem:[#allocation22 + $0x290] ss:$8 sps:$4 sm:$0xff]   ;;  %v6598_v56 = vld [vmem:[#allocation22 + $0x2a0] ss:$8 sps:$4 sm:$0xff]  }
 0x7e0   :  { %5041 = vmatpush1.bf16.msra.mxu1 %v6541_v46  ;;  %5001 = vmatprep.subr.bf16.mxu0 %v6546_v47  ;;  %v6600_v46 = vld [vmem:[#allocation22 + $0x2a4] ss:$8 sps:$4 sm:$0xff]  }
 0x7e1   :  { %5042 = vmatprep.subr.bf16.mxu1 %v6549_v48  ;;  %v6603_v47 = vld [vmem:[#allocation22 + $0x3a4] ss:$8 sps:$4 sm:$0xff]   ;;  %v6601_v48 = vld [vmem:[#allocation22 + $0x3a0] ss:$8 sps:$4 sm:$0xff]  }
 0x7e3   :  { %5002 = vmatpush1.bf16.msra.mxu0 %v6544_v49  ;;  %v6606_v49 = vld [vmem:[#allocation22 + $0x2b4] ss:$8 sps:$4 sm:$0xff]  }
 0x7e4   :  { %5043 = vmatpush1.bf16.msra.mxu1 %v6547_v50  ;;  %5003 = vmatprep.subr.bf16.mxu0 %v6552_v51  ;;  %v6609_v50 = vld [vmem:[#allocation22 + $0x3b4] ss:$8 sps:$4 sm:$0xff]   ;;  %v6604_v51 = vld [vmem:[#allocation22 + $0x2b0] ss:$8 sps:$4 sm:$0xff]  }
 0x7e5   :  { %5044 = vmatprep.subr.bf16.mxu1 %v6555_v52  ;;  %v6607_v52 = vld [vmem:[#allocation22 + $0x3b0] ss:$8 sps:$4 sm:$0xff]  }
 0x7e7   :  { %5004 = vmatpush1.bf16.msra.mxu0 %v6550_v53  ;;  %v6612_v53 = vld [vmem:[#allocation22 + $0x2c4] ss:$8 sps:$4 sm:$0xff]  }
 0x7e8   :  { %5045 = vmatpush1.bf16.msra.mxu1 %v6553_v54  ;;  %5005 = vmatprep.subr.bf16.mxu0 %v6558_v57  ;;  %v6615_v54 = vld [vmem:[#allocation22 + $0x3c4] ss:$8 sps:$4 sm:$0xff]   ;;  %v6610_v57 = vld [vmem:[#allocation22 + $0x2c0] ss:$8 sps:$4 sm:$0xff]  }
 0x7e9   :  { %5046 = vmatprep.subr.bf16.mxu1 %v6561_v58  ;;  %v1667_v58 = vsub.s32 4, %v7574_v19 }
 0x7eb   :  { %5006 = vmatpush1.bf16.msra.mxu0 %v6556_v59  ;;  %v6613_v59 = vld [vmem:[#allocation22 + $0x3c0] ss:$8 sps:$4 sm:$0xff]  }
 0x7ec   :  { %5047 = vmatpush1.bf16.msra.mxu1 %v6559_v60  ;;  %5007 = vmatprep.subr.bf16.mxu0 %v6564_v61  ;;  %v6618_v60 = vld [vmem:[#allocation22 + $0x2d4] ss:$8 sps:$4 sm:$0xff]   ;;  %v1675_v61 = vsub.s32 6, %v7574_v19  ;;  %v6823_v19 = vld [vmem:[#allocation22 + $0x7f0] ss:$8 sps:$4 sm:$0xff]  }
 0x7ed   :  { %5048 = vmatprep.subr.bf16.mxu1 %v6567_v62  ;;  %v6621_v62 = vld [vmem:[#allocation22 + $0x3d4] ss:$8 sps:$4 sm:$0xff]  }
 0x7ef   :  { %5008 = vmatpush1.bf16.msra.mxu0 %v6562_v63  ;;  %v6616_v63 = vld [vmem:[#allocation22 + $0x2d0] ss:$8 sps:$4 sm:$0xff]  }
 0x7f0   :  { %5049 = vmatpush1.bf16.msra.mxu1 %v6565_v2  ;;  %5009 = vmatprep.subr.bf16.mxu0 %v6570_v3  ;;  %v1668_v2 = vrot.slane %v7657_v31, %v1667_v58  ;;  %v6619_v3 = vld [vmem:[#allocation22 + $0x3d0] ss:$8 sps:$4 sm:$0xff]  }
 0x7f1   :  { %v7684_v10 = vpop.f32.mrb[16].mxu0  ;;  %v7686_v11 = vpop.f32.mrb[16].mxu1  ;;  %5050 = vmatprep.subr.bf16.mxu1 %v6573_v4  ;;  %v6624_v4 = vld [vmem:[#allocation22 + $0x2e4] ss:$8 sps:$4 sm:$0xff]  }
 0x7f2   :  { %v3127_v13 = vpop.f32.mrb[17].mxu0  ;;  %v3168_v14 = vpop.f32.mrb[17].mxu1 }
 0x7f3   :  { %v3128_v15 = vadd.f32 %v3127_v13, %v1672_v5  ;;  %v3169_v16 = vadd.f32 %v3168_v14, %v1680_v6  ;;  %v3129_v17 = vpop.f32.mrb[18].mxu0  ;;  %v3170_v21 = vpop.f32.mrb[18].mxu1  ;;  %5010 = vmatpush1.bf16.msra.mxu0 %v6568_v7  ;;  %v1676_v5 = vrot.slane %v7657_v31, %v1675_v61  ;;  %v6627_v6 = vld [vmem:[#allocation22 + $0x3e4] ss:$8 sps:$4 sm:$0xff]   ;;  %v6622_v7 = vld [vmem:[#allocation22 + $0x2e0] ss:$8 sps:$4 sm:$0xff]  }
 0x7f4   :  { %5051 = vmatpush1.bf16.msra.mxu1 %v6571_v8  ;;  %v3130_v40 = vpop.f32.mrb[19].mxu0  ;;  %v3171_v24 = vpop.f32.mrb[19].mxu1  ;;  %5011 = vmatprep.subr.bf16.mxu0 %v6576_v9  ;;  %v3126_v8 = vadd.f32 %v7684_v10, %v1668_v2  ;;  %v6625_v9 = vld [vmem:[#allocation22 + $0x3e0] ss:$8 sps:$4 sm:$0xff]   ;;  %v6633_v14 = vld [vmem:[#allocation22 + $0x3f4] ss:$8 sps:$4 sm:$0xff]  }
 0x7f5   :  { %v3342_v30 = vmax.f32 %v3128_v15, 0.0  ;;  %v3344_v32 = vmax.f32 %v3169_v16, 0.0  ;;  %5052 = vmatprep.subr.bf16.mxu1 %v6579_v12  ;;  %v6630_v12 = vld [vmem:[#allocation22 + $0x2f4] ss:$8 sps:$4 sm:$0xff]   ;;  %v3167_v13 = vadd.f32 %v7686_v11, %v1676_v5  ;;  %v6628_v15 = vld [vmem:[#allocation22 + $0x2f0] ss:$8 sps:$4 sm:$0xff]  }
 0x7f6   :  { %v3341_v16 = vmax.f32 %v3126_v8, 0.0  ;;  %v6631_v31 = vld [vmem:[#allocation22 + $0x3f0] ss:$8 sps:$4 sm:$0xff]   ;;  %v6636_v17 = vld [vmem:[#allocation22 + $0x404] ss:$8 sps:$4 sm:$0xff]  }
 0x7f7   :  { %v3358_v33 = vpack.c.bf16 %v3342_v30, %v3342_v30  ;;  %v3360_v34 = vpack.c.bf16 %v3344_v32, %v3344_v32  ;;  %5012 = vmatpush1.bf16.msra.mxu0 %v6574_v23  ;;  %v3343_v21 = vmax.f32 %v3167_v13, 0.0  ;;  %v6639_v23 = vld [vmem:[#allocation22 + $0x504] ss:$8 sps:$4 sm:$0xff]   ;;  %v6634_v10 = vld [vmem:[#allocation22 + $0x400] ss:$8 sps:$4 sm:$0xff]  }
 0x7f8   :  { %5053 = vmatpush1.bf16.msra.mxu1 %v6577_v25  ;;  %5013 = vmatprep.subr.bf16.mxu0 %v6582_v26  ;;  %v3357_v40 = vpack.c.bf16 %v3341_v16, %v3341_v16  ;;  %v6637_v24 = vld [vmem:[#allocation22 + $0x500] ss:$8 sps:$4 sm:$0xff]   ;;  %v6642_v25 = vld [vmem:[#allocation22 + $0x414] ss:$8 sps:$4 sm:$0xff]   ;;  %v6640_v30 = vld [vmem:[#allocation22 + $0x410] ss:$8 sps:$4 sm:$0xff]  }
 0x7f9   :  { %5031 = vmatprep.mubr.bf16.mxu0 %v3358_v33  ;;  %5072 = vmatprep.mubr.bf16.mxu1 %v3360_v34  ;;  %v3359_v11 = vpack.c.bf16 %v3343_v21, %v3343_v21  ;;  %v6645_v26 = vld [vmem:[#allocation22 + $0x514] ss:$8 sps:$4 sm:$0xff]   ;;  %v6643_v32 = vld [vmem:[#allocation22 + $0x510] ss:$8 sps:$4 sm:$0xff]   ;;  %v6651_v33 = vld [vmem:[#allocation22 + $0x524] ss:$8 sps:$4 sm:$0xff]  }
 0x7fa   :  { %5054 = vmatprep.subr.bf16.mxu1 %v6585_v41  ;;  %v6648_v41 = vld [vmem:[#allocation22 + $0x424] ss:$8 sps:$4 sm:$0xff]   ;;  %v6646_v34 = vld [vmem:[#allocation22 + $0x420] ss:$8 sps:$4 sm:$0xff]   ;;  %v6678_v5 = vld [vmem:[#allocation22 + $0x474] ss:$8 sps:$4 sm:$0xff]  }
 0x7fb   :  { %5014 = vmatpush1.bf16.msra.mxu0 %v6580_v35  ;;  %v6649_v35 = vld [vmem:[#allocation22 + $0x520] ss:$8 sps:$4 sm:$0xff]   ;;  %v6681_v8 = vld [vmem:[#allocation22 + $0x574] ss:$8 sps:$4 sm:$0xff]   ;;  %v6676_v13 = vld [vmem:[#allocation22 + $0x470] ss:$8 sps:$4 sm:$0xff]  }
 0x7fc   :  { %5055 = vmatpush1.bf16.msra.mxu1 %v6583_v38  ;;  %5015 = vmatprep.subr.bf16.mxu0 %v6588_v39  ;;  %v6654_v38 = vld [vmem:[#allocation22 + $0x434] ss:$8 sps:$4 sm:$0xff]   ;;  %v6684_v16 = vld [vmem:[#allocation22 + $0x484] ss:$8 sps:$4 sm:$0xff]   ;;  %v6685_v21 = vld [vmem:[#allocation22 + $0x580] ss:$8 sps:$4 sm:$0xff]  }
 0x7fd   :  { %5056 = vmatprep.subr.bf16.mxu1 %v6591_v28  ;;  %v6657_v39 = vld [vmem:[#allocation22 + $0x534] ss:$8 sps:$4 sm:$0xff]   ;;  %v6652_v28 = vld [vmem:[#allocation22 + $0x430] ss:$8 sps:$4 sm:$0xff]  }
 0x7ff   :  { %5016 = vmatpush1.bf16.msra.mxu0 %v6586_v29  ;;  %v6655_v29 = vld [vmem:[#allocation22 + $0x530] ss:$8 sps:$4 sm:$0xff]  }
 0x800   :  { %5057 = vmatpush1.bf16.msra.mxu1 %v6589_v42  ;;  %5017 = vmatprep.subr.bf16.mxu0 %v6594_v43  ;;  %v6660_v42 = vld [vmem:[#allocation22 + $0x444] ss:$8 sps:$4 sm:$0xff]  }
 0x801   :  { %5058 = vmatprep.subr.bf16.mxu1 %v6597_v44  ;;  %v6663_v43 = vld [vmem:[#allocation22 + $0x544] ss:$8 sps:$4 sm:$0xff]   ;;  %v6658_v44 = vld [vmem:[#allocation22 + $0x440] ss:$8 sps:$4 sm:$0xff]  }
 0x803   :  { %5018 = vmatpush1.bf16.msra.mxu0 %v6592_v55  ;;  %v6661_v55 = vld [vmem:[#allocation22 + $0x540] ss:$8 sps:$4 sm:$0xff]  }
 0x804   :  { %5059 = vmatpush1.bf16.msra.mxu1 %v6595_v45  ;;  %5019 = vmatprep.subr.bf16.mxu0 %v6600_v46  ;;  %v7701_v45 = vld [vmem:[%s7786_s17 + $0x8] sm:$0xff]  ;;  %v6666_v46 = vld [vmem:[#allocation22 + $0x454] ss:$8 sps:$4 sm:$0xff]  }
 0x805   :  { %5060 = vmatprep.subr.bf16.mxu1 %v6603_v47  ;;  %v6669_v47 = vld [vmem:[#allocation22 + $0x554] ss:$8 sps:$4 sm:$0xff]  }
 0x807   :  { %5020 = vmatpush1.bf16.msra.mxu0 %v6598_v56  ;;  %v1688_v56 = vrot.slane %v7701_v45, %v7583_v22 }
 0x808   :  { %5061 = vmatpush1.bf16.msra.mxu1 %v6601_v48  ;;  %5021 = vmatprep.subr.bf16.mxu0 %v6606_v49  ;;  %v6664_v48 = vld [vmem:[#allocation22 + $0x450] ss:$8 sps:$4 sm:$0xff]   ;;  %v1696_v49 = vrot.slane %v7701_v45, %v1663_v27  ;;  %v6673_v27 = vld [vmem:[#allocation22 + $0x560] ss:$8 sps:$4 sm:$0xff]  }
 0x809   :  { %5062 = vmatprep.subr.bf16.mxu1 %v6609_v50  ;;  %v6667_v50 = vld [vmem:[#allocation22 + $0x550] ss:$8 sps:$4 sm:$0xff]  }
 0x80b   :  { %5022 = vmatpush1.bf16.msra.mxu0 %v6604_v51  ;;  %v6672_v51 = vld [vmem:[#allocation22 + $0x464] ss:$8 sps:$4 sm:$0xff]  }
 0x80c   :  { %5063 = vmatpush1.bf16.msra.mxu1 %v6607_v52  ;;  %5023 = vmatprep.subr.bf16.mxu0 %v6612_v53  ;;  %v6675_v53 = vld [vmem:[#allocation22 + $0x564] ss:$8 sps:$4 sm:$0xff]  }
 0x80d   :  { %5064 = vmatprep.subr.bf16.mxu1 %v6615_v54 }
 0x80f   :  { %5024 = vmatpush1.bf16.msra.mxu0 %v6610_v57 }
 0x810   :  { %5065 = vmatpush1.bf16.msra.mxu1 %v6613_v59  ;;  %5025 = vmatprep.subr.bf16.mxu0 %v6618_v60 }
 0x811   :  { %5066 = vmatprep.subr.bf16.mxu1 %v6621_v62 }
 0x813   :  { %5026 = vmatpush1.bf16.msra.mxu0 %v6616_v63  ;;  %v6670_v63 = vld [vmem:[#allocation22 + $0x460] ss:$8 sps:$4 sm:$0xff]  }
 0x814   :  { %5067 = vmatpush1.bf16.msra.mxu1 %v6619_v3  ;;  %5027 = vmatprep.subr.bf16.mxu0 %v6624_v4 }
 0x815   :  { %5068 = vmatprep.subr.bf16.mxu1 %v6627_v6 }
 0x817   :  { %5028 = vmatpush1.bf16.msra.mxu0 %v6622_v7 }
 0x818   :  { %5069 = vmatpush1.bf16.msra.mxu1 %v6625_v9  ;;  %5029 = vmatprep.subr.bf16.mxu0 %v6630_v12 }
 0x819   :  { %5070 = vmatprep.subr.bf16.mxu1 %v6633_v14 }
 0x81b   :  { %5030 = vmatpush1.bf16.msra.mxu0 %v6628_v15  ;;  %v6679_v15 = vld [vmem:[#allocation22 + $0x570] ss:$8 sps:$4 sm:$0xff]  }
 0x81c   :  { %5071 = vmatpush1.bf16.msra.mxu1 %v6631_v31  ;;  %5081 = vmatprep.subr.bf16.mxu0 %v6636_v17  ;;  %v6687_v31 = vld [vmem:[#allocation22 + $0x584] ss:$8 sps:$4 sm:$0xff]   ;;  %v6682_v17 = vld [vmem:[#allocation22 + $0x480] ss:$8 sps:$4 sm:$0xff]  }
 0x81d   :  { %5122 = vmatprep.subr.bf16.mxu1 %v6639_v23  ;;  %v6690_v23 = vld [vmem:[#allocation22 + $0x494] ss:$8 sps:$4 sm:$0xff]  }
 0x81e   :  { %5032 = vmatmul.mubr.bf16.vlgmr.msra.gmra.mrb[32].mxu0 %v3357_v40  ;;  %v6688_v40 = vld [vmem:[#allocation22 + $0x490] ss:$8 sps:$4 sm:$0xff]  }
 0x81f   :  { %5073 = vmatmul.mubr.bf16.vlgmr.msra.gmra.mrb[32].mxu1 %v3359_v11  ;;  %5082 = vmatpush1.bf16.msra.mxu0 %v6634_v10  ;;  %v6693_v10 = vld [vmem:[#allocation22 + $0x594] ss:$8 sps:$4 sm:$0xff]   ;;  %v6699_v11 = vld [vmem:[#allocation22 + $0x5a4] ss:$8 sps:$4 sm:$0xff]  }
 0x820   :  { %5123 = vmatpush1.bf16.msra.mxu1 %v6637_v24  ;;  %5083 = vmatprep.subr.bf16.mxu0 %v6642_v25  ;;  %v6691_v24 = vld [vmem:[#allocation22 + $0x590] ss:$8 sps:$4 sm:$0xff]   ;;  %v6696_v25 = vld [vmem:[#allocation22 + $0x4a4] ss:$8 sps:$4 sm:$0xff]  }
 0x821   :  { %5124 = vmatprep.subr.bf16.mxu1 %v6645_v26  ;;  %v6694_v26 = vld [vmem:[#allocation22 + $0x4a0] ss:$8 sps:$4 sm:$0xff]  }
 0x823   :  { %5084 = vmatpush1.bf16.msra.mxu0 %v6640_v30  ;;  %v6697_v30 = vld [vmem:[#allocation22 + $0x5a0] ss:$8 sps:$4 sm:$0xff]  }
 0x824   :  { %5125 = vmatpush1.bf16.msra.mxu1 %v6643_v32  ;;  %5085 = vmatprep.subr.bf16.mxu0 %v6648_v41  ;;  %v6702_v32 = vld [vmem:[#allocation22 + $0x4b4] ss:$8 sps:$4 sm:$0xff]  }
 0x825   :  { %5126 = vmatprep.subr.bf16.mxu1 %v6651_v33  ;;  %v6705_v41 = vld [vmem:[#allocation22 + $0x5b4] ss:$8 sps:$4 sm:$0xff]   ;;  %v6700_v33 = vld [vmem:[#allocation22 + $0x4b0] ss:$8 sps:$4 sm:$0xff]  }
 0x827   :  { %5086 = vmatpush1.bf16.msra.mxu0 %v6646_v34  ;;  %v6703_v34 = vld [vmem:[#allocation22 + $0x5b0] ss:$8 sps:$4 sm:$0xff]  }
 0x828   :  { %5127 = vmatpush1.bf16.msra.mxu1 %v6649_v35  ;;  %5087 = vmatprep.subr.bf16.mxu0 %v6654_v38  ;;  %v6708_v35 = vld [vmem:[#allocation22 + $0x4c4] ss:$8 sps:$4 sm:$0xff]  }
 0x829   :  { %5128 = vmatprep.subr.bf16.mxu1 %v6657_v39  ;;  %v6711_v38 = vld [vmem:[#allocation22 + $0x5c4] ss:$8 sps:$4 sm:$0xff]   ;;  %v6706_v39 = vld [vmem:[#allocation22 + $0x4c0] ss:$8 sps:$4 sm:$0xff]  }
 0x82b   :  { %5088 = vmatpush1.bf16.msra.mxu0 %v6652_v28  ;;  %v6709_v28 = vld [vmem:[#allocation22 + $0x5c0] ss:$8 sps:$4 sm:$0xff]  }
 0x82c   :  { %5129 = vmatpush1.bf16.msra.mxu1 %v6655_v29  ;;  %5089 = vmatprep.subr.bf16.mxu0 %v6660_v42  ;;  %v6714_v29 = vld [vmem:[#allocation22 + $0x4d4] ss:$8 sps:$4 sm:$0xff]  }
 0x82d   :  { %5130 = vmatprep.subr.bf16.mxu1 %v6663_v43  ;;  %v6717_v42 = vld [vmem:[#allocation22 + $0x5d4] ss:$8 sps:$4 sm:$0xff]   ;;  %v6712_v43 = vld [vmem:[#allocation22 + $0x4d0] ss:$8 sps:$4 sm:$0xff]  }
 0x82f   :  { %5090 = vmatpush1.bf16.msra.mxu0 %v6658_v44  ;;  %v1684_v44 = vrot.slane %v7701_v45, %v7577_v20 }
 0x830   :  { %5131 = vmatpush1.bf16.msra.mxu1 %v6661_v55  ;;  %5091 = vmatprep.subr.bf16.mxu0 %v6666_v46  ;;  %v6715_v55 = vld [vmem:[#allocation22 + $0x5d0] ss:$8 sps:$4 sm:$0xff]   ;;  %v6720_v46 = vld [vmem:[#allocation22 + $0x4e4] ss:$8 sps:$4 sm:$0xff]  }
 0x831   :  { %v7708_v52 = vpop.f32.mrb[20].mxu0  ;;  %5132 = vmatprep.subr.bf16.mxu1 %v6669_v47  ;;  %v1692_v47 = vrot.slane %v7701_v45, %v1659_v18  ;;  %v6727_v18 = vld [vmem:[#allocation22 + $0x5f0] ss:$8 sps:$4 sm:$0xff]  }
 0x832   :  { %v7710_v54 = vpop.f32.mrb[20].mxu1  ;;  %v3209_v57 = vpop.f32.mrb[21].mxu0 }
 0x833   :  { %v3210_v59 = vadd.f32 %v3209_v57, %v1688_v56  ;;  %v3250_v60 = vpop.f32.mrb[21].mxu1  ;;  %v3211_v62 = vpop.f32.mrb[22].mxu0  ;;  %5092 = vmatpush1.bf16.msra.mxu0 %v6664_v48  ;;  %v6723_v56 = vld [vmem:[#allocation22 + $0x5e4] ss:$8 sps:$4 sm:$0xff]   ;;  %v6718_v48 = vld [vmem:[#allocation22 + $0x4e0] ss:$8 sps:$4 sm:$0xff]  }
 0x834   :  { %v3251_v2 = vadd.f32 %v3250_v60, %v1696_v49  ;;  %v3252_v3 = vpop.f32.mrb[22].mxu1  ;;  %5133 = vmatpush1.bf16.msra.mxu1 %v6667_v50  ;;  %v3212_v4 = vpop.f32.mrb[23].mxu0  ;;  %5093 = vmatprep.subr.bf16.mxu0 %v6672_v51  ;;  %v3208_v49 = vadd.f32 %v7708_v52, %v1684_v44  ;;  %v6721_v50 = vld [vmem:[#allocation22 + $0x5e0] ss:$8 sps:$4 sm:$0xff]   ;;  %v6726_v51 = vld [vmem:[#allocation22 + $0x4f4] ss:$8 sps:$4 sm:$0xff]  }
 0x835   :  { %v3346_v6 = vmax.f32 %v3210_v59, 0.0  ;;  %v3253_v7 = vpop.f32.mrb[23].mxu1  ;;  %5134 = vmatprep.subr.bf16.mxu1 %v6675_v53  ;;  %v3249_v53 = vadd.f32 %v7710_v54, %v1692_v47  ;;  %v6729_v57 = vld [vmem:[#allocation22 + $0x5f4] ss:$8 sps:$4 sm:$0xff]   ;;  %v6724_v59 = vld [vmem:[#allocation22 + $0x4f0] ss:$8 sps:$4 sm:$0xff]  }
 0x836   :  { %v3348_v9 = vmax.f32 %v3251_v2, 0.0  ;;  %v3345_v60 = vmax.f32 %v3208_v49, 0.0  ;;  %v6732_v62 = vld [vmem:[#allocation22 + $0x604] ss:$8 sps:$4 sm:$0xff]   ;;  %v6730_v52 = vld [vmem:[#allocation22 + $0x600] ss:$8 sps:$4 sm:$0xff]  }
 0x837   :  { %v3362_v12 = vpack.c.bf16 %v3346_v6, %v3346_v6  ;;  %5094 = vmatpush1.bf16.msra.mxu0 %v6670_v63  ;;  %v3347_v63 = vmax.f32 %v3249_v53, 0.0  ;;  %v6735_v2 = vld [vmem:[#allocation22 + $0x704] ss:$8 sps:$4 sm:$0xff]   ;;  %v6733_v4 = vld [vmem:[#allocation22 + $0x700] ss:$8 sps:$4 sm:$0xff]  }
 0x838   :  { %v3364_v14 = vpack.c.bf16 %v3348_v9, %v3348_v9  ;;  %5135 = vmatpush1.bf16.msra.mxu1 %v6673_v27  ;;  %5095 = vmatprep.subr.bf16.mxu0 %v6678_v5  ;;  %v3361_v3 = vpack.c.bf16 %v3345_v60, %v3345_v60  ;;  %v6738_v27 = vld [vmem:[#allocation22 + $0x614] ss:$8 sps:$4 sm:$0xff]   ;;  %v6736_v6 = vld [vmem:[#allocation22 + $0x610] ss:$8 sps:$4 sm:$0xff]   ;;  %v6747_v9 = vld [vmem:[#allocation22 + $0x724] ss:$8 sps:$4 sm:$0xff]  }
 0x839   :  { %5113 = vmatprep.mubr.bf16.mxu0 %v3362_v12  ;;  %5136 = vmatprep.subr.bf16.mxu1 %v6681_v8  ;;  %v3363_v54 = vpack.c.bf16 %v3347_v63, %v3347_v63  ;;  %v6741_v5 = vld [vmem:[#allocation22 + $0x714] ss:$8 sps:$4 sm:$0xff]   ;;  %v6739_v7 = vld [vmem:[#allocation22 + $0x710] ss:$8 sps:$4 sm:$0xff]   ;;  %v6744_v8 = vld [vmem:[#allocation22 + $0x624] ss:$8 sps:$4 sm:$0xff]  }
 0x83a   :  { %5154 = vmatprep.mubr.bf16.mxu1 %v3364_v14  ;;  %v6742_v12 = vld [vmem:[#allocation22 + $0x620] ss:$8 sps:$4 sm:$0xff]   ;;  %v6750_v14 = vld [vmem:[#allocation22 + $0x634] ss:$8 sps:$4 sm:$0xff]   ;;  %v6772_v49 = vld [vmem:[#allocation22 + $0x670] ss:$8 sps:$4 sm:$0xff]  }
 0x83b   :  { %5096 = vmatpush1.bf16.msra.mxu0 %v6676_v13  ;;  %v6745_v13 = vld [vmem:[#allocation22 + $0x720] ss:$8 sps:$4 sm:$0xff]   ;;  %v6774_v44 = vld [vmem:[#allocation22 + $0x674] ss:$8 sps:$4 sm:$0xff]   ;;  %v6780_v53 = vld [vmem:[#allocation22 + $0x684] ss:$8 sps:$4 sm:$0xff]  }
 0x83c   :  { %5137 = vmatpush1.bf16.msra.mxu1 %v6679_v15  ;;  %5097 = vmatprep.subr.bf16.mxu0 %v6684_v16  ;;  %v6753_v15 = vld [vmem:[#allocation22 + $0x734] ss:$8 sps:$4 sm:$0xff]   ;;  %v6748_v16 = vld [vmem:[#allocation22 + $0x630] ss:$8 sps:$4 sm:$0xff]   ;;  %v6781_v60 = vld [vmem:[#allocation22 + $0x780] ss:$8 sps:$4 sm:$0xff]  }
 0x83d   :  { %5138 = vmatprep.subr.bf16.mxu1 %v6687_v31  ;;  %v6751_v31 = vld [vmem:[#allocation22 + $0x730] ss:$8 sps:$4 sm:$0xff]   ;;  %v6777_v47 = vld [vmem:[#allocation22 + $0x774] ss:$8 sps:$4 sm:$0xff]  }
 0x83e   :  { %v6784_v63 = vld [vmem:[#allocation22 + $0x690] ss:$8 sps:$4 sm:$0xff]  }
 0x83f   :  { %5098 = vmatpush1.bf16.msra.mxu0 %v6682_v17  ;;  %v6756_v17 = vld [vmem:[#allocation22 + $0x644] ss:$8 sps:$4 sm:$0xff]  }
 0x840   :  { %5139 = vmatpush1.bf16.msra.mxu1 %v6685_v21  ;;  %5099 = vmatprep.subr.bf16.mxu0 %v6690_v23  ;;  %v6759_v21 = vld [vmem:[#allocation22 + $0x744] ss:$8 sps:$4 sm:$0xff]   ;;  %v6754_v23 = vld [vmem:[#allocation22 + $0x640] ss:$8 sps:$4 sm:$0xff]  }
 0x841   :  { %5140 = vmatprep.subr.bf16.mxu1 %v6693_v10  ;;  %v6757_v10 = vld [vmem:[#allocation22 + $0x740] ss:$8 sps:$4 sm:$0xff]  }
 0x843   :  { %5100 = vmatpush1.bf16.msra.mxu0 %v6688_v40  ;;  %v6762_v40 = vld [vmem:[#allocation22 + $0x654] ss:$8 sps:$4 sm:$0xff]  }
 0x844   :  { %5141 = vmatpush1.bf16.msra.mxu1 %v6691_v24  ;;  %5101 = vmatprep.subr.bf16.mxu0 %v6696_v25  ;;  %v6765_v24 = vld [vmem:[#allocation22 + $0x754] ss:$8 sps:$4 sm:$0xff]   ;;  %v1704_v25 = vrot.slane %v7701_v45, %v1671_v0  ;;  %v6766_v0 = vld [vmem:[#allocation22 + $0x660] ss:$8 sps:$4 sm:$0xff]  }
 0x845   :  { %5142 = vmatprep.subr.bf16.mxu1 %v6699_v11  ;;  %v6760_v11 = vld [vmem:[#allocation22 + $0x650] ss:$8 sps:$4 sm:$0xff]  }
 0x847   :  { %5102 = vmatpush1.bf16.msra.mxu0 %v6694_v26  ;;  %v1712_v26 = vrot.slane %v7701_v45, %v1679_v1  ;;  %v6769_v1 = vld [vmem:[#allocation22 + $0x760] ss:$8 sps:$4 sm:$0xff]  }
 0x848   :  { %5143 = vmatpush1.bf16.msra.mxu1 %v6697_v30  ;;  %5103 = vmatprep.subr.bf16.mxu0 %v6702_v32  ;;  %v6763_v30 = vld [vmem:[#allocation22 + $0x750] ss:$8 sps:$4 sm:$0xff]   ;;  %v6768_v32 = vld [vmem:[#allocation22 + $0x664] ss:$8 sps:$4 sm:$0xff]  }
 0x849   :  { %5144 = vmatprep.subr.bf16.mxu1 %v6705_v41 }
 0x84b   :  { %5104 = vmatpush1.bf16.msra.mxu0 %v6700_v33  ;;  %v6771_v33 = vld [vmem:[#allocation22 + $0x764] ss:$8 sps:$4 sm:$0xff]  }
 0x84c   :  { %5145 = vmatpush1.bf16.msra.mxu1 %v6703_v34  ;;  %5105 = vmatprep.subr.bf16.mxu0 %v6708_v35 }
 0x84d   :  { %5146 = vmatprep.subr.bf16.mxu1 %v6711_v38 }
 0x84f   :  { %5106 = vmatpush1.bf16.msra.mxu0 %v6706_v39 }
 0x850   :  { %5147 = vmatpush1.bf16.msra.mxu1 %v6709_v28  ;;  %5107 = vmatprep.subr.bf16.mxu0 %v6714_v29 }
 0x851   :  { %5148 = vmatprep.subr.bf16.mxu1 %v6717_v42 }
 0x853   :  { %5108 = vmatpush1.bf16.msra.mxu0 %v6712_v43 }
 0x854   :  { %5149 = vmatpush1.bf16.msra.mxu1 %v6715_v55  ;;  %5109 = vmatprep.subr.bf16.mxu0 %v6720_v46 }
 0x855   :  { %5150 = vmatprep.subr.bf16.mxu1 %v6723_v56 }
 0x857   :  { %5110 = vmatpush1.bf16.msra.mxu0 %v6718_v48 }
 0x858   :  { %5151 = vmatpush1.bf16.msra.mxu1 %v6721_v50  ;;  %5111 = vmatprep.subr.bf16.mxu0 %v6726_v51  ;;  %v6775_v51 = vld [vmem:[#allocation22 + $0x770] ss:$8 sps:$4 sm:$0xff]  }
 0x859   :  { %5152 = vmatprep.subr.bf16.mxu1 %v6729_v57  ;;  %v6783_v57 = vld [vmem:[#allocation22 + $0x784] ss:$8 sps:$4 sm:$0xff]  }
 0x85b   :  { %5112 = vmatpush1.bf16.msra.mxu0 %v6724_v59  ;;  %v6778_v59 = vld [vmem:[#allocation22 + $0x680] ss:$8 sps:$4 sm:$0xff]  }
 0x85c   :  { %5153 = vmatpush1.bf16.msra.mxu1 %v6727_v18  ;;  %5163 = vmatprep.subr.bf16.mxu0 %v6732_v62  ;;  %v6786_v18 = vld [vmem:[#allocation22 + $0x694] ss:$8 sps:$4 sm:$0xff]  }
 0x85d   :  { %5204 = vmatprep.subr.bf16.mxu1 %v6735_v2  ;;  %v6789_v62 = vld [vmem:[#allocation22 + $0x794] ss:$8 sps:$4 sm:$0xff]   ;;  %v6787_v2 = vld [vmem:[#allocation22 + $0x790] ss:$8 sps:$4 sm:$0xff]  }
 0x85e   :  { %5114 = vmatmul.mubr.bf16.vlgmr.msra.gmra.mrb[36].mxu0 %v3361_v3  ;;  %v6795_v3 = vld [vmem:[#allocation22 + $0x7a4] ss:$8 sps:$4 sm:$0xff]  }
 0x85f   :  { %5155 = vmatmul.mubr.bf16.vlgmr.msra.gmra.mrb[36].mxu1 %v3363_v54  ;;  %5164 = vmatpush1.bf16.msra.mxu0 %v6730_v52  ;;  %v6792_v52 = vld [vmem:[#allocation22 + $0x6a4] ss:$8 sps:$4 sm:$0xff]   ;;  %v6798_v54 = vld [vmem:[#allocation22 + $0x6b4] ss:$8 sps:$4 sm:$0xff]  }
 0x860   :  { %5205 = vmatpush1.bf16.msra.mxu1 %v6733_v4  ;;  %5165 = vmatprep.subr.bf16.mxu0 %v6738_v27  ;;  %v6790_v4 = vld [vmem:[#allocation22 + $0x6a0] ss:$8 sps:$4 sm:$0xff]  }
 0x861   :  { %5206 = vmatprep.subr.bf16.mxu1 %v6741_v5  ;;  %v6793_v27 = vld [vmem:[#allocation22 + $0x7a0] ss:$8 sps:$4 sm:$0xff]   ;;  %v6801_v5 = vld [vmem:[#allocation22 + $0x7b4] ss:$8 sps:$4 sm:$0xff]  }
 0x863   :  { %5166 = vmatpush1.bf16.msra.mxu0 %v6736_v6  ;;  %v6796_v6 = vld [vmem:[#allocation22 + $0x6b0] ss:$8 sps:$4 sm:$0xff]  }
 0x864   :  { %5207 = vmatpush1.bf16.msra.mxu1 %v6739_v7  ;;  %5167 = vmatprep.subr.bf16.mxu0 %v6744_v8  ;;  %v6799_v7 = vld [vmem:[#allocation22 + $0x7b0] ss:$8 sps:$4 sm:$0xff]   ;;  %v6804_v8 = vld [vmem:[#allocation22 + $0x6c4] ss:$8 sps:$4 sm:$0xff]  }
 0x865   :  { %5208 = vmatprep.subr.bf16.mxu1 %v6747_v9  ;;  %v6807_v9 = vld [vmem:[#allocation22 + $0x7c4] ss:$8 sps:$4 sm:$0xff]  }
 0x867   :  { %5168 = vmatpush1.bf16.msra.mxu0 %v6742_v12  ;;  %v6802_v12 = vld [vmem:[#allocation22 + $0x6c0] ss:$8 sps:$4 sm:$0xff]  }
 0x868   :  { %5209 = vmatpush1.bf16.msra.mxu1 %v6745_v13  ;;  %5169 = vmatprep.subr.bf16.mxu0 %v6750_v14  ;;  %v6805_v13 = vld [vmem:[#allocation22 + $0x7c0] ss:$8 sps:$4 sm:$0xff]   ;;  %v6810_v14 = vld [vmem:[#allocation22 + $0x6d4] ss:$8 sps:$4 sm:$0xff]  }
 0x869   :  { %5210 = vmatprep.subr.bf16.mxu1 %v6753_v15  ;;  %v6813_v15 = vld [vmem:[#allocation22 + $0x7d4] ss:$8 sps:$4 sm:$0xff]  }
 0x86b   :  { %5170 = vmatpush1.bf16.msra.mxu0 %v6748_v16  ;;  %v6808_v16 = vld [vmem:[#allocation22 + $0x6d0] ss:$8 sps:$4 sm:$0xff]  }
 0x86c   :  { %5211 = vmatpush1.bf16.msra.mxu1 %v6751_v31  ;;  %5171 = vmatprep.subr.bf16.mxu0 %v6756_v17  ;;  %v1700_v31 = vrot.slane %v7701_v45, %v1667_v58  ;;  %v6811_v17 = vld [vmem:[#allocation22 + $0x7d0] ss:$8 sps:$4 sm:$0xff]  }
 0x86d   :  { %5212 = vmatprep.subr.bf16.mxu1 %v6759_v21  ;;  %v6816_v21 = vld [vmem:[#allocation22 + $0x6e4] ss:$8 sps:$4 sm:$0xff]  }
 0x86f   :  { %5172 = vmatpush1.bf16.msra.mxu0 %v6754_v23  ;;  %v1708_v23 = vrot.slane %v7701_v45, %v1675_v61 }
 0x870   :  { %5213 = vmatpush1.bf16.msra.mxu1 %v6757_v10  ;;  %5173 = vmatprep.subr.bf16.mxu0 %v6762_v40  ;;  %v6819_v10 = vld [vmem:[#allocation22 + $0x7e4] ss:$8 sps:$4 sm:$0xff]   ;;  %v6814_v40 = vld [vmem:[#allocation22 + $0x6e0] ss:$8 sps:$4 sm:$0xff]  }
 0x871   :  { %v7725_v41 = vpop.f32.mrb[24].mxu0  ;;  %5214 = vmatprep.subr.bf16.mxu1 %v6765_v24 }
 0x872   :  { %v7727_v34 = vpop.f32.mrb[24].mxu1  ;;  %v3291_v35 = vpop.f32.mrb[25].mxu0  ;;  %v3290_v24 = vadd.f32 %v7725_v41, %v1700_v31 }
 0x873   :  { %v3292_v38 = vadd.f32 %v3291_v35, %v1704_v25  ;;  %v3332_v39 = vpop.f32.mrb[25].mxu1  ;;  %v3293_v28 = vpop.f32.mrb[26].mxu0  ;;  %5174 = vmatpush1.bf16.msra.mxu0 %v6760_v11  ;;  %v6817_v25 = vld [vmem:[#allocation22 + $0x7e0] ss:$8 sps:$4 sm:$0xff]   ;;  %v6822_v11 = vld [vmem:[#allocation22 + $0x6f4] ss:$8 sps:$4 sm:$0xff]   ;;  %v3331_v58 = vadd.f32 %v7727_v34, %v1708_v23 }
 0x874   :  { %v3333_v29 = vadd.f32 %v3332_v39, %v1712_v26  ;;  %v3334_v42 = vpop.f32.mrb[26].mxu1  ;;  %5215 = vmatpush1.bf16.msra.mxu1 %v6763_v30  ;;  %v3294_v43 = vpop.f32.mrb[27].mxu0  ;;  %5175 = vmatprep.subr.bf16.mxu0 %v6768_v32  ;;  %v6825_v26 = vld [vmem:[#allocation22 + $0x7f4] ss:$8 sps:$4 sm:$0xff]   ;;  %v6820_v30 = vld [vmem:[#allocation22 + $0x6f0] ss:$8 sps:$4 sm:$0xff]  }
 0x875   :  { %v3350_v55 = vmax.f32 %v3292_v38, 0.0  ;;  %v3335_v46 = vpop.f32.mrb[27].mxu1  ;;  %5216 = vmatprep.subr.bf16.mxu1 %v6771_v33  ;;  %v3349_v32 = vmax.f32 %v3290_v24, 0.0  ;;  %v3351_v61 = vmax.f32 %v3331_v58, 0.0  ;;  %v3625_v33 = vld [vmem:[%s7788_s19] sm:$0x3] }
 0x876   :  { %v3352_v56 = vmax.f32 %v3333_v29, 0.0  ;;  %v3630_v34 = vrot.slane %v3625_v33, %v7577_v20  ;;  %v3634_v35 = vrot.slane %v3625_v33, %v7583_v22 }
 0x877   :  { %v3366_v48 = vpack.c.bf16 %v3350_v55, %v3350_v55  ;;  %5176 = vmatpush1.bf16.msra.mxu0 %v6766_v0  ;;  %v3365_v45 = vpack.c.bf16 %v3349_v32, %v3349_v32  ;;  %v3367_v41 = vpack.c.bf16 %v3351_v61, %v3351_v61  ;;  %v6827_v32 = vld [vmem:[#allocation23] sm:$0xff]   ;;  %v6829_v61 = vld [vmem:[#allocation23 + $0x8] sm:$0xff]  }
 0x878   :  { %v3368_v50 = vpack.c.bf16 %v3352_v56, %v3352_v56  ;;  %5217 = vmatpush1.bf16.msra.mxu1 %v6769_v1  ;;  %5177 = vmatprep.subr.bf16.mxu0 %v6774_v44 }
 0x879   :  { %5195 = vmatprep.mubr.bf16.mxu0 %v3366_v48  ;;  %5218 = vmatprep.subr.bf16.mxu1 %v6777_v47 }
 0x87a   :  { %5236 = vmatprep.mubr.bf16.mxu1 %v3368_v50 }
 0x87b   :  { %5178 = vmatpush1.bf16.msra.mxu0 %v6772_v49 }
 0x87c   :  { %5219 = vmatpush1.bf16.msra.mxu1 %v6775_v51  ;;  %5179 = vmatprep.subr.bf16.mxu0 %v6780_v53 }
 0x87d   :  { %5220 = vmatprep.subr.bf16.mxu1 %v6783_v57 }
 0x87f   :  { %5180 = vmatpush1.bf16.msra.mxu0 %v6778_v59 }
 0x880   :  { %5221 = vmatpush1.bf16.msra.mxu1 %v6781_v60  ;;  %5181 = vmatprep.subr.bf16.mxu0 %v6786_v18 }
 0x881   :  { %5222 = vmatprep.subr.bf16.mxu1 %v6789_v62 }
 0x883   :  { %5182 = vmatpush1.bf16.msra.mxu0 %v6784_v63 }
 0x884   :  { %5223 = vmatpush1.bf16.msra.mxu1 %v6787_v2  ;;  %5183 = vmatprep.subr.bf16.mxu0 %v6792_v52 }
 0x885   :  { %5224 = vmatprep.subr.bf16.mxu1 %v6795_v3 }
 0x887   :  { %5184 = vmatpush1.bf16.msra.mxu0 %v6790_v4 }
 0x888   :  { %5225 = vmatpush1.bf16.msra.mxu1 %v6793_v27  ;;  %5185 = vmatprep.subr.bf16.mxu0 %v6798_v54 }
 0x889   :  { %5226 = vmatprep.subr.bf16.mxu1 %v6801_v5 }
 0x88b   :  { %5186 = vmatpush1.bf16.msra.mxu0 %v6796_v6 }
 0x88c   :  { %5227 = vmatpush1.bf16.msra.mxu1 %v6799_v7  ;;  %5187 = vmatprep.subr.bf16.mxu0 %v6804_v8 }
 0x88d   :  { %5228 = vmatprep.subr.bf16.mxu1 %v6807_v9 }
 0x88f   :  { %5188 = vmatpush1.bf16.msra.mxu0 %v6802_v12 }
 0x890   :  { %5229 = vmatpush1.bf16.msra.mxu1 %v6805_v13  ;;  %5189 = vmatprep.subr.bf16.mxu0 %v6810_v14 }
 0x891   :  { %5230 = vmatprep.subr.bf16.mxu1 %v6813_v15 }
 0x893   :  { %5190 = vmatpush1.bf16.msra.mxu0 %v6808_v16 }
 0x894   :  { %5231 = vmatpush1.bf16.msra.mxu1 %v6811_v17  ;;  %5191 = vmatprep.subr.bf16.mxu0 %v6816_v21 }
 0x895   :  { %5232 = vmatprep.subr.bf16.mxu1 %v6819_v10 }
 0x897   :  { %5192 = vmatpush1.bf16.msra.mxu0 %v6814_v40 }
 0x898   :  { %5233 = vmatpush1.bf16.msra.mxu1 %v6817_v25  ;;  %5193 = vmatprep.subr.bf16.mxu0 %v6822_v11 }
 0x899   :  { %5234 = vmatprep.subr.bf16.mxu1 %v6825_v26 }
 0x89b   :  { %5194 = vmatpush1.bf16.msra.mxu0 %v6820_v30  ;;  %v6826_v30 = vld [vmem:[#allocation23 + $0x40] sm:$0xff]  }
 0x89c   :  { %5235 = vmatpush1.bf16.msra.mxu1 %v6823_v19  ;;  %v6828_v19 = vld [vmem:[#allocation23 + $0x48] sm:$0xff]   ;;  %6170 = vmatprep.subr.bf16.mxu0 %v6826_v30 }
 0x89e   :  { %5196 = vmatmul.mubr.bf16.vlgmr.msra.gmra.mrb[40].mxu0 %v3365_v45 }
 0x89f   :  { %5237 = vmatmul.mubr.bf16.vlgmr.msra.gmra.mrb[40].mxu1 %v3367_v41  ;;  %6171 = vmatpush3.bf16.msra.mxu0 %v6827_v32 }
 0x8a0   :  { %6172 = vmatprep.subr.bf16.mxu0 %v6828_v19 }
 0x8a3   :  { %6173 = vmatpush3.bf16.msra.mxu0 %v6829_v61 }
 0x8b1   :  { %v4951_v38 = vpop.f32.mrb[28].mxu0 }
 0x8b2   :  { %v4952_v39 = vadd.f32 %v4951_v38, %v3630_v34  ;;  %v4992_v28 = vpop.f32.mrb[28].mxu1  ;;  %v4953_v0 = vpop.f32.mrb[29].mxu0 }
 0x8b3   :  { %v4954_v29 = vadd.f32 %v4953_v0, %v3634_v35  ;;  %v4994_v42 = vpop.f32.mrb[29].mxu1  ;;  %v4955_v43 = vpop.f32.mrb[30].mxu0  ;;  %v6833_v0 = vld [vmem:[#allocation23 + $0x18] sm:$0xff]  }
 0x8b4   :  { %v4993_v1 = vadd.f32 %v4992_v28, %v4952_v39  ;;  %v4996_v44 = vpop.f32.mrb[30].mxu1  ;;  %v4956_v55 = vpop.f32.mrb[31].mxu0  ;;  %v6832_v28 = vld [vmem:[#allocation23 + $0x58] sm:$0xff]   ;;  %v6836_v43 = vld [vmem:[#allocation23 + $0x68] sm:$0xff]  }
 0x8b5   :  { %v4995_v46 = vadd.f32 %v4994_v42, %v4954_v29  ;;  %v4997_v47 = vpop.f32.mrb[31].mxu1  ;;  %v6834_v29 = vld [vmem:[#allocation23 + $0x60] sm:$0xff]   ;;  %v6838_v44 = vld [vmem:[#allocation23 + $0x70] sm:$0xff]  }
 0x8b6   :  { %v6835_v42 = vld [vmem:[#allocation23 + $0x20] sm:$0xff]   ;;  %v6839_v55 = vld [vmem:[#allocation23 + $0x30] sm:$0xff]   ;;  %v6841_v47 = vld [vmem:[#allocation23 + $0x38] sm:$0xff]  }
 0x8f1   :  { %v5033_v56 = vpop.f32.mrb[32].mxu0 }
 0x8f2   :  { %v5034_v48 = vadd.f32 %v5033_v56, %v4993_v1  ;;  %v5074_v49 = vpop.f32.mrb[32].mxu1  ;;  %v5035_v50 = vpop.f32.mrb[33].mxu0  ;;  %v6837_v1 = vld [vmem:[#allocation23 + $0x28] sm:$0xff]  }
 0x8f3   :  { %v5036_v51 = vadd.f32 %v5035_v50, %v4995_v46  ;;  %v5076_v53 = vpop.f32.mrb[33].mxu1  ;;  %v5037_v57 = vpop.f32.mrb[34].mxu0  ;;  %v6840_v46 = vld [vmem:[#allocation23 + $0x78] sm:$0xff]  }
 0x8f4   :  { %v5075_v59 = vadd.f32 %v5074_v49, %v5034_v48  ;;  %v5078_v60 = vpop.f32.mrb[34].mxu1  ;;  %v5038_v18 = vpop.f32.mrb[35].mxu0  ;;  %v5263_v50 = vld [vmem:[%s7789_s20] sm:$0x3] }
 0x8f5   :  { %v5077_v62 = vadd.f32 %v5076_v53, %v5036_v51  ;;  %v5079_v63 = vpop.f32.mrb[35].mxu1  ;;  %v5277_v51 = vld [vmem:[%s7790_s21] sm:$0x3]  ;;  %v5268_v53 = vrot.slane %v5263_v50, %v7577_v20  ;;  %v5272_v57 = vrot.slane %v5263_v50, %v7583_v22 }
 0x8f6   :  { %v5286_v63 = vrot.slane %v5277_v51, %v7583_v22 }
 0x931   :  { %v5115_v2 = vpop.f32.mrb[36].mxu0 }
 0x932   :  { %v5116_v52 = vadd.f32 %v5115_v2, %v5075_v59  ;;  %v5156_v3 = vpop.f32.mrb[36].mxu1  ;;  %v5117_v4 = vpop.f32.mrb[37].mxu0 }
 0x933   :  { %v5118_v27 = vadd.f32 %v5117_v4, %v5077_v62  ;;  %v5158_v54 = vpop.f32.mrb[37].mxu1  ;;  %v5119_v5 = vpop.f32.mrb[38].mxu0  ;;  %v5282_v62 = vrot.slane %v5277_v51, %v7577_v20 }
 0x934   :  { %v5157_v6 = vadd.f32 %v5156_v3, %v5116_v52  ;;  %v5160_v7 = vpop.f32.mrb[38].mxu1  ;;  %v5120_v8 = vpop.f32.mrb[39].mxu0 }
 0x935   :  { %v5159_v9 = vadd.f32 %v5158_v54, %v5118_v27  ;;  %v5161_v12 = vpop.f32.mrb[39].mxu1 }
 0x971   :  { %v5197_v13 = vpop.f32.mrb[40].mxu0 }
 0x972   :  { %v5198_v14 = vadd.f32 %v5197_v13, %v5157_v6  ;;  %v5238_v15 = vpop.f32.mrb[40].mxu1  ;;  %v5199_v16 = vpop.f32.mrb[41].mxu0  ;;  %v6126_v6 = vld [vmem:[%s7792_s23] ss:$0 sm:$0xff] }
 0x973   :  { %v5200_v31 = vadd.f32 %v5199_v16, %v5159_v9  ;;  %v5240_v17 = vpop.f32.mrb[41].mxu1  ;;  %v5201_v21 = vpop.f32.mrb[42].mxu0 }
 0x974   :  { %v5239_v23 = vadd.f32 %v5238_v15, %v5198_v14  ;;  %v5242_v10 = vpop.f32.mrb[42].mxu1  ;;  %v5202_v40 = vpop.f32.mrb[43].mxu0 }
 0x975   :  { %v5241_v24 = vadd.f32 %v5240_v17, %v5200_v31  ;;  %v5243_v25 = vpop.f32.mrb[43].mxu1 }
 0x976   :  { %v5245_v11 = vadd.f32 %v5239_v23, %v7625_v36  ;;  %v6830_v36 = vld [vmem:[#allocation23 + $0x50] sm:$0xff]  }
 0x977   :  { %v5246_v58 = vadd.f32 %v5241_v24, %v7627_v37  ;;  %v6831_v37 = vld [vmem:[#allocation23 + $0x10] sm:$0xff]   ;;  %6174 = vmatprep.subr.bf16.mxu0 %v6830_v36 }
 0x978   :  { %6175 = vmatpush3.bf16.msra.mxu0 %v6831_v37 }
 0x979   :  { %v5247_v26 = vadd.f32 %v5246_v58, %v5245_v11  ;;  %6176 = vmatprep.subr.bf16.mxu0 %v6832_v28 }
 0x97b   :  { %5248 = vadd.xlane.f32.xlu1 %v5247_v26 }
 0x97c   :  { %6177 = vmatpush3.bf16.msra.mxu0 %v6833_v0 }
 0x97d   :  { %6178 = vmatprep.subr.bf16.mxu0 %v6834_v29 }
 0x980   :  { %6179 = vmatpush3.bf16.msra.mxu0 %v6835_v42 }
 0x981   :  { %6180 = vmatprep.subr.bf16.mxu0 %v6836_v43 }
 0x984   :  { %6181 = vmatpush3.bf16.msra.mxu0 %v6837_v1 }
 0x985   :  { %6182 = vmatprep.subr.bf16.mxu0 %v6838_v44 }
 0x988   :  { %6183 = vmatpush3.bf16.msra.mxu0 %v6839_v55 }
 0x989   :  { %6184 = vmatprep.subr.bf16.mxu0 %v6840_v46 }
 0x98c   :  { %6185 = vmatpush3.bf16.msra.mxu0 %v6841_v47 }
 0xa08   :  { %v5249_v45 = vpop.xlane.xlu1 %5248 }
 0xa09   :  { %v5250_v41 = vmul.f32 0.00390625, %v5249_v45 }
 0xa0b   :  { %v5251_v33 = vsub.f32 %v5245_v11, %v5250_v41  ;;  %v5252_v34 = vsub.f32 %v5246_v58, %v5250_v41 }
 0xa0d   :  { %v5253_v35 = vmul.f32 %v5251_v33, %v5251_v33  ;;  %v5254_v38 = vmul.f32 %v5252_v34, %v5252_v34 }
 0xa0f   :  { %v5255_v39 = vadd.f32 %v5254_v38, %v5253_v35 }
 0xa11   :  { %5256 = vadd.xlane.f32.xlu1 %v5255_v39 }
 0xa9e   :  { %v5257_v56 = vpop.xlane.xlu1 %5256 }
 0xa9f   :  { %v5258_v48 = vmul.f32 0.00390625, %v5257_v56 }
 0xaa1   :  { %v5259_v49 = vadd.f32 1e-05, %v5258_v48 }
 0xaa3   :  { %6844 = vrsqrt.f32 %v5259_v49 }
 0xaad   :  { %v6845_v59 = vpop.eup %6844 }
 0xaae   :  { %v5261_v60 = vmul.f32 %v6845_v59, %v5251_v33  ;;  %v5262_v18 = vmul.f32 %v6845_v59, %v5252_v34 }
 0xab0   :  { %v5276_v2 = vmul.f32 %v5272_v57, %v5262_v18  ;;  %v5275_v52 = vmul.f32 %v5268_v53, %v5261_v60 }
 0xab2   :  { %v5290_v3 = vadd.f32 %v5286_v63, %v5276_v2  ;;  %v5289_v4 = vadd.f32 %v5282_v62, %v5275_v52 }
 0xab4   :  { %v5292_v27 = vpack.c.bf16 %v5290_v3, %v5290_v3  ;;  %v5291_v54 = vpack.c.bf16 %v5289_v4, %v5289_v4 }
 0xab6   :  { %5460 = vmatprep.mubr.bf16.mxu0 %v5292_v27 }
 0xab7   :  { %5461 = vmatmul.mubr.bf16.vlgmr.msra.gmra.mrb[44].mxu0 %v5291_v54 }
 0xb8a   :  { %v6186_v5 = vpop.f32.mrb[44].mxu0 }
 0xb8b   :  { %v6187_v7 = vpop.f32.mrb[45].mxu0 }
 0xb8c   :  { %v6188_v8 = vadd.f32 %v6187_v7, %v6186_v5  ;;  %v6189_v20 = vpop.f32.mrb[46].mxu0 }
 0xb8d   :  { %v6190_v9 = vpop.f32.mrb[47].mxu0 }
 0xb8e   :  { %v5463_v22 = vadd.f32 %v6188_v8, %v6126_v6 }
 0xb90   :  { %5468 = vst [vmem:[#allocation25] sm:$0xff] %v5463_v22 }
 0xb91   :  { %7165 = shalt.err (!%p7162_p4)
}
 0xb92   :  { %s7829_s5 = sld [smem:[#allocation44_spill]] }
 0xb98   :  { %s7166_s23 = scalar_lea.hbm %s7829_s5, 128 }
 0xb99   :  { %p7167_p5 = scmp.ne.s32.totalorder %s7829_s5, %s7166_s23  ;;  %p7170_p6 = scmp.lt.u32.totalorder %s7166_s23, %s7829_s5 }
 0xb9b   :  { %p7172_p7 = pnand %p7170_p6, %p7167_p5 }
 0xb9d   :  { %7175 = shalt.err (!%p7172_p7)
}
 0xb9e   :  { %5478 = dma.vmem_to_hbm [thread:$0]  %s5476_s3, 128, %s7829_s5, [#allocation4]  }
 0xb9f   :  { %7192 = dma.done.wait [#allocation4], 128  }
 0xba0   :  { %7193 = vsyncadd [#allocation4], 4294967168 }
 0xba1   :  { %5482 = vsyncpa [#allocation3], 1 }
 0xba2   :  { %5483 = vsyncpa [#allocation6], 1 }
 0xba3   :  { %5484 = vsyncpa [#allocation9], 1 }
 0xba4   :  { %5485 = vsyncpa [#allocation12], 1 }
 0xba5   :  { %5486 = vsyncpa [#allocation15], 1 }
 0xba6   :  { %5487 = vsyncpa [#allocation18], 1 }
 0xba7   :  { %5488 = vsyncpa [#allocation21], 1 }
 0xba8   :  { %5489 = vsyncpa [#allocation24], 1 }
 0xba9   :  { %5490 = vsyncpa [#allocation4], 1 }

</bundles_post_ra>
